<compile_context>
chip_gen: v7x
topology: tpu7x:2x2x1
jax: 0.10.0
libtpu: 0.0.40
codegen_flags: <defaults>
</compile_context>

<pallas_src>
import functools
import math

import jax
import jax.numpy as jnp
from jax.experimental import pallas as pl
from jax.experimental.pallas import tpu as pltpu


def _transformer_block_kernel(
    x_ref,                        # (RB, C)  f32   RB = TB*T rows (TB sequences)
    ln1_g_ref, ln1_b_ref,         # (1, C)   f32
    wqkv_ref,                     # (C, 3C)  bf16  fused [Wq | Wk | Wv]
    wproj_ref,                    # (C, C)   bf16
    bproj_ref,                    # (1, C)   f32
    ln2_g_ref, ln2_b_ref,         # (1, C)   f32
    w1_ref,                       # (C, F)   bf16
    b1_ref,                       # (1, F)   f32
    w2_ref,                       # (F, C)   bf16
    b2_ref,                       # (1, C)   f32
    o_ref,                        # (RB, C)
    *, seq_len, n_head,
):
    f32, bf16 = jnp.float32, jnp.bfloat16
    x = x_ref[...].astype(f32)                       # (RB, C)
    RB, C = x.shape
    T = seq_len
    TB = RB // T                                     # sequences in this block
    H = n_head
    Dh = C // H
    scale = 1.0 / math.sqrt(Dh)

    def layer_norm(h, g_ref, b_ref):                 # f32 stats, eps = 1e-5
        mu = jnp.mean(h, axis=-1, keepdims=True)
        var = jnp.mean(jnp.square(h - mu), axis=-1, keepdims=True)
        return (h - mu) * jax.lax.rsqrt(var + 1e-5) * g_ref[...] + b_ref[...]

    # ---- multi-head causal self-attention (pre-LN) --------------------------
    xn1 = layer_norm(x, ln1_g_ref, ln1_b_ref)        # (RB, C)
    # One fused full-width (M=RB, K=C, N=3C) bf16 MXU matmul for Q|K|V.
    qkv = jnp.dot(xn1.astype(bf16), wqkv_ref[...],
                  preferred_element_type=f32)        # (RB, 3C) f32

    row = jax.lax.broadcasted_iota(jnp.int32, (T, T), 0)
    col = jax.lax.broadcasted_iota(jnp.int32, (T, T), 1)
    causal = (col <= row)[None]                      # (1, T, T)

    # TODO(synk): for long T, flash-tile the KV axis (online softmax) so the
    # per-head (TB, T, T) f32 score tile stays inside v7x's 64 MiB VMEM.
    head_ctx = []
    for h in range(H):                               # static unroll over heads
        lo = h * Dh
        qh = qkv[:, lo:lo + Dh].reshape(TB, T, Dh)               # static lane slices
        kh = qkv[:, C + lo:C + lo + Dh].reshape(TB, T, Dh)
        vh = qkv[:, 2 * C + lo:2 * C + lo + Dh].reshape(TB, T, Dh)
        s = jnp.einsum("bqd,bkd->bqk", qh, kh,
                       preferred_element_type=f32) * scale       # (TB, T, T)
        s = jnp.where(causal, s, -jnp.inf)
        s = s - jnp.max(s, axis=-1, keepdims=True)
        p = jnp.exp(s)
        p = p * pl.reciprocal(jnp.sum(p, axis=-1, keepdims=True), approx=True)
        # TODO(synk): attention dropout (p=0.1) treated as identity (eval mode).
        ctx = jnp.einsum("bqk,bkd->bqd", p, vh,
                         preferred_element_type=f32)             # (TB, T, Dh)
        head_ctx.append(ctx.reshape(RB, Dh))
    # PyTorch head-merge order: head h occupies lanes [h*Dh, (h+1)*Dh).
    ctx_all = jnp.concatenate(head_ctx, axis=-1)     # (RB, C)
    attn = jnp.dot(ctx_all.astype(bf16), wproj_ref[...],
                   preferred_element_type=f32) + bproj_ref[...]
    h1 = x + attn                                    # residual 1

    # ---- feed-forward (pre-LN, GELU) ----------------------------------------
    xn2 = layer_norm(h1, ln2_g_ref, ln2_b_ref)
    z = jnp.dot(xn2.astype(bf16), w1_ref[...],
                preferred_element_type=f32) + b1_ref[...]        # (RB, F)
    # TODO(synk): tanh-approx GELU (PyTorch nn.GELU() default is exact erf,
    # |delta| ~ 1e-3); the pure-JAX reference uses the same approximation.
    g = 0.5 * z * (1.0 + jnp.tanh(0.7978845608028654
                                  * (z + 0.044715 * z * z * z)))
    ff = jnp.dot(g.astype(bf16), w2_ref[...],
                 preferred_element_type=f32) + b2_ref[...]
    # TODO(synk): MLP dropouts (p=0.1) treated as identity (eval mode).
    o_ref[...] = (h1 + ff).astype(o_ref.dtype)       # residual 2


def _choose_batch_tile(batch, seq_len, target_rows):
    """Smallest TB dividing `batch` with TB*seq_len >= target_rows, else batch."""
    for tb in range(1, batch + 1):
        if batch % tb == 0 and tb * seq_len >= target_rows:
            return tb
    return batch


def transformer_block(x, params, n_head, *, target_rows=256):
    """x: (B, T, C) float32 -> TransformerBlock(x), same shape/dtype."""
    B, T, C = x.shape
    H = n_head
    assert C % H == 0 and C % 128 == 0, "n_embd must be lane-dense"
    F = 4 * C

    TB = _choose_batch_tile(B, T, target_rows)       # sequences per grid step
    RB = TB * T                                      # rows per grid step
    rows = B * T
    assert RB % 8 == 0, "rows per block must be sublane aligned"

    f32, bf16 = jnp.float32, jnp.bfloat16
    # Weight streaming in bf16 (halves weight HBM/VMEM bytes, MXU-native on
    # v6e/v7x); LN params and biases stay f32, accumulation is f32 in-kernel.
    wqkv = jnp.concatenate(
        [params["wq"], params["wk"], params["wv"]], axis=1).astype(bf16)   # (C, 3C)
    wproj = params["wproj"].astype(bf16)             # (C, C)
    w1 = params["w1"].astype(bf16)                   # (C, F)
    w2 = params["w2"].astype(bf16)                   # (F, C)
    v1 = lambda a: a.reshape(1, -1).astype(f32)      # 1-D params -> (1, N)

    x2 = x.reshape(rows, C)                          # lane-dense (B*T, C) rows

    # Per-chip VMEM budget: ~3/4 of physical (v5e/v6e 128 MiB -> 96 MiB,
    # v7x 64 MiB/TC -> 48 MiB), leaving headroom for Mosaic scratch.
    try:
        vmem_cap = pltpu.get_tpu_info().vmem_capacity_bytes
    except Exception:
        vmem_cap = 64 * 1024 * 1024
    vmem_limit = int(min(vmem_cap * 3 // 4, 100 * 1024 * 1024))

    kernel = functools.partial(_transformer_block_kernel, seq_len=T, n_head=H)
    kernel_args = (
        x2,
        v1(params["ln1_g"]), v1(params["ln1_b"]),
        wqkv, wproj, v1(params["bproj"]),
        v1(params["ln2_g"]), v1(params["ln2_b"]),
        w1, v1(params["b1"]), w2, v1(params["b2"]),
    )

    def run(single_buffer_weights):
        def const_spec(shape):
            zeros = (0,) * len(shape)
            if single_buffer_weights:
                # Constant-index weights never change across grid steps: keep
                # ONE resident copy instead of the default double buffer.
                return pl.BlockSpec(shape, lambda i: zeros,
                                    pipeline_mode=pl.Buffered(buffer_count=1))
            return pl.BlockSpec(shape, lambda i: zeros)

        grid_spec = pltpu.PrefetchScalarGridSpec(
            num_scalar_prefetch=0,
            grid=(rows // RB,),
            in_specs=[
                pl.BlockSpec((RB, C), lambda i: (i, 0)),       # x rows (pipelined)
                const_spec((1, C)), const_spec((1, C)),        # ln1 gamma/beta
                const_spec((C, 3 * C)),                        # fused wqkv
                const_spec((C, C)), const_spec((1, C)),        # wproj, bproj
                const_spec((1, C)), const_spec((1, C)),        # ln2 gamma/beta
                const_spec((C, F)), const_spec((1, F)),        # w1, b1
                const_spec((F, C)), const_spec((1, C)),        # w2, b2
            ],
            out_specs=pl.BlockSpec((RB, C), lambda i: (i, 0)),
        )
        out2 = pl.pallas_call(
            kernel,
            out_shape=jax.ShapeDtypeStruct((rows, C), x.dtype),
            grid_spec=grid_spec,
            compiler_params=pltpu.CompilerParams(
                # Row blocks are independent -> shard across TensorCores
                # (megacore / v7x 2-TC). Each TC keeps its own weight copy.
                dimension_semantics=("parallel",),
                vmem_limit_bytes=vmem_limit,
            ),
        )(*kernel_args)
        return jax.block_until_ready(out2)

    try:
        out2 = run(True)
    except Exception:
        # Fallback for jax versions without BlockSpec pipeline_mode support.
        out2 = run(False)

    return out2.reshape(B, T, C)


def _reference_block(x, p, n_head):
    """Pure-JAX reference mirroring the kernel numerics (eval mode, bf16
    matmul operands with f32 accumulation, tanh GELU)."""
    B, T, C = x.shape
    H = n_head
    Dh = C // H
    f32, bf16 = jnp.float32, jnp.bfloat16
    hp = jax.lax.Precision.HIGHEST

    def ln(h, g, b):
        mu = jnp.mean(h, axis=-1, keepdims=True)
        var = jnp.mean(jnp.square(h - mu), axis=-1, keepdims=True)
        return (h - mu) * jax.lax.rsqrt(var + 1e-5) * g + b

    def mm(a, w):
        return jnp.matmul(a.astype(bf16), w.astype(bf16),
                          preferred_element_type=f32)

    # --- MultiHeadAttention ---
    xn = ln(x, p["ln1_g"], p["ln1_b"])
    q = mm(xn, p["wq"]).reshape(B, T, H, Dh).transpose(0, 2, 1, 3)
    k = mm(xn, p["wk"]).reshape(B, T, H, Dh).transpose(0, 2, 1, 3)
    v = mm(xn, p["wv"]).reshape(B, T, H, Dh).transpose(0, 2, 1, 3)
    s = jnp.einsum("bhqd,bhkd->bhqk", q, k, precision=hp) / math.sqrt(Dh)
    mask = jnp.triu(jnp.ones((T, T), dtype=bool), k=1)
    s = jnp.where(mask[None, None], -jnp.inf, s)
    a = jax.nn.softmax(s, axis=-1)
    out = jnp.einsum("bhqk,bhkd->bhqd", a, v, precision=hp)
    out = out.transpose(0, 2, 1, 3).reshape(B, T, C)
    out = mm(out, p["wproj"]) + p["bproj"]
    x = x + out
    # --- FeedForward ---
    xn2 = ln(x, p["ln2_g"], p["ln2_b"])
    h = mm(xn2, p["w1"]) + p["b1"]
    h = jax.nn.gelu(h, approximate=True)   # tanh-approx GELU (see TODO above)
    ff = mm(h, p["w2"]) + p["b2"]
    return x + ff


if __name__ == "__main__":
    B, T, C, H = 2, 8, 128, 4      # batch=2, seq=8, n_embd=128 (lane-dense), heads=4
    F = 4 * C

    key = jax.random.PRNGKey(0)
    ks = jax.random.split(key, 16)
    sC = 1.0 / math.sqrt(C)
    sF = 1.0 / math.sqrt(F)
    params = {
        "ln1_g": 1.0 + 0.05 * jax.random.normal(ks[0], (C,), jnp.float32),
        "ln1_b": 0.05 * jax.random.normal(ks[1], (C,), jnp.float32),
        "wq": sC * jax.random.normal(ks[2], (C, C), jnp.float32),
        "wk": sC * jax.random.normal(ks[3], (C, C), jnp.float32),
        "wv": sC * jax.random.normal(ks[4], (C, C), jnp.float32),
        "wproj": sC * jax.random.normal(ks[5], (C, C), jnp.float32),
        "bproj": 0.02 * jax.random.normal(ks[6], (C,), jnp.float32),
        "ln2_g": 1.0 + 0.05 * jax.random.normal(ks[7], (C,), jnp.float32),
        "ln2_b": 0.05 * jax.random.normal(ks[8], (C,), jnp.float32),
        "w1": sC * jax.random.normal(ks[9], (C, F), jnp.float32),
        "b1": 0.02 * jax.random.normal(ks[10], (F,), jnp.float32),
        "w2": sF * jax.random.normal(ks[11], (F, C), jnp.float32),
        "b2": 0.02 * jax.random.normal(ks[12], (C,), jnp.float32),
    }
    x = jax.random.normal(ks[13], (B, T, C), jnp.float32)

    out = transformer_block(x, params, n_head=H)
    out = jax.block_until_ready(out)

    ref = _reference_block(x, params, n_head=H)
    assert out.shape == (B, T, C) and out.dtype == jnp.float32
    max_err = float(jnp.max(jnp.abs(out - ref)))
    # Kernel and reference share bf16 matmul operands / f32 accumulation; the
    # only numeric deltas are the approx softmax reciprocal and reduction order.
    assert max_err < 1e-2, f"max_err={max_err}"

    print("KERNEL_OK")
</pallas_src>

<mosaic_0001>
module attributes {stable_mosaic.version = 11 : i64} {
  func.func @_transformer_block_kernel(%arg0: i32, %arg1: memref<16x128xf32, #tpu.memory_space<vmem>>, %arg2: memref<1x128xf32, #tpu.memory_space<vmem>>, %arg3: memref<1x128xf32, #tpu.memory_space<vmem>>, %arg4: memref<128x384xbf16, #tpu.memory_space<vmem>>, %arg5: memref<128x128xbf16, #tpu.memory_space<vmem>>, %arg6: memref<1x128xf32, #tpu.memory_space<vmem>>, %arg7: memref<1x128xf32, #tpu.memory_space<vmem>>, %arg8: memref<1x128xf32, #tpu.memory_space<vmem>>, %arg9: memref<128x512xbf16, #tpu.memory_space<vmem>>, %arg10: memref<1x512xf32, #tpu.memory_space<vmem>>, %arg11: memref<512x128xbf16, #tpu.memory_space<vmem>>, %arg12: memref<1x128xf32, #tpu.memory_space<vmem>>, %arg13: memref<16x128xf32, #tpu.memory_space<vmem>>) attributes {dimension_semantics = [#tpu.dimension_semantics<parallel>], iteration_bounds = array<i64: 1>, scalar_prefetch = 0 : i64, scratch_operands = 0 : i64, tpu.core_type = #tpu.core_type<tc>, window_params = [{transform_indices = @transform_0, window_bounds = array<i64: 16, 128>}, {pipeline_mode = #tpu.pipeline_mode<synchronous>, transform_indices = @transform_1, window_bounds = array<i64: 1, 128>}, {pipeline_mode = #tpu.pipeline_mode<synchronous>, transform_indices = @transform_2, window_bounds = array<i64: 1, 128>}, {pipeline_mode = #tpu.pipeline_mode<synchronous>, transform_indices = @transform_3, window_bounds = array<i64: 128, 384>}, {pipeline_mode = #tpu.pipeline_mode<synchronous>, transform_indices = @transform_4, window_bounds = array<i64: 128, 128>}, {pipeline_mode = #tpu.pipeline_mode<synchronous>, transform_indices = @transform_5, window_bounds = array<i64: 1, 128>}, {pipeline_mode = #tpu.pipeline_mode<synchronous>, transform_indices = @transform_6, window_bounds = array<i64: 1, 128>}, {pipeline_mode = #tpu.pipeline_mode<synchronous>, transform_indices = @transform_7, window_bounds = array<i64: 1, 128>}, {pipeline_mode = #tpu.pipeline_mode<synchronous>, transform_indices = @transform_8, window_bounds = array<i64: 128, 512>}, {pipeline_mode = #tpu.pipeline_mode<synchronous>, transform_indices = @transform_9, window_bounds = array<i64: 1, 512>}, {pipeline_mode = #tpu.pipeline_mode<synchronous>, transform_indices = @transform_10, window_bounds = array<i64: 512, 128>}, {pipeline_mode = #tpu.pipeline_mode<synchronous>, transform_indices = @transform_11, window_bounds = array<i64: 1, 128>}, {transform_indices = @transform_12, window_bounds = array<i64: 16, 128>}]} {
    %c0 = arith.constant 0 : index
    %c0_0 = arith.constant 0 : index
    %0 = vector.load %arg1[%c0, %c0_0] : memref<16x128xf32, #tpu.memory_space<vmem>>, vector<16x128xf32>
    %cst = arith.constant dense<0.000000e+00> : vector<16xf32>
    %1 = vector.multi_reduction <add>, %0, %cst [1] : vector<16x128xf32> to vector<16xf32>
    %2 = vector.shape_cast %1 : vector<16xf32> to vector<16x1xf32>
    %cst_1 = arith.constant 1.280000e+02 : f32
    %3 = vector.broadcast %cst_1 : f32 to vector<16x1xf32>
    %4 = arith.divf %2, %3 : vector<16x1xf32>
    %5 = vector.broadcast %4 : vector<16x1xf32> to vector<16x128xf32>
    %6 = arith.subf %0, %5 : vector<16x128xf32>
    %7 = arith.mulf %6, %6 : vector<16x128xf32>
    %cst_2 = arith.constant dense<0.000000e+00> : vector<16xf32>
    %8 = vector.multi_reduction <add>, %7, %cst_2 [1] : vector<16x128xf32> to vector<16xf32>
    %9 = vector.shape_cast %8 : vector<16xf32> to vector<16x1xf32>
    %cst_3 = arith.constant 1.280000e+02 : f32
    %10 = vector.broadcast %cst_3 : f32 to vector<16x1xf32>
    %11 = arith.divf %9, %10 : vector<16x1xf32>
    %12 = vector.broadcast %4 : vector<16x1xf32> to vector<16x128xf32>
    %13 = arith.subf %0, %12 : vector<16x128xf32>
    %cst_4 = arith.constant 9.99999974E-6 : f32
    %14 = vector.broadcast %cst_4 : f32 to vector<16x1xf32>
    %15 = arith.addf %11, %14 : vector<16x1xf32>
    %16 = math.rsqrt %15 : vector<16x1xf32>
    %17 = vector.broadcast %16 : vector<16x1xf32> to vector<16x128xf32>
    %18 = arith.mulf %13, %17 : vector<16x128xf32>
    %c0_5 = arith.constant 0 : index
    %c0_6 = arith.constant 0 : index
    %19 = vector.load %arg2[%c0_5, %c0_6] : memref<1x128xf32, #tpu.memory_space<vmem>>, vector<1x128xf32>
    %20 = vector.broadcast %19 : vector<1x128xf32> to vector<16x128xf32>
    %21 = arith.mulf %18, %20 : vector<16x128xf32>
    %c0_7 = arith.constant 0 : index
    %c0_8 = arith.constant 0 : index
    %22 = vector.load %arg3[%c0_7, %c0_8] : memref<1x128xf32, #tpu.memory_space<vmem>>, vector<1x128xf32>
    %23 = vector.broadcast %22 : vector<1x128xf32> to vector<16x128xf32>
    %24 = arith.addf %21, %23 : vector<16x128xf32>
    %25 = arith.truncf %24 : vector<16x128xf32> to vector<16x128xbf16>
    %c0_9 = arith.constant 0 : index
    %c0_10 = arith.constant 0 : index
    %26 = vector.load %arg4[%c0_9, %c0_10] : memref<128x384xbf16, #tpu.memory_space<vmem>>, vector<128x384xbf16>
    %cst_11 = arith.constant dense<0.000000e+00> : vector<16x384xf32>
    %27 = tpu.matmul %25, %26, %cst_11 {dimension_numbers = #tpu.dot_dimension_numbers<[1], [0], [0], [1], [0, 0, 1, 1], [], []>} : vector<16x128xbf16>, vector<128x384xbf16>, vector<16x384xf32> -> vector<16x384xf32>
    %28 = tpu.iota {dimensions = array<i32: 0>} : vector<8x8xi32>
    %29 = tpu.iota {dimensions = array<i32: 1>} : vector<8x8xi32>
    %30 = arith.cmpi sle, %29, %28 : vector<8x8xi32>
    %31 = vector.shape_cast %30 : vector<8x8xi1> to vector<1x8x8xi1>
    %32 = vector.extract_strided_slice %27 {offsets = [0, 0], sizes = [16, 32], strides = [1, 1]} : vector<16x384xf32> to vector<16x32xf32>
    %33 = vector.shape_cast %32 : vector<16x32xf32> to vector<2x8x32xf32>
    %34 = vector.extract_strided_slice %27 {offsets = [0, 128], sizes = [16, 32], strides = [1, 1]} : vector<16x384xf32> to vector<16x32xf32>
    %35 = vector.shape_cast %34 : vector<16x32xf32> to vector<2x8x32xf32>
    %36 = vector.extract_strided_slice %27 {offsets = [0, 256], sizes = [16, 32], strides = [1, 1]} : vector<16x384xf32> to vector<16x32xf32>
    %37 = vector.shape_cast %36 : vector<16x32xf32> to vector<2x8x32xf32>
    "tpu.trace_start"() <{level = 10 : i32, message = "bqd,bkd->bqk"}> : () -> ()
    %cst_12 = arith.constant dense<0.000000e+00> : vector<2x8x8xf32>
    %38 = tpu.matmul %33, %35, %cst_12 {dimension_numbers = #tpu.dot_dimension_numbers<[2], [2], [1], [1], [0, 0, 0, 1, 1, 1], [0], [0]>} : vector<2x8x32xf32>, vector<2x8x32xf32>, vector<2x8x8xf32> -> vector<2x8x8xf32>
    "tpu.trace_stop"() : () -> ()
    %cst_13 = arith.constant 0.176776692 : f32
    %39 = vector.broadcast %cst_13 : f32 to vector<2x8x8xf32>
    %40 = arith.mulf %38, %39 : vector<2x8x8xf32>
    %cst_14 = arith.constant 0xFF800000 : f32
    %41 = vector.shape_cast %31 : vector<1x8x8xi1> to vector<1x8x8xi1>
    %42 = vector.broadcast %41 : vector<1x8x8xi1> to vector<2x8x8xi1>
    %43 = vector.broadcast %cst_14 : f32 to vector<2x8x8xf32>
    %44 = arith.select %42, %40, %43 : vector<2x8x8xi1>, vector<2x8x8xf32>
    %cst_15 = arith.constant dense<0xFF800000> : vector<2x8xf32>
    %45 = vector.multi_reduction <maximumf>, %44, %cst_15 [2] : vector<2x8x8xf32> to vector<2x8xf32>
    %46 = vector.shape_cast %45 : vector<2x8xf32> to vector<2x8x1xf32>
    %47 = vector.broadcast %46 : vector<2x8x1xf32> to vector<2x8x8xf32>
    %48 = arith.subf %44, %47 : vector<2x8x8xf32>
    %49 = math.exp %48 : vector<2x8x8xf32>
    %cst_16 = arith.constant dense<0.000000e+00> : vector<2x8xf32>
    %50 = vector.multi_reduction <add>, %49, %cst_16 [2] : vector<2x8x8xf32> to vector<2x8xf32>
    %51 = vector.shape_cast %50 : vector<2x8xf32> to vector<2x8x1xf32>
    %52 = tpu.reciprocal %51 {approx = true} : vector<2x8x1xf32> -> vector<2x8x1xf32>
    %53 = vector.broadcast %52 : vector<2x8x1xf32> to vector<2x8x8xf32>
    %54 = arith.mulf %49, %53 : vector<2x8x8xf32>
    "tpu.trace_start"() <{level = 10 : i32, message = "bqk,bkd->bqd"}> : () -> ()
    %cst_17 = arith.constant dense<0.000000e+00> : vector<2x8x32xf32>
    %55 = tpu.matmul %54, %37, %cst_17 {dimension_numbers = #tpu.dot_dimension_numbers<[2], [1], [1], [2], [0, 0, 0, 1, 1, 2], [0], [0]>} : vector<2x8x8xf32>, vector<2x8x32xf32>, vector<2x8x32xf32> -> vector<2x8x32xf32>
    "tpu.trace_stop"() : () -> ()
    %56 = vector.shape_cast %55 : vector<2x8x32xf32> to vector<16x32xf32>
    %57 = vector.extract_strided_slice %27 {offsets = [0, 32], sizes = [16, 32], strides = [1, 1]} : vector<16x384xf32> to vector<16x32xf32>
    %58 = vector.shape_cast %57 : vector<16x32xf32> to vector<2x8x32xf32>
    %59 = vector.extract_strided_slice %27 {offsets = [0, 160], sizes = [16, 32], strides = [1, 1]} : vector<16x384xf32> to vector<16x32xf32>
    %60 = vector.shape_cast %59 : vector<16x32xf32> to vector<2x8x32xf32>
    %61 = vector.extract_strided_slice %27 {offsets = [0, 288], sizes = [16, 32], strides = [1, 1]} : vector<16x384xf32> to vector<16x32xf32>
    %62 = vector.shape_cast %61 : vector<16x32xf32> to vector<2x8x32xf32>
    "tpu.trace_start"() <{level = 10 : i32, message = "bqd,bkd->bqk"}> : () -> ()
    %cst_18 = arith.constant dense<0.000000e+00> : vector<2x8x8xf32>
    %63 = tpu.matmul %58, %60, %cst_18 {dimension_numbers = #tpu.dot_dimension_numbers<[2], [2], [1], [1], [0, 0, 0, 1, 1, 1], [0], [0]>} : vector<2x8x32xf32>, vector<2x8x32xf32>, vector<2x8x8xf32> -> vector<2x8x8xf32>
    "tpu.trace_stop"() : () -> ()
    %cst_19 = arith.constant 0.176776692 : f32
    %64 = vector.broadcast %cst_19 : f32 to vector<2x8x8xf32>
    %65 = arith.mulf %63, %64 : vector<2x8x8xf32>
    %cst_20 = arith.constant 0xFF800000 : f32
    %66 = vector.shape_cast %31 : vector<1x8x8xi1> to vector<1x8x8xi1>
    %67 = vector.broadcast %66 : vector<1x8x8xi1> to vector<2x8x8xi1>
    %68 = vector.broadcast %cst_20 : f32 to vector<2x8x8xf32>
    %69 = arith.select %67, %65, %68 : vector<2x8x8xi1>, vector<2x8x8xf32>
    %cst_21 = arith.constant dense<0xFF800000> : vector<2x8xf32>
    %70 = vector.multi_reduction <maximumf>, %69, %cst_21 [2] : vector<2x8x8xf32> to vector<2x8xf32>
    %71 = vector.shape_cast %70 : vector<2x8xf32> to vector<2x8x1xf32>
    %72 = vector.broadcast %71 : vector<2x8x1xf32> to vector<2x8x8xf32>
    %73 = arith.subf %69, %72 : vector<2x8x8xf32>
    %74 = math.exp %73 : vector<2x8x8xf32>
    %cst_22 = arith.constant dense<0.000000e+00> : vector<2x8xf32>
    %75 = vector.multi_reduction <add>, %74, %cst_22 [2] : vector<2x8x8xf32> to vector<2x8xf32>
    %76 = vector.shape_cast %75 : vector<2x8xf32> to vector<2x8x1xf32>
    %77 = tpu.reciprocal %76 {approx = true} : vector<2x8x1xf32> -> vector<2x8x1xf32>
    %78 = vector.broadcast %77 : vector<2x8x1xf32> to vector<2x8x8xf32>
    %79 = arith.mulf %74, %78 : vector<2x8x8xf32>
    "tpu.trace_start"() <{level = 10 : i32, message = "bqk,bkd->bqd"}> : () -> ()
    %cst_23 = arith.constant dense<0.000000e+00> : vector<2x8x32xf32>
    %80 = tpu.matmul %79, %62, %cst_23 {dimension_numbers = #tpu.dot_dimension_numbers<[2], [1], [1], [2], [0, 0, 0, 1, 1, 2], [0], [0]>} : vector<2x8x8xf32>, vector<2x8x32xf32>, vector<2x8x32xf32> -> vector<2x8x32xf32>
    "tpu.trace_stop"() : () -> ()
    %81 = vector.shape_cast %80 : vector<2x8x32xf32> to vector<16x32xf32>
    %82 = vector.extract_strided_slice %27 {offsets = [0, 64], sizes = [16, 32], strides = [1, 1]} : vector<16x384xf32> to vector<16x32xf32>
    %83 = vector.shape_cast %82 : vector<16x32xf32> to vector<2x8x32xf32>
    %84 = vector.extract_strided_slice %27 {offsets = [0, 192], sizes = [16, 32], strides = [1, 1]} : vector<16x384xf32> to vector<16x32xf32>
    %85 = vector.shape_cast %84 : vector<16x32xf32> to vector<2x8x32xf32>
    %86 = vector.extract_strided_slice %27 {offsets = [0, 320], sizes = [16, 32], strides = [1, 1]} : vector<16x384xf32> to vector<16x32xf32>
    %87 = vector.shape_cast %86 : vector<16x32xf32> to vector<2x8x32xf32>
    "tpu.trace_start"() <{level = 10 : i32, message = "bqd,bkd->bqk"}> : () -> ()
    %cst_24 = arith.constant dense<0.000000e+00> : vector<2x8x8xf32>
    %88 = tpu.matmul %83, %85, %cst_24 {dimension_numbers = #tpu.dot_dimension_numbers<[2], [2], [1], [1], [0, 0, 0, 1, 1, 1], [0], [0]>} : vector<2x8x32xf32>, vector<2x8x32xf32>, vector<2x8x8xf32> -> vector<2x8x8xf32>
    "tpu.trace_stop"() : () -> ()
    %cst_25 = arith.constant 0.176776692 : f32
    %89 = vector.broadcast %cst_25 : f32 to vector<2x8x8xf32>
    %90 = arith.mulf %88, %89 : vector<2x8x8xf32>
    %cst_26 = arith.constant 0xFF800000 : f32
    %91 = vector.shape_cast %31 : vector<1x8x8xi1> to vector<1x8x8xi1>
    %92 = vector.broadcast %91 : vector<1x8x8xi1> to vector<2x8x8xi1>
    %93 = vector.broadcast %cst_26 : f32 to vector<2x8x8xf32>
    %94 = arith.select %92, %90, %93 : vector<2x8x8xi1>, vector<2x8x8xf32>
    %cst_27 = arith.constant dense<0xFF800000> : vector<2x8xf32>
    %95 = vector.multi_reduction <maximumf>, %94, %cst_27 [2] : vector<2x8x8xf32> to vector<2x8xf32>
    %96 = vector.shape_cast %95 : vector<2x8xf32> to vector<2x8x1xf32>
    %97 = vector.broadcast %96 : vector<2x8x1xf32> to vector<2x8x8xf32>
    %98 = arith.subf %94, %97 : vector<2x8x8xf32>
    %99 = math.exp %98 : vector<2x8x8xf32>
    %cst_28 = arith.constant dense<0.000000e+00> : vector<2x8xf32>
    %100 = vector.multi_reduction <add>, %99, %cst_28 [2] : vector<2x8x8xf32> to vector<2x8xf32>
    %101 = vector.shape_cast %100 : vector<2x8xf32> to vector<2x8x1xf32>
    %102 = tpu.reciprocal %101 {approx = true} : vector<2x8x1xf32> -> vector<2x8x1xf32>
    %103 = vector.broadcast %102 : vector<2x8x1xf32> to vector<2x8x8xf32>
    %104 = arith.mulf %99, %103 : vector<2x8x8xf32>
    "tpu.trace_start"() <{level = 10 : i32, message = "bqk,bkd->bqd"}> : () -> ()
    %cst_29 = arith.constant dense<0.000000e+00> : vector<2x8x32xf32>
    %105 = tpu.matmul %104, %87, %cst_29 {dimension_numbers = #tpu.dot_dimension_numbers<[2], [1], [1], [2], [0, 0, 0, 1, 1, 2], [0], [0]>} : vector<2x8x8xf32>, vector<2x8x32xf32>, vector<2x8x32xf32> -> vector<2x8x32xf32>
    "tpu.trace_stop"() : () -> ()
    %106 = vector.shape_cast %105 : vector<2x8x32xf32> to vector<16x32xf32>
    %107 = vector.extract_strided_slice %27 {offsets = [0, 96], sizes = [16, 32], strides = [1, 1]} : vector<16x384xf32> to vector<16x32xf32>
    %108 = vector.shape_cast %107 : vector<16x32xf32> to vector<2x8x32xf32>
    %109 = vector.extract_strided_slice %27 {offsets = [0, 224], sizes = [16, 32], strides = [1, 1]} : vector<16x384xf32> to vector<16x32xf32>
    %110 = vector.shape_cast %109 : vector<16x32xf32> to vector<2x8x32xf32>
    %111 = vector.extract_strided_slice %27 {offsets = [0, 352], sizes = [16, 32], strides = [1, 1]} : vector<16x384xf32> to vector<16x32xf32>
    %112 = vector.shape_cast %111 : vector<16x32xf32> to vector<2x8x32xf32>
    "tpu.trace_start"() <{level = 10 : i32, message = "bqd,bkd->bqk"}> : () -> ()
    %cst_30 = arith.constant dense<0.000000e+00> : vector<2x8x8xf32>
    %113 = tpu.matmul %108, %110, %cst_30 {dimension_numbers = #tpu.dot_dimension_numbers<[2], [2], [1], [1], [0, 0, 0, 1, 1, 1], [0], [0]>} : vector<2x8x32xf32>, vector<2x8x32xf32>, vector<2x8x8xf32> -> vector<2x8x8xf32>
    "tpu.trace_stop"() : () -> ()
    %cst_31 = arith.constant 0.176776692 : f32
    %114 = vector.broadcast %cst_31 : f32 to vector<2x8x8xf32>
    %115 = arith.mulf %113, %114 : vector<2x8x8xf32>
    %cst_32 = arith.constant 0xFF800000 : f32
    %116 = vector.shape_cast %31 : vector<1x8x8xi1> to vector<1x8x8xi1>
    %117 = vector.broadcast %116 : vector<1x8x8xi1> to vector<2x8x8xi1>
    %118 = vector.broadcast %cst_32 : f32 to vector<2x8x8xf32>
    %119 = arith.select %117, %115, %118 : vector<2x8x8xi1>, vector<2x8x8xf32>
    %cst_33 = arith.constant dense<0xFF800000> : vector<2x8xf32>
    %120 = vector.multi_reduction <maximumf>, %119, %cst_33 [2] : vector<2x8x8xf32> to vector<2x8xf32>
    %121 = vector.shape_cast %120 : vector<2x8xf32> to vector<2x8x1xf32>
    %122 = vector.broadcast %121 : vector<2x8x1xf32> to vector<2x8x8xf32>
    %123 = arith.subf %119, %122 : vector<2x8x8xf32>
    %124 = math.exp %123 : vector<2x8x8xf32>
    %cst_34 = arith.constant dense<0.000000e+00> : vector<2x8xf32>
    %125 = vector.multi_reduction <add>, %124, %cst_34 [2] : vector<2x8x8xf32> to vector<2x8xf32>
    %126 = vector.shape_cast %125 : vector<2x8xf32> to vector<2x8x1xf32>
    %127 = tpu.reciprocal %126 {approx = true} : vector<2x8x1xf32> -> vector<2x8x1xf32>
    %128 = vector.broadcast %127 : vector<2x8x1xf32> to vector<2x8x8xf32>
    %129 = arith.mulf %124, %128 : vector<2x8x8xf32>
    "tpu.trace_start"() <{level = 10 : i32, message = "bqk,bkd->bqd"}> : () -> ()
    %cst_35 = arith.constant dense<0.000000e+00> : vector<2x8x32xf32>
    %130 = tpu.matmul %129, %112, %cst_35 {dimension_numbers = #tpu.dot_dimension_numbers<[2], [1], [1], [2], [0, 0, 0, 1, 1, 2], [0], [0]>} : vector<2x8x8xf32>, vector<2x8x32xf32>, vector<2x8x32xf32> -> vector<2x8x32xf32>
    "tpu.trace_stop"() : () -> ()
    %131 = vector.shape_cast %130 : vector<2x8x32xf32> to vector<16x32xf32>
    %132 = tpu.concatenate %56, %81, %106, %131 in 1 : vector<16x32xf32>, vector<16x32xf32>, vector<16x32xf32>, vector<16x32xf32> -> vector<16x128xf32>
    %133 = arith.truncf %132 : vector<16x128xf32> to vector<16x128xbf16>
    %c0_36 = arith.constant 0 : index
    %c0_37 = arith.constant 0 : index
    %134 = vector.load %arg5[%c0_36, %c0_37] : memref<128x128xbf16, #tpu.memory_space<vmem>>, vector<128x128xbf16>
    %cst_38 = arith.constant dense<0.000000e+00> : vector<16x128xf32>
    %135 = tpu.matmul %133, %134, %cst_38 {dimension_numbers = #tpu.dot_dimension_numbers<[1], [0], [0], [1], [0, 0, 1, 1], [], []>} : vector<16x128xbf16>, vector<128x128xbf16>, vector<16x128xf32> -> vector<16x128xf32>
    %c0_39 = arith.constant 0 : index
    %c0_40 = arith.constant 0 : index
    %136 = vector.load %arg6[%c0_39, %c0_40] : memref<1x128xf32, #tpu.memory_space<vmem>>, vector<1x128xf32>
    %137 = vector.broadcast %136 : vector<1x128xf32> to vector<16x128xf32>
    %138 = arith.addf %135, %137 : vector<16x128xf32>
    %139 = arith.addf %0, %138 : vector<16x128xf32>
    %cst_41 = arith.constant dense<0.000000e+00> : vector<16xf32>
    %140 = vector.multi_reduction <add>, %139, %cst_41 [1] : vector<16x128xf32> to vector<16xf32>
    %141 = vector.shape_cast %140 : vector<16xf32> to vector<16x1xf32>
    %cst_42 = arith.constant 1.280000e+02 : f32
    %142 = vector.broadcast %cst_42 : f32 to vector<16x1xf32>
    %143 = arith.divf %141, %142 : vector<16x1xf32>
    %144 = vector.broadcast %143 : vector<16x1xf32> to vector<16x128xf32>
    %145 = arith.subf %139, %144 : vector<16x128xf32>
    %146 = arith.mulf %145, %145 : vector<16x128xf32>
    %cst_43 = arith.constant dense<0.000000e+00> : vector<16xf32>
    %147 = vector.multi_reduction <add>, %146, %cst_43 [1] : vector<16x128xf32> to vector<16xf32>
    %148 = vector.shape_cast %147 : vector<16xf32> to vector<16x1xf32>
    %cst_44 = arith.constant 1.280000e+02 : f32
    %149 = vector.broadcast %cst_44 : f32 to vector<16x1xf32>
    %150 = arith.divf %148, %149 : vector<16x1xf32>
    %151 = vector.broadcast %143 : vector<16x1xf32> to vector<16x128xf32>
    %152 = arith.subf %139, %151 : vector<16x128xf32>
    %cst_45 = arith.constant 9.99999974E-6 : f32
    %153 = vector.broadcast %cst_45 : f32 to vector<16x1xf32>
    %154 = arith.addf %150, %153 : vector<16x1xf32>
    %155 = math.rsqrt %154 : vector<16x1xf32>
    %156 = vector.broadcast %155 : vector<16x1xf32> to vector<16x128xf32>
    %157 = arith.mulf %152, %156 : vector<16x128xf32>
    %c0_46 = arith.constant 0 : index
    %c0_47 = arith.constant 0 : index
    %158 = vector.load %arg7[%c0_46, %c0_47] : memref<1x128xf32, #tpu.memory_space<vmem>>, vector<1x128xf32>
    %159 = vector.broadcast %158 : vector<1x128xf32> to vector<16x128xf32>
    %160 = arith.mulf %157, %159 : vector<16x128xf32>
    %c0_48 = arith.constant 0 : index
    %c0_49 = arith.constant 0 : index
    %161 = vector.load %arg8[%c0_48, %c0_49] : memref<1x128xf32, #tpu.memory_space<vmem>>, vector<1x128xf32>
    %162 = vector.broadcast %161 : vector<1x128xf32> to vector<16x128xf32>
    %163 = arith.addf %160, %162 : vector<16x128xf32>
    %164 = arith.truncf %163 : vector<16x128xf32> to vector<16x128xbf16>
    %c0_50 = arith.constant 0 : index
    %c0_51 = arith.constant 0 : index
    %165 = vector.load %arg9[%c0_50, %c0_51] : memref<128x512xbf16, #tpu.memory_space<vmem>>, vector<128x512xbf16>
    %cst_52 = arith.constant dense<0.000000e+00> : vector<16x512xf32>
    %166 = tpu.matmul %164, %165, %cst_52 {dimension_numbers = #tpu.dot_dimension_numbers<[1], [0], [0], [1], [0, 0, 1, 1], [], []>} : vector<16x128xbf16>, vector<128x512xbf16>, vector<16x512xf32> -> vector<16x512xf32>
    %c0_53 = arith.constant 0 : index
    %c0_54 = arith.constant 0 : index
    %167 = vector.load %arg10[%c0_53, %c0_54] : memref<1x512xf32, #tpu.memory_space<vmem>>, vector<1x512xf32>
    %168 = vector.broadcast %167 : vector<1x512xf32> to vector<16x512xf32>
    %169 = arith.addf %166, %168 : vector<16x512xf32>
    %cst_55 = arith.constant 5.000000e-01 : f32
    %170 = vector.broadcast %cst_55 : f32 to vector<16x512xf32>
    %171 = arith.mulf %170, %169 : vector<16x512xf32>
    %cst_56 = arith.constant 4.471500e-02 : f32
    %172 = vector.broadcast %cst_56 : f32 to vector<16x512xf32>
    %173 = arith.mulf %172, %169 : vector<16x512xf32>
    %174 = arith.mulf %173, %169 : vector<16x512xf32>
    %175 = arith.mulf %174, %169 : vector<16x512xf32>
    %176 = arith.addf %169, %175 : vector<16x512xf32>
    %cst_57 = arith.constant 0.797884583 : f32
    %177 = vector.broadcast %cst_57 : f32 to vector<16x512xf32>
    %178 = arith.mulf %177, %176 : vector<16x512xf32>
    %179 = math.tanh %178 : vector<16x512xf32>
    %cst_58 = arith.constant 1.000000e+00 : f32
    %180 = vector.broadcast %cst_58 : f32 to vector<16x512xf32>
    %181 = arith.addf %180, %179 : vector<16x512xf32>
    %182 = arith.mulf %171, %181 : vector<16x512xf32>
    %183 = arith.truncf %182 : vector<16x512xf32> to vector<16x512xbf16>
    %c0_59 = arith.constant 0 : index
    %c0_60 = arith.constant 0 : index
    %184 = vector.load %arg11[%c0_59, %c0_60] : memref<512x128xbf16, #tpu.memory_space<vmem>>, vector<512x128xbf16>
    %cst_61 = arith.constant dense<0.000000e+00> : vector<16x128xf32>
    %185 = tpu.matmul %183, %184, %cst_61 {dimension_numbers = #tpu.dot_dimension_numbers<[1], [0], [0], [1], [0, 0, 1, 1], [], []>} : vector<16x512xbf16>, vector<512x128xbf16>, vector<16x128xf32> -> vector<16x128xf32>
    %c0_62 = arith.constant 0 : index
    %c0_63 = arith.constant 0 : index
    %186 = vector.load %arg12[%c0_62, %c0_63] : memref<1x128xf32, #tpu.memory_space<vmem>>, vector<1x128xf32>
    %187 = vector.broadcast %186 : vector<1x128xf32> to vector<16x128xf32>
    %188 = arith.addf %185, %187 : vector<16x128xf32>
    %189 = arith.addf %139, %188 : vector<16x128xf32>
    %c0_64 = arith.constant 0 : index
    %c0_65 = arith.constant 0 : index
    %190 = vector.load %arg13[%c0_64, %c0_65] : memref<16x128xf32, #tpu.memory_space<vmem>>, vector<16x128xf32>
    tpu.vector_store %arg13[%c0_64, %c0_65], %189 {strides = array<i32>} : memref<16x128xf32, #tpu.memory_space<vmem>>, vector<16x128xf32>,
    return
  }
  func.func @transform_0(%arg0: i32) -> (i32, i32) {
    %c0_i32 = arith.constant 0 : i32
    %c0_i32_0 = arith.constant 0 : i32
    return %arg0, %c0_i32 : i32, i32
  }
  func.func @transform_1(%arg0: i32) -> (i32, i32) {
    %c0_i32 = arith.constant 0 : i32
    %c0_i32_0 = arith.constant 0 : i32
    %c0_i32_1 = arith.constant 0 : i32
    return %c0_i32, %c0_i32_0 : i32, i32
  }
  func.func @transform_2(%arg0: i32) -> (i32, i32) {
    %c0_i32 = arith.constant 0 : i32
    %c0_i32_0 = arith.constant 0 : i32
    %c0_i32_1 = arith.constant 0 : i32
    return %c0_i32, %c0_i32_0 : i32, i32
  }
  func.func @transform_3(%arg0: i32) -> (i32, i32) {
    %c0_i32 = arith.constant 0 : i32
    %c0_i32_0 = arith.constant 0 : i32
    %c0_i32_1 = arith.constant 0 : i32
    return %c0_i32, %c0_i32_0 : i32, i32
  }
  func.func @transform_4(%arg0: i32) -> (i32, i32) {
    %c0_i32 = arith.constant 0 : i32
    %c0_i32_0 = arith.constant 0 : i32
    %c0_i32_1 = arith.constant 0 : i32
    return %c0_i32, %c0_i32_0 : i32, i32
  }
  func.func @transform_5(%arg0: i32) -> (i32, i32) {
    %c0_i32 = arith.constant 0 : i32
    %c0_i32_0 = arith.constant 0 : i32
    %c0_i32_1 = arith.constant 0 : i32
    return %c0_i32, %c0_i32_0 : i32, i32
  }
  func.func @transform_6(%arg0: i32) -> (i32, i32) {
    %c0_i32 = arith.constant 0 : i32
    %c0_i32_0 = arith.constant 0 : i32
    %c0_i32_1 = arith.constant 0 : i32
    return %c0_i32, %c0_i32_0 : i32, i32
  }
  func.func @transform_7(%arg0: i32) -> (i32, i32) {
    %c0_i32 = arith.constant 0 : i32
    %c0_i32_0 = arith.constant 0 : i32
    %c0_i32_1 = arith.constant 0 : i32
    return %c0_i32, %c0_i32_0 : i32, i32
  }
  func.func @transform_8(%arg0: i32) -> (i32, i32) {
    %c0_i32 = arith.constant 0 : i32
    %c0_i32_0 = arith.constant 0 : i32
    %c0_i32_1 = arith.constant 0 : i32
    return %c0_i32, %c0_i32_0 : i32, i32
  }
  func.func @transform_9(%arg0: i32) -> (i32, i32) {
    %c0_i32 = arith.constant 0 : i32
    %c0_i32_0 = arith.constant 0 : i32
    %c0_i32_1 = arith.constant 0 : i32
    return %c0_i32, %c0_i32_0 : i32, i32
  }
  func.func @transform_10(%arg0: i32) -> (i32, i32) {
    %c0_i32 = arith.constant 0 : i32
    %c0_i32_0 = arith.constant 0 : i32
    %c0_i32_1 = arith.constant 0 : i32
    return %c0_i32, %c0_i32_0 : i32, i32
  }
  func.func @transform_11(%arg0: i32) -> (i32, i32) {
    %c0_i32 = arith.constant 0 : i32
    %c0_i32_0 = arith.constant 0 : i32
    %c0_i32_1 = arith.constant 0 : i32
    return %c0_i32, %c0_i32_0 : i32, i32
  }
  func.func @transform_12(%arg0: i32) -> (i32, i32) {
    %c0_i32 = arith.constant 0 : i32
    %c0_i32_0 = arith.constant 0 : i32
    return %arg0, %c0_i32 : i32, i32
  }
}

module attributes {stable_mosaic.version = 11 : i64} {
  func.func @_transformer_block_kernel(%arg0: i32, %arg1: memref<16x128xf32, #tpu.memory_space<vmem>>, %arg2: memref<1x128xf32, #tpu.memory_space<vmem>>, %arg3: memref<1x128xf32, #tpu.memory_space<vmem>>, %arg4: memref<128x384xbf16, #tpu.memory_space<vmem>>, %arg5: memref<128x128xbf16, #tpu.memory_space<vmem>>, %arg6: memref<1x128xf32, #tpu.memory_space<vmem>>, %arg7: memref<1x128xf32, #tpu.memory_space<vmem>>, %arg8: memref<1x128xf32, #tpu.memory_space<vmem>>, %arg9: memref<128x512xbf16, #tpu.memory_space<vmem>>, %arg10: memref<1x512xf32, #tpu.memory_space<vmem>>, %arg11: memref<512x128xbf16, #tpu.memory_space<vmem>>, %arg12: memref<1x128xf32, #tpu.memory_space<vmem>>, %arg13: memref<16x128xf32, #tpu.memory_space<vmem>>) attributes {dimension_semantics = [#tpu.dimension_semantics<parallel>], iteration_bounds = array<i64: 1>, scalar_prefetch = 0 : i64, scratch_operands = 0 : i64, tpu.core_type = #tpu.core_type<tc>, window_params = [{transform_indices = @transform_0, window_bounds = array<i64: 16, 128>}, {pipeline_mode = #tpu.pipeline_mode<synchronous>, transform_indices = @transform_1, window_bounds = array<i64: 1, 128>}, {pipeline_mode = #tpu.pipeline_mode<synchronous>, transform_indices = @transform_2, window_bounds = array<i64: 1, 128>}, {pipeline_mode = #tpu.pipeline_mode<synchronous>, transform_indices = @transform_3, window_bounds = array<i64: 128, 384>}, {pipeline_mode = #tpu.pipeline_mode<synchronous>, transform_indices = @transform_4, window_bounds = array<i64: 128, 128>}, {pipeline_mode = #tpu.pipeline_mode<synchronous>, transform_indices = @transform_5, window_bounds = array<i64: 1, 128>}, {pipeline_mode = #tpu.pipeline_mode<synchronous>, transform_indices = @transform_6, window_bounds = array<i64: 1, 128>}, {pipeline_mode = #tpu.pipeline_mode<synchronous>, transform_indices = @transform_7, window_bounds = array<i64: 1, 128>}, {pipeline_mode = #tpu.pipeline_mode<synchronous>, transform_indices = @transform_8, window_bounds = array<i64: 128, 512>}, {pipeline_mode = #tpu.pipeline_mode<synchronous>, transform_indices = @transform_9, window_bounds = array<i64: 1, 512>}, {pipeline_mode = #tpu.pipeline_mode<synchronous>, transform_indices = @transform_10, window_bounds = array<i64: 512, 128>}, {pipeline_mode = #tpu.pipeline_mode<synchronous>, transform_indices = @transform_11, window_bounds = array<i64: 1, 128>}, {transform_indices = @transform_12, window_bounds = array<i64: 16, 128>}]} {
    %c0 = arith.constant 0 : index
    %c0_0 = arith.constant 0 : index
    %0 = vector.load %arg1[%c0, %c0_0] : memref<16x128xf32, #tpu.memory_space<vmem>>, vector<16x128xf32>
    %cst = arith.constant dense<0.000000e+00> : vector<16xf32>
    %1 = vector.multi_reduction <add>, %0, %cst [1] : vector<16x128xf32> to vector<16xf32>
    %2 = vector.shape_cast %1 : vector<16xf32> to vector<16x1xf32>
    %cst_1 = arith.constant 1.280000e+02 : f32
    %3 = vector.broadcast %cst_1 : f32 to vector<16x1xf32>
    %4 = arith.divf %2, %3 : vector<16x1xf32>
    %5 = vector.broadcast %4 : vector<16x1xf32> to vector<16x128xf32>
    %6 = arith.subf %0, %5 : vector<16x128xf32>
    %7 = arith.mulf %6, %6 : vector<16x128xf32>
    %cst_2 = arith.constant dense<0.000000e+00> : vector<16xf32>
    %8 = vector.multi_reduction <add>, %7, %cst_2 [1] : vector<16x128xf32> to vector<16xf32>
    %9 = vector.shape_cast %8 : vector<16xf32> to vector<16x1xf32>
    %cst_3 = arith.constant 1.280000e+02 : f32
    %10 = vector.broadcast %cst_3 : f32 to vector<16x1xf32>
    %11 = arith.divf %9, %10 : vector<16x1xf32>
    %12 = vector.broadcast %4 : vector<16x1xf32> to vector<16x128xf32>
    %13 = arith.subf %0, %12 : vector<16x128xf32>
    %cst_4 = arith.constant 9.99999974E-6 : f32
    %14 = vector.broadcast %cst_4 : f32 to vector<16x1xf32>
    %15 = arith.addf %11, %14 : vector<16x1xf32>
    %16 = math.rsqrt %15 : vector<16x1xf32>
    %17 = vector.broadcast %16 : vector<16x1xf32> to vector<16x128xf32>
    %18 = arith.mulf %13, %17 : vector<16x128xf32>
    %c0_5 = arith.constant 0 : index
    %c0_6 = arith.constant 0 : index
    %19 = vector.load %arg2[%c0_5, %c0_6] : memref<1x128xf32, #tpu.memory_space<vmem>>, vector<1x128xf32>
    %20 = vector.broadcast %19 : vector<1x128xf32> to vector<16x128xf32>
    %21 = arith.mulf %18, %20 : vector<16x128xf32>
    %c0_7 = arith.constant 0 : index
    %c0_8 = arith.constant 0 : index
    %22 = vector.load %arg3[%c0_7, %c0_8] : memref<1x128xf32, #tpu.memory_space<vmem>>, vector<1x128xf32>
    %23 = vector.broadcast %22 : vector<1x128xf32> to vector<16x128xf32>
    %24 = arith.addf %21, %23 : vector<16x128xf32>
    %25 = arith.truncf %24 : vector<16x128xf32> to vector<16x128xbf16>
    %c0_9 = arith.constant 0 : index
    %c0_10 = arith.constant 0 : index
    %26 = vector.load %arg4[%c0_9, %c0_10] : memref<128x384xbf16, #tpu.memory_space<vmem>>, vector<128x384xbf16>
    %cst_11 = arith.constant dense<0.000000e+00> : vector<16x384xf32>
    %27 = tpu.matmul %25, %26, %cst_11 {dimension_numbers = #tpu.dot_dimension_numbers<[1], [0], [0], [1], [0, 0, 1, 1], [], []>} : vector<16x128xbf16>, vector<128x384xbf16>, vector<16x384xf32> -> vector<16x384xf32>
    %28 = tpu.iota {dimensions = array<i32: 0>} : vector<8x8xi32>
    %29 = tpu.iota {dimensions = array<i32: 1>} : vector<8x8xi32>
    %30 = arith.cmpi sle, %29, %28 : vector<8x8xi32>
    %31 = vector.shape_cast %30 : vector<8x8xi1> to vector<1x8x8xi1>
    %32 = vector.extract_strided_slice %27 {offsets = [0, 0], sizes = [16, 32], strides = [1, 1]} : vector<16x384xf32> to vector<16x32xf32>
    %33 = vector.shape_cast %32 : vector<16x32xf32> to vector<2x8x32xf32>
    %34 = vector.extract_strided_slice %27 {offsets = [0, 128], sizes = [16, 32], strides = [1, 1]} : vector<16x384xf32> to vector<16x32xf32>
    %35 = vector.shape_cast %34 : vector<16x32xf32> to vector<2x8x32xf32>
    %36 = vector.extract_strided_slice %27 {offsets = [0, 256], sizes = [16, 32], strides = [1, 1]} : vector<16x384xf32> to vector<16x32xf32>
    %37 = vector.shape_cast %36 : vector<16x32xf32> to vector<2x8x32xf32>
    "tpu.trace_start"() <{level = 10 : i32, message = "bqd,bkd->bqk"}> : () -> ()
    %cst_12 = arith.constant dense<0.000000e+00> : vector<2x8x8xf32>
    %38 = tpu.matmul %33, %35, %cst_12 {dimension_numbers = #tpu.dot_dimension_numbers<[2], [2], [1], [1], [0, 0, 0, 1, 1, 1], [0], [0]>} : vector<2x8x32xf32>, vector<2x8x32xf32>, vector<2x8x8xf32> -> vector<2x8x8xf32>
    "tpu.trace_stop"() : () -> ()
    %cst_13 = arith.constant 0.176776692 : f32
    %39 = vector.broadcast %cst_13 : f32 to vector<2x8x8xf32>
    %40 = arith.mulf %38, %39 : vector<2x8x8xf32>
    %cst_14 = arith.constant 0xFF800000 : f32
    %41 = vector.shape_cast %31 : vector<1x8x8xi1> to vector<1x8x8xi1>
    %42 = vector.broadcast %41 : vector<1x8x8xi1> to vector<2x8x8xi1>
    %43 = vector.broadcast %cst_14 : f32 to vector<2x8x8xf32>
    %44 = arith.select %42, %40, %43 : vector<2x8x8xi1>, vector<2x8x8xf32>
    %cst_15 = arith.constant dense<0xFF800000> : vector<2x8xf32>
    %45 = vector.multi_reduction <maximumf>, %44, %cst_15 [2] : vector<2x8x8xf32> to vector<2x8xf32>
    %46 = vector.shape_cast %45 : vector<2x8xf32> to vector<2x8x1xf32>
    %47 = vector.broadcast %46 : vector<2x8x1xf32> to vector<2x8x8xf32>
    %48 = arith.subf %44, %47 : vector<2x8x8xf32>
    %49 = math.exp %48 : vector<2x8x8xf32>
    %cst_16 = arith.constant dense<0.000000e+00> : vector<2x8xf32>
    %50 = vector.multi_reduction <add>, %49, %cst_16 [2] : vector<2x8x8xf32> to vector<2x8xf32>
    %51 = vector.shape_cast %50 : vector<2x8xf32> to vector<2x8x1xf32>
    %52 = tpu.reciprocal %51 {approx = true} : vector<2x8x1xf32> -> vector<2x8x1xf32>
    %53 = vector.broadcast %52 : vector<2x8x1xf32> to vector<2x8x8xf32>
    %54 = arith.mulf %49, %53 : vector<2x8x8xf32>
    "tpu.trace_start"() <{level = 10 : i32, message = "bqk,bkd->bqd"}> : () -> ()
    %cst_17 = arith.constant dense<0.000000e+00> : vector<2x8x32xf32>
    %55 = tpu.matmul %54, %37, %cst_17 {dimension_numbers = #tpu.dot_dimension_numbers<[2], [1], [1], [2], [0, 0, 0, 1, 1, 2], [0], [0]>} : vector<2x8x8xf32>, vector<2x8x32xf32>, vector<2x8x32xf32> -> vector<2x8x32xf32>
    "tpu.trace_stop"() : () -> ()
    %56 = vector.shape_cast %55 : vector<2x8x32xf32> to vector<16x32xf32>
    %57 = vector.extract_strided_slice %27 {offsets = [0, 32], sizes = [16, 32], strides = [1, 1]} : vector<16x384xf32> to vector<16x32xf32>
    %58 = vector.shape_cast %57 : vector<16x32xf32> to vector<2x8x32xf32>
    %59 = vector.extract_strided_slice %27 {offsets = [0, 160], sizes = [16, 32], strides = [1, 1]} : vector<16x384xf32> to vector<16x32xf32>
    %60 = vector.shape_cast %59 : vector<16x32xf32> to vector<2x8x32xf32>
    %61 = vector.extract_strided_slice %27 {offsets = [0, 288], sizes = [16, 32], strides = [1, 1]} : vector<16x384xf32> to vector<16x32xf32>
    %62 = vector.shape_cast %61 : vector<16x32xf32> to vector<2x8x32xf32>
    "tpu.trace_start"() <{level = 10 : i32, message = "bqd,bkd->bqk"}> : () -> ()
    %cst_18 = arith.constant dense<0.000000e+00> : vector<2x8x8xf32>
    %63 = tpu.matmul %58, %60, %cst_18 {dimension_numbers = #tpu.dot_dimension_numbers<[2], [2], [1], [1], [0, 0, 0, 1, 1, 1], [0], [0]>} : vector<2x8x32xf32>, vector<2x8x32xf32>, vector<2x8x8xf32> -> vector<2x8x8xf32>
    "tpu.trace_stop"() : () -> ()
    %cst_19 = arith.constant 0.176776692 : f32
    %64 = vector.broadcast %cst_19 : f32 to vector<2x8x8xf32>
    %65 = arith.mulf %63, %64 : vector<2x8x8xf32>
    %cst_20 = arith.constant 0xFF800000 : f32
    %66 = vector.shape_cast %31 : vector<1x8x8xi1> to vector<1x8x8xi1>
    %67 = vector.broadcast %66 : vector<1x8x8xi1> to vector<2x8x8xi1>
    %68 = vector.broadcast %cst_20 : f32 to vector<2x8x8xf32>
    %69 = arith.select %67, %65, %68 : vector<2x8x8xi1>, vector<2x8x8xf32>
    %cst_21 = arith.constant dense<0xFF800000> : vector<2x8xf32>
    %70 = vector.multi_reduction <maximumf>, %69, %cst_21 [2] : vector<2x8x8xf32> to vector<2x8xf32>
    %71 = vector.shape_cast %70 : vector<2x8xf32> to vector<2x8x1xf32>
    %72 = vector.broadcast %71 : vector<2x8x1xf32> to vector<2x8x8xf32>
    %73 = arith.subf %69, %72 : vector<2x8x8xf32>
    %74 = math.exp %73 : vector<2x8x8xf32>
    %cst_22 = arith.constant dense<0.000000e+00> : vector<2x8xf32>
    %75 = vector.multi_reduction <add>, %74, %cst_22 [2] : vector<2x8x8xf32> to vector<2x8xf32>
    %76 = vector.shape_cast %75 : vector<2x8xf32> to vector<2x8x1xf32>
    %77 = tpu.reciprocal %76 {approx = true} : vector<2x8x1xf32> -> vector<2x8x1xf32>
    %78 = vector.broadcast %77 : vector<2x8x1xf32> to vector<2x8x8xf32>
    %79 = arith.mulf %74, %78 : vector<2x8x8xf32>
    "tpu.trace_start"() <{level = 10 : i32, message = "bqk,bkd->bqd"}> : () -> ()
    %cst_23 = arith.constant dense<0.000000e+00> : vector<2x8x32xf32>
    %80 = tpu.matmul %79, %62, %cst_23 {dimension_numbers = #tpu.dot_dimension_numbers<[2], [1], [1], [2], [0, 0, 0, 1, 1, 2], [0], [0]>} : vector<2x8x8xf32>, vector<2x8x32xf32>, vector<2x8x32xf32> -> vector<2x8x32xf32>
    "tpu.trace_stop"() : () -> ()
    %81 = vector.shape_cast %80 : vector<2x8x32xf32> to vector<16x32xf32>
    %82 = vector.extract_strided_slice %27 {offsets = [0, 64], sizes = [16, 32], strides = [1, 1]} : vector<16x384xf32> to vector<16x32xf32>
    %83 = vector.shape_cast %82 : vector<16x32xf32> to vector<2x8x32xf32>
    %84 = vector.extract_strided_slice %27 {offsets = [0, 192], sizes = [16, 32], strides = [1, 1]} : vector<16x384xf32> to vector<16x32xf32>
    %85 = vector.shape_cast %84 : vector<16x32xf32> to vector<2x8x32xf32>
    %86 = vector.extract_strided_slice %27 {offsets = [0, 320], sizes = [16, 32], strides = [1, 1]} : vector<16x384xf32> to vector<16x32xf32>
    %87 = vector.shape_cast %86 : vector<16x32xf32> to vector<2x8x32xf32>
    "tpu.trace_start"() <{level = 10 : i32, message = "bqd,bkd->bqk"}> : () -> ()
    %cst_24 = arith.constant dense<0.000000e+00> : vector<2x8x8xf32>
    %88 = tpu.matmul %83, %85, %cst_24 {dimension_numbers = #tpu.dot_dimension_numbers<[2], [2], [1], [1], [0, 0, 0, 1, 1, 1], [0], [0]>} : vector<2x8x32xf32>, vector<2x8x32xf32>, vector<2x8x8xf32> -> vector<2x8x8xf32>
    "tpu.trace_stop"() : () -> ()
    %cst_25 = arith.constant 0.176776692 : f32
    %89 = vector.broadcast %cst_25 : f32 to vector<2x8x8xf32>
    %90 = arith.mulf %88, %89 : vector<2x8x8xf32>
    %cst_26 = arith.constant 0xFF800000 : f32
    %91 = vector.shape_cast %31 : vector<1x8x8xi1> to vector<1x8x8xi1>
    %92 = vector.broadcast %91 : vector<1x8x8xi1> to vector<2x8x8xi1>
    %93 = vector.broadcast %cst_26 : f32 to vector<2x8x8xf32>
    %94 = arith.select %92, %90, %93 : vector<2x8x8xi1>, vector<2x8x8xf32>
    %cst_27 = arith.constant dense<0xFF800000> : vector<2x8xf32>
    %95 = vector.multi_reduction <maximumf>, %94, %cst_27 [2] : vector<2x8x8xf32> to vector<2x8xf32>
    %96 = vector.shape_cast %95 : vector<2x8xf32> to vector<2x8x1xf32>
    %97 = vector.broadcast %96 : vector<2x8x1xf32> to vector<2x8x8xf32>
    %98 = arith.subf %94, %97 : vector<2x8x8xf32>
    %99 = math.exp %98 : vector<2x8x8xf32>
    %cst_28 = arith.constant dense<0.000000e+00> : vector<2x8xf32>
    %100 = vector.multi_reduction <add>, %99, %cst_28 [2] : vector<2x8x8xf32> to vector<2x8xf32>
    %101 = vector.shape_cast %100 : vector<2x8xf32> to vector<2x8x1xf32>
    %102 = tpu.reciprocal %101 {approx = true} : vector<2x8x1xf32> -> vector<2x8x1xf32>
    %103 = vector.broadcast %102 : vector<2x8x1xf32> to vector<2x8x8xf32>
    %104 = arith.mulf %99, %103 : vector<2x8x8xf32>
    "tpu.trace_start"() <{level = 10 : i32, message = "bqk,bkd->bqd"}> : () -> ()
    %cst_29 = arith.constant dense<0.000000e+00> : vector<2x8x32xf32>
    %105 = tpu.matmul %104, %87, %cst_29 {dimension_numbers = #tpu.dot_dimension_numbers<[2], [1], [1], [2], [0, 0, 0, 1, 1, 2], [0], [0]>} : vector<2x8x8xf32>, vector<2x8x32xf32>, vector<2x8x32xf32> -> vector<2x8x32xf32>
    "tpu.trace_stop"() : () -> ()
    %106 = vector.shape_cast %105 : vector<2x8x32xf32> to vector<16x32xf32>
    %107 = vector.extract_strided_slice %27 {offsets = [0, 96], sizes = [16, 32], strides = [1, 1]} : vector<16x384xf32> to vector<16x32xf32>
    %108 = vector.shape_cast %107 : vector<16x32xf32> to vector<2x8x32xf32>
    %109 = vector.extract_strided_slice %27 {offsets = [0, 224], sizes = [16, 32], strides = [1, 1]} : vector<16x384xf32> to vector<16x32xf32>
    %110 = vector.shape_cast %109 : vector<16x32xf32> to vector<2x8x32xf32>
    %111 = vector.extract_strided_slice %27 {offsets = [0, 352], sizes = [16, 32], strides = [1, 1]} : vector<16x384xf32> to vector<16x32xf32>
    %112 = vector.shape_cast %111 : vector<16x32xf32> to vector<2x8x32xf32>
    "tpu.trace_start"() <{level = 10 : i32, message = "bqd,bkd->bqk"}> : () -> ()
    %cst_30 = arith.constant dense<0.000000e+00> : vector<2x8x8xf32>
    %113 = tpu.matmul %108, %110, %cst_30 {dimension_numbers = #tpu.dot_dimension_numbers<[2], [2], [1], [1], [0, 0, 0, 1, 1, 1], [0], [0]>} : vector<2x8x32xf32>, vector<2x8x32xf32>, vector<2x8x8xf32> -> vector<2x8x8xf32>
    "tpu.trace_stop"() : () -> ()
    %cst_31 = arith.constant 0.176776692 : f32
    %114 = vector.broadcast %cst_31 : f32 to vector<2x8x8xf32>
    %115 = arith.mulf %113, %114 : vector<2x8x8xf32>
    %cst_32 = arith.constant 0xFF800000 : f32
    %116 = vector.shape_cast %31 : vector<1x8x8xi1> to vector<1x8x8xi1>
    %117 = vector.broadcast %116 : vector<1x8x8xi1> to vector<2x8x8xi1>
    %118 = vector.broadcast %cst_32 : f32 to vector<2x8x8xf32>
    %119 = arith.select %117, %115, %118 : vector<2x8x8xi1>, vector<2x8x8xf32>
    %cst_33 = arith.constant dense<0xFF800000> : vector<2x8xf32>
    %120 = vector.multi_reduction <maximumf>, %119, %cst_33 [2] : vector<2x8x8xf32> to vector<2x8xf32>
    %121 = vector.shape_cast %120 : vector<2x8xf32> to vector<2x8x1xf32>
    %122 = vector.broadcast %121 : vector<2x8x1xf32> to vector<2x8x8xf32>
    %123 = arith.subf %119, %122 : vector<2x8x8xf32>
    %124 = math.exp %123 : vector<2x8x8xf32>
    %cst_34 = arith.constant dense<0.000000e+00> : vector<2x8xf32>
    %125 = vector.multi_reduction <add>, %124, %cst_34 [2] : vector<2x8x8xf32> to vector<2x8xf32>
    %126 = vector.shape_cast %125 : vector<2x8xf32> to vector<2x8x1xf32>
    %127 = tpu.reciprocal %126 {approx = true} : vector<2x8x1xf32> -> vector<2x8x1xf32>
    %128 = vector.broadcast %127 : vector<2x8x1xf32> to vector<2x8x8xf32>
    %129 = arith.mulf %124, %128 : vector<2x8x8xf32>
    "tpu.trace_start"() <{level = 10 : i32, message = "bqk,bkd->bqd"}> : () -> ()
    %cst_35 = arith.constant dense<0.000000e+00> : vector<2x8x32xf32>
    %130 = tpu.matmul %129, %112, %cst_35 {dimension_numbers = #tpu.dot_dimension_numbers<[2], [1], [1], [2], [0, 0, 0, 1, 1, 2], [0], [0]>} : vector<2x8x8xf32>, vector<2x8x32xf32>, vector<2x8x32xf32> -> vector<2x8x32xf32>
    "tpu.trace_stop"() : () -> ()
    %131 = vector.shape_cast %130 : vector<2x8x32xf32> to vector<16x32xf32>
    %132 = tpu.concatenate %56, %81, %106, %131 in 1 : vector<16x32xf32>, vector<16x32xf32>, vector<16x32xf32>, vector<16x32xf32> -> vector<16x128xf32>
    %133 = arith.truncf %132 : vector<16x128xf32> to vector<16x128xbf16>
    %c0_36 = arith.constant 0 : index
    %c0_37 = arith.constant 0 : index
    %134 = vector.load %arg5[%c0_36, %c0_37] : memref<128x128xbf16, #tpu.memory_space<vmem>>, vector<128x128xbf16>
    %cst_38 = arith.constant dense<0.000000e+00> : vector<16x128xf32>
    %135 = tpu.matmul %133, %134, %cst_38 {dimension_numbers = #tpu.dot_dimension_numbers<[1], [0], [0], [1], [0, 0, 1, 1], [], []>} : vector<16x128xbf16>, vector<128x128xbf16>, vector<16x128xf32> -> vector<16x128xf32>
    %c0_39 = arith.constant 0 : index
    %c0_40 = arith.constant 0 : index
    %136 = vector.load %arg6[%c0_39, %c0_40] : memref<1x128xf32, #tpu.memory_space<vmem>>, vector<1x128xf32>
    %137 = vector.broadcast %136 : vector<1x128xf32> to vector<16x128xf32>
    %138 = arith.addf %135, %137 : vector<16x128xf32>
    %139 = arith.addf %0, %138 : vector<16x128xf32>
    %cst_41 = arith.constant dense<0.000000e+00> : vector<16xf32>
    %140 = vector.multi_reduction <add>, %139, %cst_41 [1] : vector<16x128xf32> to vector<16xf32>
    %141 = vector.shape_cast %140 : vector<16xf32> to vector<16x1xf32>
    %cst_42 = arith.constant 1.280000e+02 : f32
    %142 = vector.broadcast %cst_42 : f32 to vector<16x1xf32>
    %143 = arith.divf %141, %142 : vector<16x1xf32>
    %144 = vector.broadcast %143 : vector<16x1xf32> to vector<16x128xf32>
    %145 = arith.subf %139, %144 : vector<16x128xf32>
    %146 = arith.mulf %145, %145 : vector<16x128xf32>
    %cst_43 = arith.constant dense<0.000000e+00> : vector<16xf32>
    %147 = vector.multi_reduction <add>, %146, %cst_43 [1] : vector<16x128xf32> to vector<16xf32>
    %148 = vector.shape_cast %147 : vector<16xf32> to vector<16x1xf32>
    %cst_44 = arith.constant 1.280000e+02 : f32
    %149 = vector.broadcast %cst_44 : f32 to vector<16x1xf32>
    %150 = arith.divf %148, %149 : vector<16x1xf32>
    %151 = vector.broadcast %143 : vector<16x1xf32> to vector<16x128xf32>
    %152 = arith.subf %139, %151 : vector<16x128xf32>
    %cst_45 = arith.constant 9.99999974E-6 : f32
    %153 = vector.broadcast %cst_45 : f32 to vector<16x1xf32>
    %154 = arith.addf %150, %153 : vector<16x1xf32>
    %155 = math.rsqrt %154 : vector<16x1xf32>
    %156 = vector.broadcast %155 : vector<16x1xf32> to vector<16x128xf32>
    %157 = arith.mulf %152, %156 : vector<16x128xf32>
    %c0_46 = arith.constant 0 : index
    %c0_47 = arith.constant 0 : index
    %158 = vector.load %arg7[%c0_46, %c0_47] : memref<1x128xf32, #tpu.memory_space<vmem>>, vector<1x128xf32>
    %159 = vector.broadcast %158 : vector<1x128xf32> to vector<16x128xf32>
    %160 = arith.mulf %157, %159 : vector<16x128xf32>
    %c0_48 = arith.constant 0 : index
    %c0_49 = arith.constant 0 : index
    %161 = vector.load %arg8[%c0_48, %c0_49] : memref<1x128xf32, #tpu.memory_space<vmem>>, vector<1x128xf32>
    %162 = vector.broadcast %161 : vector<1x128xf32> to vector<16x128xf32>
    %163 = arith.addf %160, %162 : vector<16x128xf32>
    %164 = arith.truncf %163 : vector<16x128xf32> to vector<16x128xbf16>
    %c0_50 = arith.constant 0 : index
    %c0_51 = arith.constant 0 : index
    %165 = vector.load %arg9[%c0_50, %c0_51] : memref<128x512xbf16, #tpu.memory_space<vmem>>, vector<128x512xbf16>
    %cst_52 = arith.constant dense<0.000000e+00> : vector<16x512xf32>
    %166 = tpu.matmul %164, %165, %cst_52 {dimension_numbers = #tpu.dot_dimension_numbers<[1], [0], [0], [1], [0, 0, 1, 1], [], []>} : vector<16x128xbf16>, vector<128x512xbf16>, vector<16x512xf32> -> vector<16x512xf32>
    %c0_53 = arith.constant 0 : index
    %c0_54 = arith.constant 0 : index
    %167 = vector.load %arg10[%c0_53, %c0_54] : memref<1x512xf32, #tpu.memory_space<vmem>>, vector<1x512xf32>
    %168 = vector.broadcast %167 : vector<1x512xf32> to vector<16x512xf32>
    %169 = arith.addf %166, %168 : vector<16x512xf32>
    %cst_55 = arith.constant 5.000000e-01 : f32
    %170 = vector.broadcast %cst_55 : f32 to vector<16x512xf32>
    %171 = arith.mulf %170, %169 : vector<16x512xf32>
    %cst_56 = arith.constant 4.471500e-02 : f32
    %172 = vector.broadcast %cst_56 : f32 to vector<16x512xf32>
    %173 = arith.mulf %172, %169 : vector<16x512xf32>
    %174 = arith.mulf %173, %169 : vector<16x512xf32>
    %175 = arith.mulf %174, %169 : vector<16x512xf32>
    %176 = arith.addf %169, %175 : vector<16x512xf32>
    %cst_57 = arith.constant 0.797884583 : f32
    %177 = vector.broadcast %cst_57 : f32 to vector<16x512xf32>
    %178 = arith.mulf %177, %176 : vector<16x512xf32>
    %179 = math.tanh %178 : vector<16x512xf32>
    %cst_58 = arith.constant 1.000000e+00 : f32
    %180 = vector.broadcast %cst_58 : f32 to vector<16x512xf32>
    %181 = arith.addf %180, %179 : vector<16x512xf32>
    %182 = arith.mulf %171, %181 : vector<16x512xf32>
    %183 = arith.truncf %182 : vector<16x512xf32> to vector<16x512xbf16>
    %c0_59 = arith.constant 0 : index
    %c0_60 = arith.constant 0 : index
    %184 = vector.load %arg11[%c0_59, %c0_60] : memref<512x128xbf16, #tpu.memory_space<vmem>>, vector<512x128xbf16>
    %cst_61 = arith.constant dense<0.000000e+00> : vector<16x128xf32>
    %185 = tpu.matmul %183, %184, %cst_61 {dimension_numbers = #tpu.dot_dimension_numbers<[1], [0], [0], [1], [0, 0, 1, 1], [], []>} : vector<16x512xbf16>, vector<512x128xbf16>, vector<16x128xf32> -> vector<16x128xf32>
    %c0_62 = arith.constant 0 : index
    %c0_63 = arith.constant 0 : index
    %186 = vector.load %arg12[%c0_62, %c0_63] : memref<1x128xf32, #tpu.memory_space<vmem>>, vector<1x128xf32>
    %187 = vector.broadcast %186 : vector<1x128xf32> to vector<16x128xf32>
    %188 = arith.addf %185, %187 : vector<16x128xf32>
    %189 = arith.addf %139, %188 : vector<16x128xf32>
    %c0_64 = arith.constant 0 : index
    %c0_65 = arith.constant 0 : index
    %190 = vector.load %arg13[%c0_64, %c0_65] : memref<16x128xf32, #tpu.memory_space<vmem>>, vector<16x128xf32>
    tpu.vector_store %arg13[%c0_64, %c0_65], %189 {strides = array<i32>} : memref<16x128xf32, #tpu.memory_space<vmem>>, vector<16x128xf32>,
    return
  }
  func.func @transform_0(%arg0: i32) -> (i32, i32) {
    %c0_i32 = arith.constant 0 : i32
    %c0_i32_0 = arith.constant 0 : i32
    return %arg0, %c0_i32 : i32, i32
  }
  func.func @transform_1(%arg0: i32) -> (i32, i32) {
    %c0_i32 = arith.constant 0 : i32
    %c0_i32_0 = arith.constant 0 : i32
    %c0_i32_1 = arith.constant 0 : i32
    return %c0_i32, %c0_i32_0 : i32, i32
  }
  func.func @transform_2(%arg0: i32) -> (i32, i32) {
    %c0_i32 = arith.constant 0 : i32
    %c0_i32_0 = arith.constant 0 : i32
    %c0_i32_1 = arith.constant 0 : i32
    return %c0_i32, %c0_i32_0 : i32, i32
  }
  func.func @transform_3(%arg0: i32) -> (i32, i32) {
    %c0_i32 = arith.constant 0 : i32
    %c0_i32_0 = arith.constant 0 : i32
    %c0_i32_1 = arith.constant 0 : i32
    return %c0_i32, %c0_i32_0 : i32, i32
  }
  func.func @transform_4(%arg0: i32) -> (i32, i32) {
    %c0_i32 = arith.constant 0 : i32
    %c0_i32_0 = arith.constant 0 : i32
    %c0_i32_1 = arith.constant 0 : i32
    return %c0_i32, %c0_i32_0 : i32, i32
  }
  func.func @transform_5(%arg0: i32) -> (i32, i32) {
    %c0_i32 = arith.constant 0 : i32
    %c0_i32_0 = arith.constant 0 : i32
    %c0_i32_1 = arith.constant 0 : i32
    return %c0_i32, %c0_i32_0 : i32, i32
  }
  func.func @transform_6(%arg0: i32) -> (i32, i32) {
    %c0_i32 = arith.constant 0 : i32
    %c0_i32_0 = arith.constant 0 : i32
    %c0_i32_1 = arith.constant 0 : i32
    return %c0_i32, %c0_i32_0 : i32, i32
  }
  func.func @transform_7(%arg0: i32) -> (i32, i32) {
    %c0_i32 = arith.constant 0 : i32
    %c0_i32_0 = arith.constant 0 : i32
    %c0_i32_1 = arith.constant 0 : i32
    return %c0_i32, %c0_i32_0 : i32, i32
  }
  func.func @transform_8(%arg0: i32) -> (i32, i32) {
    %c0_i32 = arith.constant 0 : i32
    %c0_i32_0 = arith.constant 0 : i32
    %c0_i32_1 = arith.constant 0 : i32
    return %c0_i32, %c0_i32_0 : i32, i32
  }
  func.func @transform_9(%arg0: i32) -> (i32, i32) {
    %c0_i32 = arith.constant 0 : i32
    %c0_i32_0 = arith.constant 0 : i32
    %c0_i32_1 = arith.constant 0 : i32
    return %c0_i32, %c0_i32_0 : i32, i32
  }
  func.func @transform_10(%arg0: i32) -> (i32, i32) {
    %c0_i32 = arith.constant 0 : i32
    %c0_i32_0 = arith.constant 0 : i32
    %c0_i32_1 = arith.constant 0 : i32
    return %c0_i32, %c0_i32_0 : i32, i32
  }
  func.func @transform_11(%arg0: i32) -> (i32, i32) {
    %c0_i32 = arith.constant 0 : i32
    %c0_i32_0 = arith.constant 0 : i32
    %c0_i32_1 = arith.constant 0 : i32
    return %c0_i32, %c0_i32_0 : i32, i32
  }
  func.func @transform_12(%arg0: i32) -> (i32, i32) {
    %c0_i32 = arith.constant 0 : i32
    %c0_i32_0 = arith.constant 0 : i32
    return %arg0, %c0_i32 : i32, i32
  }
}

</mosaic_0001>

<bundles_post_ra>
// kernel: tpu_custom_call.1
= control target key start
LH: loop header
LB: loop body
LE: loop exit
PB: predicated region body
PF: predicated region fallthrough
CT: control target
= control target key end

     0   :  { %17 = vsyncpa [#allocation3], 0  ;;  %s3831_s0 = inlined_call_operand.hbm [shape: f32[16,128], index: 0, kind: input, shape index: {}]   ;;  %s3832_s1 = inlined_call_operand.vmem [shape: f32[1,128], index: 1, kind: input, shape index: {}]   ;;  %s3833_s2 = inlined_call_operand.vmem [shape: f32[1,128], index: 2, kind: input, shape index: {}]   ;;  %s3834_s3 = inlined_call_operand.hbm [shape: bf16[128,384], index: 3, kind: input, shape index: {}]   ;;  %s3835_s4 = inlined_call_operand.hbm [shape: bf16[128,128], index: 4, kind: input, shape index: {}]   ;;  %s3836_s5 = inlined_call_operand.vmem [shape: f32[1,128], index: 5, kind: input, shape index: {}]   ;;  %s3837_s6 = inlined_call_operand.vmem [shape: f32[1,128], index: 6, kind: input, shape index: {}]   ;;  %s3838_s7 = inlined_call_operand.vmem [shape: f32[1,128], index: 7, kind: input, shape index: {}]   ;;  %s3839_s8 = inlined_call_operand.hbm [shape: bf16[128,512], index: 8, kind: input, shape index: {}]   ;;  %s3840_s9 = inlined_call_operand.vmem [shape: f32[1,512], index: 9, kind: input, shape index: {}]   ;;  %s3841_s10 = inlined_call_operand.hbm [shape: bf16[512,128], index: 10, kind: input, shape index: {}]   ;;  %s3842_s11 = inlined_call_operand.vmem [shape: f32[1,128], index: 11, kind: input, shape index: {}]   ;;  %s3843_s12 = inlined_call_operand.hbm [shape: f32[16,128], index: 12, kind: output, shape index: {}]  }
   0x1   :  { %18 = vsyncpa [#allocation6], 0 }
   0x2   :  { %19 = vsyncpa [#allocation9], 0 }
   0x3   :  { %20 = vsyncpa [#allocation4], 0  ;;  %s3360_s21 = smov [#allocation5]   ;;  %s3220_s25 = scalar_lea.hbm %s3834_s3, 3072 }
   0x4   :  { %s42_s22 = sshll.u32 %s3360_s21, 4  ;;  %p3221_p0 = scmp.ne.s32.totalorder %s3834_s3, %s3220_s25  ;;  %s43_s22 = int_to_ptr.vmem [resolvable:$true] %s42_s22 }
   0x5   :  { %p3224_p1 = scmp.lt.u32.totalorder %s3220_s25, %s3834_s3 }
   0x7   :  { %p3226_p2 = pnand %p3224_p1, %p3221_p0 }
   0x9   :  { %3229 = shalt.err (!%p3226_p2)
}
   0xa   :  { %s3230_s30 = scalar_lea.vmem %s43_s22, 3072  ;;  %p3235_p4 = scmp.lt.s32.totalorder %s43_s22, %s43_s22 }
   0xb   :  { %p3231_p3 = scmp.ne.s32.totalorder %s43_s22, %s3230_s30  ;;  %p3236_p5 = scmp.lt.s32.totalorder %s3230_s30, %s3230_s30 }
   0xd   :  { %p3237_p6 = por %p3236_p5, %p3235_p4 }
   0xf   :  { %p3238_p7 = pnand %p3237_p6, %p3231_p3 }
  0x11   :  { %3241 = shalt.err (!%p3238_p7)
}
  0x12   :  { %s3361_s13 = smov 192   ;;  %s3362_s14 = smov 12  }
  0x13   :  { %48 = dma.hbm_to_vmem [thread:$0]  %s3834_s3, 3072, %s43_s22, [#allocation6], %s3361_s13, %s3361_s13, %s3362_s14  }
  0x14   :  { %s3363_s17 = smov [#allocation8]   ;;  %s3242_s21 = scalar_lea.hbm %s3839_s8, 4096 }
  0x15   :  { %s72_s18 = sshll.u32 %s3363_s17, 4  ;;  %p3243_p8 = scmp.ne.s32.totalorder %s3839_s8, %s3242_s21  ;;  %s73_s18 = int_to_ptr.vmem [resolvable:$true] %s72_s18 }
  0x16   :  { %p3246_p9 = scmp.lt.u32.totalorder %s3242_s21, %s3839_s8 }
  0x18   :  { %p3248_p10 = pnand %p3246_p9, %p3243_p8 }
  0x1a   :  { %3251 = shalt.err (!%p3248_p10)
}
  0x1b   :  { %s3252_s27 = scalar_lea.vmem %s73_s18, 4096  ;;  %p3257_p12 = scmp.lt.s32.totalorder %s73_s18, %s73_s18 }
  0x1c   :  { %p3253_p11 = scmp.ne.s32.totalorder %s73_s18, %s3252_s27  ;;  %p3258_p13 = scmp.lt.s32.totalorder %s3252_s27, %s3252_s27 }
  0x1e   :  { %p3259_p0 = por %p3258_p13, %p3257_p12 }
  0x20   :  { %p3260_p1 = pnand %p3259_p0, %p3253_p11 }
  0x22   :  { %3263 = shalt.err (!%p3260_p1)
}
  0x23   :  { %s3364_s3 = smov 256   ;;  %s3365_s22 = smov 16  }
  0x24   :  { %78 = dma.hbm_to_vmem [thread:$0]  %s3839_s8, 4096, %s73_s18, [#allocation9], %s3364_s3, %s3364_s3, %s3365_s22  }
  0x25   :  { %s3366_s30 = smov [#allocation2]   ;;  %s3264_s16 = scalar_lea.hbm %s3831_s0, 256 }
  0x26   :  { %s26_s13 = sshll.u32 %s3366_s30, 4  ;;  %p3265_p2 = scmp.ne.s32.totalorder %s3831_s0, %s3264_s16  ;;  %s27_s13 = int_to_ptr.vmem [resolvable:$true] %s26_s13 }
  0x27   :  { %p3268_p3 = scmp.lt.u32.totalorder %s3264_s16, %s3831_s0 }
  0x29   :  { %p3270_p4 = pnand %p3268_p3, %p3265_p2 }
  0x2b   :  { %3273 = shalt.err (!%p3270_p4)
}
  0x2c   :  { %s3274_s23 = scalar_lea.vmem %s27_s13, 256  ;;  %p3279_p6 = scmp.lt.s32.totalorder %s27_s13, %s27_s13 }
  0x2d   :  { %p3275_p5 = scmp.ne.s32.totalorder %s27_s13, %s3274_s23  ;;  %p3280_p7 = scmp.lt.s32.totalorder %s3274_s23, %s3274_s23 }
  0x2f   :  { %p3281_p8 = por %p3280_p7, %p3279_p6 }
  0x31   :  { %p3282_p9 = pnand %p3281_p8, %p3275_p5 }
  0x33   :  { %3285 = shalt.err (!%p3282_p9)
}
  0x34   :  { %s3367_s8 = smov 128   ;;  %s3368_s18 = smov 8  }
  0x35   :  { %32 = dma.hbm_to_vmem [thread:$0]  %s3831_s0, 256, %s27_s13, [#allocation3], %s3367_s8, %s3367_s8, %s3368_s18  }
  0x36   :  { %s3369_s26 = smov [#allocation7]   ;;  %s3286_s28 = scalar_lea.hbm %s3835_s4, 1024 }
  0x37   :  { %s54_s27 = sshll.u32 %s3369_s26, 4  ;;  %p3287_p10 = scmp.ne.s32.totalorder %s3835_s4, %s3286_s28  ;;  %s55_s27 = int_to_ptr.vmem [resolvable:$true] %s54_s27 }
  0x38   :  { %p3290_p11 = scmp.lt.u32.totalorder %s3286_s28, %s3835_s4 }
  0x3a   :  { %p3292_p12 = pnand %p3290_p11, %p3287_p10 }
  0x3c   :  { %3295 = shalt.err (!%p3292_p12)
}
  0x3d   :  { %s3296_s16 = scalar_lea.vmem %s55_s27, 1024  ;;  %p3301_p0 = scmp.lt.s32.totalorder %s55_s27, %s55_s27 }
  0x3e   :  { %p3297_p13 = scmp.ne.s32.totalorder %s55_s27, %s3296_s16  ;;  %p3302_p1 = scmp.lt.s32.totalorder %s3296_s16, %s3296_s16 }
  0x40   :  { %p3303_p2 = por %p3302_p1, %p3301_p0 }
  0x42   :  { %p3304_p3 = pnand %p3303_p2, %p3297_p13 }
  0x44   :  { %3307 = shalt.err (!%p3304_p3)
}
  0x45   :  { %s3370_s0 = smov 64   ;;  %s3371_s13 = smov 4  }
  0x46   :  { %60 = dma.hbm_to_vmem [thread:$0]  %s3835_s4, 1024, %s55_s27, [#allocation6], %s3370_s0, %s3370_s0, %s3371_s13  }
  0x47   :  { %s3372_s20 = smov [#allocation10]   ;;  %s3308_s25 = scalar_lea.hbm %s3841_s10, 4096 }
  0x48   :  { %s86_s21 = sshll.u32 %s3372_s20, 4  ;;  %p3309_p4 = scmp.ne.s32.totalorder %s3841_s10, %s3308_s25  ;;  %s87_s21 = int_to_ptr.vmem [resolvable:$true] %s86_s21 }
  0x49   :  { %p3312_p5 = scmp.lt.u32.totalorder %s3308_s25, %s3841_s10 }
  0x4b   :  { %p3314_p6 = pnand %p3312_p5, %p3309_p4 }
  0x4d   :  { %3317 = shalt.err (!%p3314_p6)
}
  0x4e   :  { %s3318_s29 = scalar_lea.vmem %s87_s21, 4096  ;;  %p3323_p8 = scmp.lt.s32.totalorder %s87_s21, %s87_s21 }
  0x4f   :  { %p3319_p7 = scmp.ne.s32.totalorder %s87_s21, %s3318_s29  ;;  %p3324_p9 = scmp.lt.s32.totalorder %s3318_s29, %s3318_s29 }
  0x51   :  { %p3325_p10 = por %p3324_p9, %p3323_p8 }
  0x53   :  { %p3326_p11 = pnand %p3325_p10, %p3319_p7 }
  0x55   :  { %3329 = shalt.err (!%p3326_p11)
}
  0x56   :  { %92 = dma.hbm_to_vmem [thread:$0]  %s3841_s10, 4096, %s87_s21, [#allocation9], %s3370_s0, %s3370_s0, %s3371_s13  }
  0x57   :  { %3352 = dma.done.wait [#allocation3], 256  }
  0x58   :  { %3353 = vsyncadd [#allocation3], 4294967040 }
  0x59   :  { %3354 = dma.done.wait [#allocation6], 4096  }
  0x5a   :  { %3355 = vsyncadd [#allocation6], 4294963200 }
  0x5b   :  { %3356 = dma.done.wait [#allocation9], 8192  }
  0x5c   :  { %3357 = vsyncadd [#allocation9], 4294959104  ;;  %v111_v0 = vld [vmem:[#allocation2] sm:$0xff]  ;;  %v112_v1 = vld [vmem:[#allocation2 + $0x8] sm:$0xff]  ;;  %v3373_v4 = vmov 0.0   ;;  %v3374_v30 = vmov 0   ;;  %v399_v61 = vlaneseq }
  0x5d   :  { %113 = vadd.xlane.f32.xlu0 %v111_v0  ;;  %v3042_v2 = vld [vmem:[#allocation5 + $0x4] ss:$12 sps:$4 sm:$0xff]   ;;  %v3044_v3 = vld [vmem:[#allocation5] ss:$12 sps:$4 sm:$0xff]   ;;  %2888 = vmatprep.subr.bf16.mxu1 %v3373_v4  ;;  %v3045_v5 = vld [vmem:[#allocation5 + $0x8] ss:$12 sps:$4 sm:$0xff]  }
  0x5e   :  { %v3046_v6 = vld [vmem:[#allocation5 + $0x1c] ss:$12 sps:$4 sm:$0xff]   ;;  %315 = vmatprep.subr.bf16.mxu0 %v3042_v2  ;;  %2889 = vmatpush3.bf16.msra.mxu1 %v3045_v5  ;;  %v3048_v15 = vld [vmem:[#allocation5 + $0x18] ss:$12 sps:$4 sm:$0xff]   ;;  %v3049_v16 = vld [vmem:[#allocation5 + $0x20] ss:$12 sps:$4 sm:$0xff]  }
  0x5f   :  { %316 = vmatpush1.bf16.msra.mxu0 %v3044_v3  ;;  %2890 = vmatprep.subr.bf16.mxu1 %v3373_v4  ;;  %v3050_v17 = vld [vmem:[#allocation5 + $0x34] ss:$12 sps:$4 sm:$0xff]   ;;  %v3052_v18 = vld [vmem:[#allocation5 + $0x30] ss:$12 sps:$4 sm:$0xff]   ;;  %v3053_v19 = vld [vmem:[#allocation5 + $0x38] ss:$12 sps:$4 sm:$0xff]  }
  0x60   :  { %317 = vmatprep.subr.bf16.mxu0 %v3046_v6  ;;  %v3054_v20 = vld [vmem:[#allocation5 + $0x4c] ss:$12 sps:$4 sm:$0xff]   ;;  %v3056_v21 = vld [vmem:[#allocation5 + $0x48] ss:$12 sps:$4 sm:$0xff]   ;;  %v3057_v22 = vld [vmem:[#allocation5 + $0x50] ss:$12 sps:$4 sm:$0xff]   ;;  %347 = vmatprep.mubr.bf16.mxu0 %v3374_v30 }
  0x61   :  { %115 = vadd.xlane.f32.xlu0 %v112_v1  ;;  %v3058_v23 = vld [vmem:[#allocation5 + $0x64] ss:$12 sps:$4 sm:$0xff]   ;;  %v3060_v24 = vld [vmem:[#allocation5 + $0x60] ss:$12 sps:$4 sm:$0xff]   ;;  %v3061_v25 = vld [vmem:[#allocation5 + $0x68] ss:$12 sps:$4 sm:$0xff]  }
  0x62   :  { %2891 = vmatpush3.bf16.msra.mxu1 %v3049_v16  ;;  %v3062_v26 = vld [vmem:[#allocation5 + $0x7c] ss:$12 sps:$4 sm:$0xff]   ;;  %v3064_v27 = vld [vmem:[#allocation5 + $0x78] ss:$12 sps:$4 sm:$0xff]   ;;  %v3065_v28 = vld [vmem:[#allocation5 + $0x80] ss:$12 sps:$4 sm:$0xff]  }
  0x63   :  { %318 = vmatpush1.bf16.msra.mxu0 %v3048_v15  ;;  %2892 = vmatprep.subr.bf16.mxu1 %v3373_v4  ;;  %v3066_v29 = vld [vmem:[#allocation5 + $0x94] ss:$12 sps:$4 sm:$0xff]   ;;  %vm3375_vm0 = vmmov 0   ;;  %v3068_v31 = vld [vmem:[#allocation5 + $0x90] ss:$12 sps:$4 sm:$0xff]   ;;  %vm404_vm1 = vcmask 261120  }
  0x64   :  { %319 = vmatprep.subr.bf16.mxu0 %v3050_v17  ;;  %2904 = vmatprep.mubr.msk.bf16.mxu1 %vm3375_vm0, %v3373_v4  ;;  %v3069_v32 = vld [vmem:[#allocation5 + $0x98] ss:$12 sps:$4 sm:$0xff]   ;;  %v3072_v34 = vld [vmem:[#allocation5 + $0xa8] ss:$12 sps:$4 sm:$0xff]   ;;  %v3073_v35 = vld [vmem:[#allocation5 + $0xb0] ss:$12 sps:$4 sm:$0xff]  }
  0x65   :  { %v3070_v33 = vld [vmem:[#allocation5 + $0xac] ss:$12 sps:$4 sm:$0xff]   ;;  %v2668_v44 = vld [vmem:[%s3832_s1] ss:$0 sm:$0xff]  ;;  %v3572_v62 = vshrl.u32 %v399_v61, 7  ;;  %v402_v63 = vand.u32 127, %v399_v61 }
  0x66   :  { %2893 = vmatpush3.bf16.msra.mxu1 %v3053_v19  ;;  %v2669_v48 = vld [vmem:[%s3833_s2] ss:$0 sm:$0xff]  ;;  %vm563_vm3 = vcmask 64512   ;;  %s3376_s1 = smov 96   ;;  %s3377_s2 = smov 32   ;;  %vm1762_vm4 = vcmask 523264  }
  0x67   :  { %320 = vmatpush1.bf16.msra.mxu0 %v3052_v18  ;;  %2894 = vmatprep.subr.bf16.mxu1 %v3373_v4  ;;  %vm3575_vm2 = vcmp.le.s32.totalorder %v402_v63, %v3572_v62  ;;  %vm1765_vm5 = vcmask 785408   ;;  %s3378_s21 = smov [#allocation11]  }
  0x68   :  { %321 = vmatprep.subr.bf16.mxu0 %v3054_v20  ;;  %s2654_s23 = sshll.u32 %s3378_s21, 4  ;;  %s2655_s23 = int_to_ptr.vmem [resolvable:$true] %s2654_s23 }
  0x69   :  { %p3335_p13 = scmp.lt.s32.totalorder %s2655_s23, %s2655_s23 }
  0x6a   :  { %2895 = vmatpush3.bf16.msra.mxu1 %v3057_v22 }
  0x6b   :  { %322 = vmatpush1.bf16.msra.mxu0 %v3056_v21  ;;  %2896 = vmatprep.subr.bf16.mxu1 %v3373_v4 }
  0x6c   :  { %323 = vmatprep.subr.bf16.mxu0 %v3058_v23 }
  0x6e   :  { %2897 = vmatpush3.bf16.msra.mxu1 %v3061_v25 }
  0x6f   :  { %324 = vmatpush1.bf16.msra.mxu0 %v3060_v24  ;;  %2898 = vmatprep.subr.bf16.mxu1 %v3373_v4 }
  0x70   :  { %325 = vmatprep.subr.bf16.mxu0 %v3062_v26 }
  0x72   :  { %2899 = vmatpush3.bf16.msra.mxu1 %v3065_v28 }
  0x73   :  { %326 = vmatpush1.bf16.msra.mxu0 %v3064_v27  ;;  %2900 = vmatprep.subr.bf16.mxu1 %v3373_v4 }
  0x74   :  { %327 = vmatprep.subr.bf16.mxu0 %v3066_v29 }
  0x76   :  { %2901 = vmatpush3.bf16.msra.mxu1 %v3069_v32 }
  0x77   :  { %328 = vmatpush1.bf16.msra.mxu0 %v3068_v31  ;;  %2902 = vmatprep.subr.bf16.mxu1 %v3373_v4 }
  0x78   :  { %329 = vmatprep.subr.bf16.mxu0 %v3070_v33 }
  0x7a   :  { %2903 = vmatpush3.bf16.msra.mxu1 %v3073_v35 }
  0x7b   :  { %330 = vmatpush1.bf16.msra.mxu0 %v3072_v34  ;;  %2908 = vmatprep.subr.mxu1 %v3373_v4 }
  0x7c   :  { %2948 = vmatprep.subr.mxu0 %v3373_v4 }
  0xea   :  { %v114_v7 = vpop.xlane.xlu0 %113 }
  0xeb   :  { %v118_v8 = vmul.f32 0.0078125, %v114_v7 }
  0xed   :  { %v3513_v9 = vsub.f32 %v111_v0, %v118_v8 }
  0xee   :  { %v116_v10 = vpop.xlane.xlu0 %115 }
  0xef   :  { %v119_v11 = vmul.f32 0.0078125, %v116_v10  ;;  %v122_v12 = vmul.f32 %v3513_v9, %v3513_v9 }
  0xf1   :  { %v3517_v13 = vsub.f32 %v112_v1, %v119_v11  ;;  %124 = vadd.xlane.f32.xlu1 %v122_v12 }
  0xf3   :  { %v123_v14 = vmul.f32 %v3517_v13, %v3517_v13 }
  0xf5   :  { %126 = vadd.xlane.f32.xlu1 %v123_v14 }
 0x17e   :  { %v125_v36 = vpop.xlane.xlu1 %124 }
 0x17f   :  { %v128_v37 = vmul.f32 0.0078125, %v125_v36 }
 0x181   :  { %v130_v38 = vadd.f32 1e-05, %v128_v37 }
 0x182   :  { %v127_v39 = vpop.xlane.xlu1 %126 }
 0x183   :  { %3162 = vrsqrt.f32 %v130_v38  ;;  %v129_v40 = vmul.f32 0.0078125, %v127_v39 }
 0x185   :  { %v131_v41 = vadd.f32 1e-05, %v129_v40 }
 0x187   :  { %3164 = vrsqrt.f32 %v131_v41 }
 0x18d   :  { %v3163_v42 = vpop.eup %3162 }
 0x18e   :  { %v134_v43 = vmul.f32 %v3163_v42, %v3513_v9 }
 0x190   :  { %v143_v47 = vmul.f32 %v2668_v44, %v134_v43 }
 0x191   :  { %v3165_v45 = vpop.eup %3164 }
 0x192   :  { %v135_v46 = vmul.f32 %v3165_v45, %v3517_v13  ;;  %v152_v50 = vadd.f32 %v2669_v48, %v143_v47 }
 0x194   :  { %v144_v49 = vmul.f32 %v2668_v44, %v135_v46 }
 0x196   :  { %v153_v51 = vadd.f32 %v2669_v48, %v144_v49 }
 0x198   :  { %v154_v52 = vpack.c.bf16 %v153_v51, %v152_v50 }
 0x19a   :  { %348 = vmatmul.mubr.bf16.vlgmr.msra.gmra.mrb[0].mxu0 %v154_v52  ;;  %2905 = vmatmul.mubr.bf16.vlgmr.msra.gmra.mrb[0].mxu1 %v154_v52 }
 0x19b   :  { %2910 = vmatprep.mubr.msk.f32.mxu1 %vm3375_vm0, %v3373_v4  ;;  %2950 = vmatprep.mubr.msk.f32.mxu0 %vm3375_vm0, %v3373_v4 }
 0x26d   :  { %v3544_v53 = vpop.f32.mrb[0].mxu0  ;;  %v3546_v54 = vpop.f32.mrb[0].mxu1 }
 0x26e   :  { %v3548_v55 = vpop.f32.mrb[1].mxu0  ;;  %v2906_v56 = vpop.f32.mrb[1].mxu1 }
 0x26f   :  { %v3550_v57 = vpop.f32.mrb[2].mxu0  ;;  %v3552_v58 = vpop.f32.mrb[2].mxu1  ;;  %2909 = vmatpush3.xpose.msk.msra.mxu1 %vm404_vm1, %v3548_v55 }
 0x270   :  { %v3556_v59 = vpop.f32.mrb[3].mxu0  ;;  %v2907_v60 = vpop.f32.mrb[3].mxu1  ;;  %2913 = vmatprep.subr.mxu1 %v3373_v4 }
 0x272   :  { %2911 = vmatmul.mubr.msk.f32.vlgmr.msra.gmra.mrb[4].mxu1 %vm404_vm1, %v3544_v53 }
 0x273   :  { %2914 = vmatpush3.xpose.msk.msra.mxu1 %vm404_vm1, %v3556_v59  ;;  %2915 = vmatprep.mubr.msk.f32.mxu1 %vm3375_vm0, %v3373_v4 }
 0x274   :  { %2918 = vmatprep.subr.mxu1 %v3373_v4 }
 0x276   :  { %2916 = vmatmul.mubr.msk.f32.vlgmr.msra.gmra.mrb[6].mxu1 %vm404_vm1, %v3550_v57 }
 0x277   :  { %2919 = vmatpush3.msra.mxu1 %v3546_v54  ;;  %2920 = vmatprep.mubr.msk.f32.mxu1 %vm3375_vm0, %v3373_v4 }
 0x278   :  { %2923 = vmatprep.subr.mxu1 %v3373_v4 }
 0x345   :  { %v477_v0 = vpop.f32.mrb[4].mxu1 }
 0x346   :  { %v557_v2 = vmul.f32 0.17677669, %v477_v0  ;;  %v2912_v3 = vpop.f32.mrb[5].mxu1 }
 0x348   :  { %v561_v5 = vsel %vm3575_vm2, %v557_v2, -inf }
 0x349   :  { %v553_v6 = vpop.f32.mrb[6].mxu1  ;;  %v564_v7 = vsel %vm563_vm3, %v561_v5, -inf }
 0x34a   :  { %v558_v8 = vmul.f32 0.17677669, %v553_v6  ;;  %565 = vmax.xlane.f32.xlu0 %v564_v7  ;;  %v2917_v9 = vpop.f32.mrb[7].mxu1 }
 0x34c   :  { %v562_v10 = vsel %vm3575_vm2, %v558_v8, -inf }
 0x34d   :  { %v567_v11 = vsel %vm563_vm3, %v562_v10, -inf }
 0x34e   :  { %568 = vmax.xlane.f32.xlu1 %v567_v11 }
 0x35f   :  { %732 = vrot.lane.b32.xlu1 %v3544_v53, %s3376_s1 }
 0x3d7   :  { %v566_v12 = vpop.xlane.xlu0 %565 }
 0x3d8   :  { %v570_v13 = vsub.f32 %v561_v5, %v566_v12 }
 0x3da   :  { %v572_v14 = vmul.f32 1.442695, %v570_v13 }
 0x3db   :  { %v569_v15 = vpop.xlane.xlu1 %568 }
 0x3dc   :  { %3166 = vpow2.f32 %v572_v14  ;;  %v571_v16 = vsub.f32 %v562_v10, %v569_v15 }
 0x3de   :  { %v574_v17 = vmul.f32 1.442695, %v571_v16 }
 0x3df   :  { %v733_v22 = vpop.permute.xlu1 %732 }
 0x3e0   :  { %3168 = vpow2.f32 %v574_v17 }
 0x3e6   :  { %v3167_v18 = vpop.eup %3166 }
 0x3e7   :  { %v576_v19 = vsel %vm563_vm3, %v3167_v18, 0.0 }
 0x3e8   :  { %577 = vadd.xlane.f32.xlu0 %v576_v19 }
 0x3ea   :  { %v3169_v20 = vpop.eup %3168 }
 0x3eb   :  { %v579_v21 = vsel %vm563_vm3, %v3169_v20, 0.0 }
 0x3ec   :  { %580 = vadd.xlane.f32.xlu1 %v579_v21 }
 0x3fd   :  { %812 = vrot.lane.b32.xlu1 %v3556_v59, %s3376_s1 }
 0x3fe   :  { %734 = vrot.lane.b32.xlu0 %v3548_v55, %s3376_s1 }
 0x401   :  { %810 = vrot.lane.b32.xlu1 %v3550_v57, %s3376_s1 }
 0x475   :  { %v578_v23 = vpop.xlane.xlu0 %577 }
 0x476   :  { %3170 = vrcp.f32 %v578_v23 }
 0x479   :  { %v581_v24 = vpop.xlane.xlu1 %580  ;;  %v735_v29 = vpop.permute.xlu0 %734 }
 0x47a   :  { %3172 = vrcp.f32 %v581_v24 }
 0x47d   :  { %v813_v31 = vpop.permute.xlu1 %812 }
 0x480   :  { %v3171_v25 = vpop.eup %3170 }
 0x481   :  { %v584_v26 = vmul.f32 %v3171_v25, %v3167_v18  ;;  %v811_v32 = vpop.permute.xlu1 %810 }
 0x483   :  { %2921 = vmatmul.mubr.msk.f32.vlgmr.msra.gmra.mrb[8].mxu1 %vm563_vm3, %v584_v26 }
 0x484   :  { %v3173_v27 = vpop.eup %3172  ;;  %2924 = vmatpush3.msra.mxu1 %v3552_v58  ;;  %2925 = vmatprep.mubr.msk.f32.mxu1 %vm3375_vm0, %v3373_v4 }
 0x485   :  { %v585_v28 = vmul.f32 %v3173_v27, %v3169_v20  ;;  %2928 = vmatprep.subr.mxu1 %v3373_v4 }
 0x487   :  { %2926 = vmatmul.mubr.msk.f32.vlgmr.msra.gmra.mrb[10].mxu1 %vm563_vm3, %v585_v28 }
 0x488   :  { %2930 = vmatprep.mubr.msk.f32.mxu1 %vm3375_vm0, %v3373_v4 }
 0x48b   :  { %2929 = vmatpush3.xpose.msk.msra.mxu1 %vm404_vm1, %v735_v29 }
 0x48c   :  { %2933 = vmatprep.subr.mxu1 %v3373_v4 }
 0x48e   :  { %2931 = vmatmul.mubr.msk.f32.vlgmr.msra.gmra.mrb[12].mxu1 %vm404_vm1, %v733_v22 }
 0x48f   :  { %2934 = vmatpush3.xpose.msk.msra.mxu1 %vm404_vm1, %v813_v31  ;;  %2935 = vmatprep.mubr.msk.f32.mxu1 %vm3375_vm0, %v3373_v4 }
 0x490   :  { %2938 = vmatprep.subr.mxu1 %v3373_v4 }
 0x492   :  { %2936 = vmatmul.mubr.msk.f32.vlgmr.msra.gmra.mrb[14].mxu1 %vm404_vm1, %v811_v32 }
 0x493   :  { %2940 = vmatprep.mubr.msk.f32.mxu1 %vm3375_vm0, %v3373_v4 }
 0x556   :  { %v3613_v33 = vpop.f32.mrb[8].mxu1 }
 0x557   :  { %v2922_v34 = vpop.f32.mrb[9].mxu1 }
 0x55a   :  { %v3615_v35 = vpop.f32.mrb[10].mxu1 }
 0x55b   :  { %v2927_v36 = vpop.f32.mrb[11].mxu1 }
 0x561   :  { %v806_v37 = vpop.f32.mrb[12].mxu1 }
 0x562   :  { %v888_v38 = vmul.f32 0.17677669, %v806_v37  ;;  %v2932_v39 = vpop.f32.mrb[13].mxu1 }
 0x564   :  { %v890_v40 = vsel %vm3575_vm2, %v888_v38, -inf }
 0x565   :  { %v884_v41 = vpop.f32.mrb[14].mxu1  ;;  %v892_v42 = vsel %vm563_vm3, %v890_v40, -inf }
 0x566   :  { %v889_v43 = vmul.f32 0.17677669, %v884_v41  ;;  %893 = vmax.xlane.f32.xlu0 %v892_v42  ;;  %v2937_v44 = vpop.f32.mrb[15].mxu1 }
 0x568   :  { %v891_v45 = vsel %vm3575_vm2, %v889_v43, -inf }
 0x569   :  { %v895_v46 = vsel %vm563_vm3, %v891_v45, -inf }
 0x56a   :  { %896 = vmax.xlane.f32.xlu1 %v895_v46 }
 0x57b   :  { %992 = vrot.lane.b32.xlu1 %v3552_v58, %s3376_s1 }
 0x57f   :  { %1070 = vrot.lane.b32.xlu1 %v3548_v55, %s3370_s0 }
 0x583   :  { %1148 = vrot.lane.b32.xlu1 %v3556_v59, %s3370_s0 }
 0x587   :  { %1146 = vrot.lane.b32.xlu1 %v3550_v57, %s3370_s0 }
 0x5f3   :  { %v894_v47 = vpop.xlane.xlu0 %893 }
 0x5f4   :  { %v898_v48 = vsub.f32 %v890_v40, %v894_v47 }
 0x5f6   :  { %v900_v49 = vmul.f32 1.442695, %v898_v48 }
 0x5f7   :  { %v897_v50 = vpop.xlane.xlu1 %896 }
 0x5f8   :  { %3174 = vpow2.f32 %v900_v49  ;;  %v899_v61 = vsub.f32 %v891_v45, %v897_v50 }
 0x5fa   :  { %v902_v63 = vmul.f32 1.442695, %v899_v61 }
 0x5fb   :  { %v993_v51 = vpop.permute.xlu1 %992 }
 0x5fc   :  { %3176 = vpow2.f32 %v902_v63 }
 0x5ff   :  { %v1071_v52 = vpop.permute.xlu1 %1070 }
 0x600   :  { %2949 = vmatpush3.xpose.msk.msra.mxu0 %vm404_vm1, %v1071_v52 }
 0x601   :  { %2958 = vmatprep.subr.mxu0 %v3373_v4 }
 0x602   :  { %v3175_v56 = vpop.eup %3174 }
 0x603   :  { %v904_v60 = vsel %vm563_vm3, %v3175_v56, 0.0  ;;  %v1149_v11 = vpop.permute.xlu1 %1148 }
 0x604   :  { %905 = vadd.xlane.f32.xlu0 %v904_v60 }
 0x606   :  { %v3177_v0 = vpop.eup %3176 }
 0x607   :  { %v907_v2 = vsel %vm563_vm3, %v3177_v0, 0.0  ;;  %v1147_v13 = vpop.permute.xlu1 %1146 }
 0x61a   :  { %915 = vrot.lane.b32.xlu0 %v3546_v54, %s3376_s1 }
 0x639   :  { %908 = vadd.xlane.f32.xlu0 %v907_v2 }
 0x64f   :  { %1068 = vrot.lane.b32.xlu0 %v3544_v53, %s3370_s0 }
 0x691   :  { %v906_v3 = vpop.xlane.xlu0 %905 }
 0x692   :  { %3178 = vrcp.f32 %v906_v3 }
 0x695   :  { %v916_v5 = vpop.permute.xlu0 %915 }
 0x696   :  { %2939 = vmatpush3.msra.mxu1 %v916_v5 }
 0x697   :  { %2943 = vmatprep.subr.mxu1 %v3373_v4 }
 0x69c   :  { %v3179_v6 = vpop.eup %3178 }
 0x69d   :  { %v912_v7 = vmul.f32 %v3179_v6, %v3175_v56 }
 0x69f   :  { %2941 = vmatmul.mubr.msk.f32.vlgmr.msra.gmra.mrb[16].mxu1 %vm563_vm3, %v912_v7 }
 0x6a0   :  { %2944 = vmatpush3.msra.mxu1 %v993_v51  ;;  %2945 = vmatprep.mubr.msk.f32.mxu1 %vm3375_vm0, %v3373_v4 }
 0x6a1   :  { %2953 = vmatprep.subr.mxu1 %v3373_v4 }
 0x6c6   :  { %v909_v8 = vpop.xlane.xlu0 %908 }
 0x6c7   :  { %3180 = vrcp.f32 %v909_v8 }
 0x6ca   :  { %v1069_v9 = vpop.permute.xlu0 %1068 }
 0x6cb   :  { %2951 = vmatmul.mubr.msk.f32.vlgmr.msra.gmra.mrb[4].mxu0 %vm404_vm1, %v1069_v9 }
 0x6cc   :  { %2960 = vmatprep.mubr.msk.f32.mxu0 %vm3375_vm0, %v3373_v4 }
 0x6d1   :  { %v3181_v10 = vpop.eup %3180 }
 0x6d2   :  { %v913_v12 = vmul.f32 %v3181_v10, %v3177_v0 }
 0x6d4   :  { %2946 = vmatmul.mubr.msk.f32.vlgmr.msra.gmra.mrb[18].mxu1 %vm563_vm3, %v913_v12 }
 0x6d5   :  { %2954 = vmatpush3.xpose.msk.msra.mxu1 %vm404_vm1, %v1149_v11  ;;  %2955 = vmatprep.mubr.msk.f32.mxu1 %vm3375_vm0, %v3373_v4 }
 0x6d6   :  { %2963 = vmatprep.subr.mxu1 %v3373_v4 }
 0x6d8   :  { %2956 = vmatmul.mubr.msk.f32.vlgmr.msra.gmra.mrb[20].mxu1 %vm404_vm1, %v1147_v13 }
 0x6d9   :  { %2965 = vmatprep.mubr.msk.f32.mxu1 %vm3375_vm0, %v3373_v4 }
 0x772   :  { %v3655_v14 = vpop.f32.mrb[16].mxu1 }
 0x773   :  { %v2942_v15 = vpop.f32.mrb[17].mxu1 }
 0x79e   :  { %v1142_v16 = vpop.f32.mrb[4].mxu0 }
 0x79f   :  { %v1224_v17 = vmul.f32 0.17677669, %v1142_v16  ;;  %v2952_v18 = vpop.f32.mrb[5].mxu0 }
 0x7a1   :  { %v1226_v19 = vsel %vm3575_vm2, %v1224_v17, -inf }
 0x7a2   :  { %v1228_v20 = vsel %vm563_vm3, %v1226_v19, -inf }
 0x7a3   :  { %1229 = vmax.xlane.f32.xlu0 %v1228_v20 }
 0x7a7   :  { %v3660_v21 = vpop.f32.mrb[18].mxu1 }
 0x7a8   :  { %v3027_v22 = vpack.i.bf16 %v3660_v21, %v3655_v14  ;;  %v2947_v23 = vpop.f32.mrb[19].mxu1 }
 0x7ab   :  { %v1220_v24 = vpop.f32.mrb[20].mxu1 }
 0x7ac   :  { %v1225_v25 = vmul.f32 0.17677669, %v1220_v24  ;;  %v2957_v26 = vpop.f32.mrb[21].mxu1 }
 0x7ad   :  { %v3075_v26 = vld [vmem:[#allocation7 + $0x8] sm:$0xff]  }
 0x7ae   :  { %v1227_v27 = vsel %vm3575_vm2, %v1225_v25, -inf }
 0x7af   :  { %v1231_v28 = vsel %vm563_vm3, %v1227_v27, -inf }
 0x7b0   :  { %1232 = vmax.xlane.f32.xlu1 %v1231_v28  ;;  %v3077_v28 = vld [vmem:[#allocation7 + $0x18] sm:$0xff]  }
 0x7c1   :  { %1326 = vrot.lane.b32.xlu1 %v3552_v58, %s3370_s0 }
 0x7c5   :  { %1404 = vrot.lane.b32.xlu1 %v3548_v55, %s3377_s2 }
 0x7c9   :  { %1482 = vrot.lane.b32.xlu1 %v3556_v59, %s3377_s2 }
 0x7cd   :  { %1480 = vrot.lane.b32.xlu1 %v3550_v57, %s3377_s2 }
 0x830   :  { %v1230_v29 = vpop.xlane.xlu0 %1229 }
 0x831   :  { %v1234_v31 = vsub.f32 %v1226_v19, %v1230_v29  ;;  %v3078_v29 = vld [vmem:[#allocation7 + $0x20] sm:$0xff]  }
 0x833   :  { %v1236_v32 = vmul.f32 1.442695, %v1234_v31  ;;  %v3079_v31 = vld [vmem:[#allocation7 + $0x28] sm:$0xff]  }
 0x835   :  { %3182 = vpow2.f32 %v1236_v32  ;;  %v3080_v32 = vld [vmem:[#allocation7 + $0x30] sm:$0xff]  }
 0x83d   :  { %v1233_v34 = vpop.xlane.xlu1 %1232 }
 0x83e   :  { %v1235_v55 = vsub.f32 %v1227_v27, %v1233_v34  ;;  %v3076_v27 = vld [vmem:[#allocation7 + $0x10] sm:$0xff]   ;;  %v3081_v34 = vld [vmem:[#allocation7 + $0x38] sm:$0xff]  }
 0x83f   :  { %v3183_v36 = vpop.eup %3182 }
 0x840   :  { %v1240_v37 = vsel %vm563_vm3, %v3183_v36, 0.0  ;;  %v1238_v59 = vmul.f32 1.442695, %v1235_v55 }
 0x841   :  { %1241 = vadd.xlane.f32.xlu0 %v1240_v37  ;;  %v1327_v38 = vpop.permute.xlu1 %1326 }
 0x842   :  { %2964 = vmatpush3.msra.mxu1 %v1327_v38  ;;  %3184 = vpow2.f32 %v1238_v59 }
 0x843   :  { %2973 = vmatprep.subr.mxu1 %v3373_v4 }
 0x845   :  { %v1405_v44 = vpop.permute.xlu1 %1404 }
 0x849   :  { %v1483_v47 = vpop.permute.xlu1 %1482 }
 0x84c   :  { %v3185_v57 = vpop.eup %3184 }
 0x84d   :  { %v1243_v39 = vsel %vm563_vm3, %v3185_v57, 0.0  ;;  %v1481_v49 = vpop.permute.xlu1 %1480 }
 0x857   :  { %1250 = vrot.lane.b32.xlu0 %v3546_v54, %s3370_s0 }
 0x876   :  { %1244 = vadd.xlane.f32.xlu0 %v1243_v39 }
 0x88c   :  { %1402 = vrot.lane.b32.xlu0 %v3544_v53, %s3377_s2 }
 0x8ce   :  { %v1242_v40 = vpop.xlane.xlu0 %1241 }
 0x8cf   :  { %3186 = vrcp.f32 %v1242_v40 }
 0x8d2   :  { %v1251_v41 = vpop.permute.xlu0 %1250 }
 0x8d3   :  { %2959 = vmatpush3.msra.mxu0 %v1251_v41 }
 0x8d4   :  { %2968 = vmatprep.subr.mxu0 %v3373_v4 }
 0x8d9   :  { %v3187_v42 = vpop.eup %3186 }
 0x8da   :  { %v1248_v43 = vmul.f32 %v3187_v42, %v3183_v36 }
 0x8dc   :  { %2961 = vmatmul.mubr.msk.f32.vlgmr.msra.gmra.mrb[6].mxu0 %vm563_vm3, %v1248_v43 }
 0x8dd   :  { %2969 = vmatpush3.xpose.msk.msra.mxu0 %vm404_vm1, %v1405_v44  ;;  %2970 = vmatprep.mubr.msk.f32.mxu0 %vm3375_vm0, %v3373_v4 }
 0x8de   :  { %2978 = vmatprep.subr.mxu0 %v3373_v4 }
 0x903   :  { %v1245_v45 = vpop.xlane.xlu0 %1244 }
 0x904   :  { %3188 = vrcp.f32 %v1245_v45 }
 0x907   :  { %v1403_v53 = vpop.permute.xlu0 %1402 }
 0x908   :  { %2971 = vmatmul.mubr.msk.f32.vlgmr.msra.gmra.mrb[8].mxu0 %vm404_vm1, %v1403_v53 }
 0x909   :  { %2980 = vmatprep.mubr.msk.f32.mxu0 %vm3375_vm0, %v3373_v4 }
 0x90e   :  { %v3189_v46 = vpop.eup %3188 }
 0x90f   :  { %v1249_v48 = vmul.f32 %v3189_v46, %v3185_v57 }
 0x911   :  { %2966 = vmatmul.mubr.msk.f32.vlgmr.msra.gmra.mrb[22].mxu1 %vm563_vm3, %v1249_v48 }
 0x912   :  { %2974 = vmatpush3.xpose.msk.msra.mxu1 %vm404_vm1, %v1483_v47  ;;  %2975 = vmatprep.mubr.msk.f32.mxu1 %vm3375_vm0, %v3373_v4 }
 0x913   :  { %2983 = vmatprep.subr.mxu1 %v3373_v4 }
 0x915   :  { %2976 = vmatmul.mubr.msk.f32.vlgmr.msra.gmra.mrb[24].mxu1 %vm404_vm1, %v1481_v49 }
 0x916   :  { %2985 = vmatprep.mubr.msk.f32.mxu1 %vm3375_vm0, %v3373_v4 }
 0x9af   :  { %v1322_v50 = vpop.f32.mrb[6].mxu0 }
 0x9b0   :  { %v2962_v51 = vpop.f32.mrb[7].mxu0 }
 0x9db   :  { %v1476_v52 = vpop.f32.mrb[8].mxu0 }
 0x9dc   :  { %v1558_v56 = vmul.f32 0.17677669, %v1476_v52  ;;  %v2972_v60 = vpop.f32.mrb[9].mxu0  ;;  %v2718_v52 = vld [vmem:[%s3836_s5] ss:$0 sm:$0xff] }
 0x9de   :  { %v1560_v61 = vsel %vm3575_vm2, %v1558_v56, -inf }
 0x9df   :  { %v1562_v63 = vsel %vm563_vm3, %v1560_v61, -inf }
 0x9e0   :  { %1563 = vmax.xlane.f32.xlu0 %v1562_v63  ;;  %v3218_v63 = vld [vmem:[#allocation2] sm:$0xff] }
 0x9e4   :  { %v1398_v0 = vpop.f32.mrb[22].mxu1 }
 0x9e5   :  { %v3032_v2 = vpack.i.bf16 %v1398_v0, %v1322_v50  ;;  %v2967_v3 = vpop.f32.mrb[23].mxu1 }
 0x9e6   :  { %v3219_v3 = vld [vmem:[#allocation2 + $0x8] sm:$0xff] }
 0x9e8   :  { %v1554_v5 = vpop.f32.mrb[24].mxu1 }
 0x9e9   :  { %v1559_v6 = vmul.f32 0.17677669, %v1554_v5  ;;  %v2977_v7 = vpop.f32.mrb[25].mxu1 }
 0x9ea   :  { %v3085_v7 = vld [vmem:[#allocation8 + $0x8] ss:$16 sps:$4 sm:$0xff]  }
 0x9eb   :  { %v1561_v8 = vsel %vm3575_vm2, %v1559_v6, -inf  ;;  %v3084_v6 = vld [vmem:[#allocation8 + $0x4] ss:$16 sps:$4 sm:$0xff]  }
 0x9ec   :  { %v1565_v9 = vsel %vm563_vm3, %v1561_v8, -inf }
 0x9ed   :  { %1566 = vmax.xlane.f32.xlu1 %v1565_v9  ;;  %v3090_v9 = vld [vmem:[#allocation8 + $0x24] ss:$16 sps:$4 sm:$0xff]  }
 0x9fe   :  { %1660 = vrot.lane.b32.xlu1 %v3552_v58, %s3377_s2 }
 0xa02   :  { %3028 = vrot.lane.b32.xlu1 %v3027_v22, %s3377_s2 }
 0xa06   :  { %3033 = vrot.lane.b32.xlu1 %v3032_v2, %s3370_s0 }
 0xa6d   :  { %v1564_v10 = vpop.xlane.xlu0 %1563 }
 0xa6e   :  { %v1568_v11 = vsub.f32 %v1560_v61, %v1564_v10  ;;  %v3093_v10 = vld [vmem:[#allocation8 + $0x2c] ss:$16 sps:$4 sm:$0xff]  }
 0xa70   :  { %v1570_v12 = vmul.f32 1.442695, %v1568_v11  ;;  %v3088_v11 = vld [vmem:[#allocation8 + $0x20] ss:$16 sps:$4 sm:$0xff]  }
 0xa72   :  { %3190 = vpow2.f32 %v1570_v12  ;;  %v3091_v12 = vld [vmem:[#allocation8 + $0x28] ss:$16 sps:$4 sm:$0xff]  }
 0xa7a   :  { %v1567_v13 = vpop.xlane.xlu1 %1566 }
 0xa7b   :  { %v1569_v1 = vsub.f32 %v1561_v8, %v1567_v13  ;;  %v3087_v8 = vld [vmem:[#allocation8 + $0xc] ss:$16 sps:$4 sm:$0xff]  }
 0xa7c   :  { %v3191_v15 = vpop.eup %3190 }
 0xa7d   :  { %v1572_v16 = vmul.f32 1.442695, %v1569_v1  ;;  %v1574_v17 = vsel %vm563_vm3, %v3191_v15, 0.0 }
 0xa7e   :  { %1575 = vadd.xlane.f32.xlu0 %v1574_v17  ;;  %v1661_v18 = vpop.permute.xlu1 %1660 }
 0xa7f   :  { %3192 = vpow2.f32 %v1572_v16  ;;  %2984 = vmatpush3.msra.mxu1 %v1661_v18 }
 0xa80   :  { %2138 = vmatprep.subr.bf16.mxu1 %v3084_v6  ;;  %v3135_v6 = vld [vmem:[#allocation10 + $0xc8] sm:$0xff]  }
 0xa82   :  { %v3029_v57 = vpop.permute.xlu1 %3028 }
 0xa83   :  { %v3031_v40 = vunpack.i.h.bf16 %v3029_v57  ;;  %v3030_v41 = vunpack.i.l.bf16 %v3029_v57  ;;  %v3126_v57 = vld [vmem:[#allocation8 + $0xe4] ss:$16 sps:$4 sm:$0xff]  }
 0xa85   :  { %v1760_v45 = vsel %vm404_vm1, %v3613_v33, %v3030_v41  ;;  %v3127_v41 = vld [vmem:[#allocation8 + $0xe8] ss:$16 sps:$4 sm:$0xff]  }
 0xa86   :  { %v3034_v39 = vpop.permute.xlu1 %3033 }
 0xa87   :  { %v3036_v42 = vunpack.i.h.bf16 %v3034_v39  ;;  %v3035_v43 = vunpack.i.l.bf16 %v3034_v39  ;;  %v3129_v39 = vld [vmem:[#allocation8 + $0xec] ss:$16 sps:$4 sm:$0xff]  }
 0xa89   :  { %v3193_v58 = vpop.eup %3192  ;;  %v1763_v47 = vsel %vm1762_vm4, %v1760_v45, %v3035_v43 }
 0xa8a   :  { %v1577_v14 = vsel %vm563_vm3, %v3193_v58, 0.0 }
 0xa8b   :  { %1578 = vadd.xlane.f32.xlu0 %v1577_v14 }
 0xaa1   :  { %1584 = vrot.lane.b32.xlu0 %v3546_v54, %s3377_s2  ;;  %v3074_v54 = vld [vmem:[#allocation7] sm:$0xff]  }
 0xb0b   :  { %v1576_v19 = vpop.xlane.xlu0 %1575 }
 0xb0c   :  { %3194 = vrcp.f32 %v1576_v19  ;;  %v3096_v19 = vld [vmem:[#allocation8 + $0x44] ss:$16 sps:$4 sm:$0xff]  }
 0xb16   :  { %v3195_v21 = vpop.eup %3194 }
 0xb17   :  { %v1582_v22 = vmul.f32 %v3195_v21, %v3191_v15  ;;  %v3094_v21 = vld [vmem:[#allocation8 + $0x40] ss:$16 sps:$4 sm:$0xff]  }
 0xb18   :  { %v1579_v20 = vpop.xlane.xlu0 %1578 }
 0xb19   :  { %3196 = vrcp.f32 %v1579_v20  ;;  %v3099_v20 = vld [vmem:[#allocation8 + $0x4c] ss:$16 sps:$4 sm:$0xff]  }
 0xb1c   :  { %v1585_v23 = vpop.permute.xlu0 %1584 }
 0xb1d   :  { %2979 = vmatpush3.msra.mxu0 %v1585_v23  ;;  %v3102_v23 = vld [vmem:[#allocation8 + $0x64] ss:$16 sps:$4 sm:$0xff]  }
 0xb1e   :  { %2981 = vmatmul.mubr.msk.f32.vlgmr.msra.gmra.mrb[10].mxu0 %vm563_vm3, %v1582_v22  ;;  %2988 = vmatprep.subr.bf16.mxu0 %v3373_v4  ;;  %v3097_v22 = vld [vmem:[#allocation8 + $0x48] ss:$16 sps:$4 sm:$0xff]  }
 0xb1f   :  { %3004 = vmatprep.mubr.msk.bf16.mxu0 %vm3375_vm0, %v3373_v4  ;;  %2989 = vmatpush3.bf16.msra.mxu0 %v3074_v54  ;;  %v3103_v54 = vld [vmem:[#allocation8 + $0x68] ss:$16 sps:$4 sm:$0xff]  }
 0xb20   :  { %2990 = vmatprep.subr.bf16.mxu0 %v3373_v4 }
 0xb23   :  { %v3197_v24 = vpop.eup %3196  ;;  %2991 = vmatpush3.bf16.msra.mxu0 %v3075_v26  ;;  %v3108_v26 = vld [vmem:[#allocation8 + $0x84] ss:$16 sps:$4 sm:$0xff]  }
 0xb24   :  { %v1583_v25 = vmul.f32 %v3197_v24, %v3193_v58  ;;  %2992 = vmatprep.subr.bf16.mxu0 %v3373_v4  ;;  %v3105_v24 = vld [vmem:[#allocation8 + $0x6c] ss:$16 sps:$4 sm:$0xff]  }
 0xb26   :  { %2986 = vmatmul.mubr.msk.f32.vlgmr.msra.gmra.mrb[26].mxu1 %vm563_vm3, %v1583_v25  ;;  %v3100_v25 = vld [vmem:[#allocation8 + $0x60] ss:$16 sps:$4 sm:$0xff]  }
 0xb27   :  { %2170 = vmatprep.mubr.bf16.mxu1 %v3374_v30  ;;  %2993 = vmatpush3.bf16.msra.mxu0 %v3076_v27  ;;  %v3111_v27 = vld [vmem:[#allocation8 + $0x8c] ss:$16 sps:$4 sm:$0xff]  }
 0xb28   :  { %2994 = vmatprep.subr.bf16.mxu0 %v3373_v4 }
 0xb2b   :  { %2995 = vmatpush3.bf16.msra.mxu0 %v3077_v28  ;;  %v3106_v28 = vld [vmem:[#allocation8 + $0x80] ss:$16 sps:$4 sm:$0xff]  }
 0xb2c   :  { %2996 = vmatprep.subr.bf16.mxu0 %v3373_v4 }
 0xb2f   :  { %2997 = vmatpush3.bf16.msra.mxu0 %v3078_v29  ;;  %v3109_v29 = vld [vmem:[#allocation8 + $0x88] ss:$16 sps:$4 sm:$0xff]  }
 0xb30   :  { %2998 = vmatprep.subr.bf16.mxu0 %v3373_v4 }
 0xb33   :  { %2999 = vmatpush3.bf16.msra.mxu0 %v3079_v31  ;;  %v3114_v31 = vld [vmem:[#allocation8 + $0xa4] ss:$16 sps:$4 sm:$0xff]  }
 0xb34   :  { %3000 = vmatprep.subr.bf16.mxu0 %v3373_v4 }
 0xb37   :  { %3001 = vmatpush3.bf16.msra.mxu0 %v3080_v32  ;;  %v3117_v32 = vld [vmem:[#allocation8 + $0xac] ss:$16 sps:$4 sm:$0xff]  }
 0xb38   :  { %3002 = vmatprep.subr.bf16.mxu0 %v3373_v4  ;;  %v1761_v4 = vsel %vm404_vm1, %v3615_v35, %v3031_v40  ;;  %v3124_v40 = vld [vmem:[#allocation8 + $0xe0] ss:$16 sps:$4 sm:$0xff]  }
 0xb39   :  { %v1764_v48 = vsel %vm1762_vm4, %v1761_v4, %v3036_v42 }
 0xb3b   :  { %3003 = vmatpush3.bf16.msra.mxu0 %v3081_v34  ;;  %v3112_v34 = vld [vmem:[#allocation8 + $0xa0] ss:$16 sps:$4 sm:$0xff]  }
 0xb3c   :  { %2181 = vmatprep.subr.bf16.mxu0 %v3087_v8  ;;  %v3137_v8 = vld [vmem:[#allocation10 + $0x88] sm:$0xff]  }
 0xbf1   :  { %v1656_v36 = vpop.f32.mrb[10].mxu0 }
 0xbf2   :  { %v2982_v37 = vpop.f32.mrb[11].mxu0 }
 0xbf3   :  { %v3120_v37 = vld [vmem:[#allocation8 + $0xc4] ss:$16 sps:$4 sm:$0xff]  }
 0xbf9   :  { %v1732_v38 = vpop.f32.mrb[26].mxu1 }
 0xbfa   :  { %v3037_v55 = vpack.i.bf16 %v1732_v38, %v1656_v36  ;;  %v2987_v59 = vpop.f32.mrb[27].mxu1  ;;  %v3115_v36 = vld [vmem:[#allocation8 + $0xa8] ss:$16 sps:$4 sm:$0xff]   ;;  %v3123_v38 = vld [vmem:[#allocation8 + $0xcc] ss:$16 sps:$4 sm:$0xff]  }
 0xbfb   :  { %v3121_v59 = vld [vmem:[#allocation8 + $0xc8] ss:$16 sps:$4 sm:$0xff]  }
 0xbfc   :  { %3038 = vrot.lane.b32.xlu0 %v3037_v55, %s3376_s1  ;;  %v3118_v55 = vld [vmem:[#allocation8 + $0xc0] ss:$16 sps:$4 sm:$0xff]  }
 0xc6e   :  { %v3039_v44 = vpop.permute.xlu0 %3038 }
 0xc6f   :  { %v3041_v53 = vunpack.i.h.bf16 %v3039_v44  ;;  %v3040_v46 = vunpack.i.l.bf16 %v3039_v44 }
 0xc71   :  { %v1767_v49 = vsel %vm1765_vm5, %v1764_v48, %v3041_v53  ;;  %v1766_v50 = vsel %vm1765_vm5, %v1763_v47, %v3040_v46  ;;  %v2727_v48 = vld [vmem:[%s3837_s6] ss:$0 sm:$0xff] }
 0xc72   :  { %v1768_v51 = vpack.c.bf16 %v1767_v49, %v1766_v50 }
 0xc74   :  { %3005 = vmatmul.mubr.bf16.vlgmr.msra.gmra.mrb[12].mxu0 %v1768_v51 }
 0xc75   :  { %2213 = vmatprep.mubr.bf16.mxu0 %v3374_v30  ;;  %v3082_v30 = vld [vmem:[#allocation8] ss:$16 sps:$4 sm:$0xff]   ;;  %2182 = vmatpush1.bf16.msra.mxu0 %v3085_v7  ;;  %v3136_v7 = vld [vmem:[#allocation10 + $0x8] sm:$0xff]  }
 0xc76   :  { %2139 = vmatpush1.bf16.msra.mxu1 %v3082_v30  ;;  %2183 = vmatprep.subr.bf16.mxu0 %v3093_v10  ;;  %v3134_v30 = vld [vmem:[#allocation10 + $0x48] sm:$0xff]   ;;  %v3139_v10 = vld [vmem:[#allocation10 + $0xd0] sm:$0xff]  }
 0xc77   :  { %2140 = vmatprep.subr.bf16.mxu1 %v3090_v9  ;;  %v3138_v9 = vld [vmem:[#allocation10 + $0x50] sm:$0xff]  }
 0xc79   :  { %2184 = vmatpush1.bf16.msra.mxu0 %v3091_v12  ;;  %v3141_v12 = vld [vmem:[#allocation10 + $0x90] sm:$0xff]  }
 0xc7a   :  { %2141 = vmatpush1.bf16.msra.mxu1 %v3088_v11  ;;  %2185 = vmatprep.subr.bf16.mxu0 %v3099_v20  ;;  %v3140_v11 = vld [vmem:[#allocation10 + $0x10] sm:$0xff]   ;;  %v3151_v20 = vld [vmem:[#allocation10 + $0xe8] sm:$0xff]  }
 0xc7b   :  { %2142 = vmatprep.subr.bf16.mxu1 %v3096_v19  ;;  %v3150_v19 = vld [vmem:[#allocation10 + $0x68] sm:$0xff]  }
 0xc7d   :  { %2186 = vmatpush1.bf16.msra.mxu0 %v3097_v22  ;;  %v3153_v22 = vld [vmem:[#allocation10 + $0xa8] sm:$0xff]  }
 0xc7e   :  { %2143 = vmatpush1.bf16.msra.mxu1 %v3094_v21  ;;  %2187 = vmatprep.subr.bf16.mxu0 %v3105_v24  ;;  %v3152_v21 = vld [vmem:[#allocation10 + $0x28] sm:$0xff]   ;;  %v3155_v24 = vld [vmem:[#allocation10 + $0xf0] sm:$0xff]  }
 0xc7f   :  { %2144 = vmatprep.subr.bf16.mxu1 %v3102_v23  ;;  %v3154_v23 = vld [vmem:[#allocation10 + $0x70] sm:$0xff]  }
 0xc81   :  { %2188 = vmatpush1.bf16.msra.mxu0 %v3103_v54  ;;  %v3157_v54 = vld [vmem:[#allocation10 + $0xb0] sm:$0xff]  }
 0xc82   :  { %2145 = vmatpush1.bf16.msra.mxu1 %v3100_v25  ;;  %2189 = vmatprep.subr.bf16.mxu0 %v3111_v27  ;;  %v3156_v25 = vld [vmem:[#allocation10 + $0x30] sm:$0xff]   ;;  %v3159_v27 = vld [vmem:[#allocation10 + $0xf8] sm:$0xff]  }
 0xc83   :  { %2146 = vmatprep.subr.bf16.mxu1 %v3108_v26  ;;  %v3158_v26 = vld [vmem:[#allocation10 + $0x78] sm:$0xff]  }
 0xc85   :  { %2190 = vmatpush1.bf16.msra.mxu0 %v3109_v29  ;;  %v3161_v29 = vld [vmem:[#allocation10 + $0xb8] sm:$0xff]  }
 0xc86   :  { %2147 = vmatpush1.bf16.msra.mxu1 %v3106_v28  ;;  %2191 = vmatprep.subr.bf16.mxu0 %v3117_v32  ;;  %v3160_v28 = vld [vmem:[#allocation10 + $0x38] sm:$0xff]   ;;  %v1968_v32 = vsub.s32 2, %v3572_v62 }
 0xc87   :  { %2148 = vmatprep.subr.bf16.mxu1 %v3114_v31  ;;  %v1960_v31 = vsub.s32 0, %v3572_v62 }
 0xc89   :  { %2192 = vmatpush1.bf16.msra.mxu0 %v3115_v36  ;;  %v1964_v36 = vsub.s32 1, %v3572_v62 }
 0xc8a   :  { %2149 = vmatpush1.bf16.msra.mxu1 %v3112_v34  ;;  %2193 = vmatprep.subr.bf16.mxu0 %v3123_v38  ;;  %v1956_v34 = vld [vmem:[%s3840_s9] sm:$0xf] }
 0xc8b   :  { %2150 = vmatprep.subr.bf16.mxu1 %v3120_v37  ;;  %v1972_v37 = vsub.s32 3, %v3572_v62  ;;  %v1961_v38 = vrot.slane %v1956_v34, %v1960_v31 }
 0xc8d   :  { %2194 = vmatpush1.bf16.msra.mxu0 %v3121_v59  ;;  %v1965_v59 = vrot.slane %v1956_v34, %v1964_v36 }
 0xc8e   :  { %2151 = vmatpush1.bf16.msra.mxu1 %v3118_v55  ;;  %2195 = vmatprep.subr.bf16.mxu0 %v3129_v39  ;;  %v1969_v55 = vrot.slane %v1956_v34, %v1968_v32 }
 0xc8f   :  { %2152 = vmatprep.subr.bf16.mxu1 %v3126_v57  ;;  %v1973_v57 = vrot.slane %v1956_v34, %v1972_v37 }
 0xc91   :  { %2196 = vmatpush1.bf16.msra.mxu0 %v3127_v41 }
 0xc92   :  { %2153 = vmatpush1.bf16.msra.mxu1 %v3124_v40 }
 0xd47   :  { %v1874_v56 = vpop.f32.mrb[12].mxu0 }
 0xd48   :  { %v1875_v60 = vadd.f32 %v2718_v52, %v1874_v56  ;;  %v3006_v35 = vpop.f32.mrb[13].mxu0 }
 0xd49   :  { %v1877_v61 = vpop.f32.mrb[14].mxu0 }
 0xd4a   :  { %v3738_v33 = vadd.f32 %v3218_v63, %v1875_v60  ;;  %v1878_v0 = vadd.f32 %v2718_v52, %v1877_v61  ;;  %v3007_v2 = vpop.f32.mrb[15].mxu0  ;;  %v2728_v52 = vld [vmem:[%s3838_s7] ss:$0 sm:$0xff]  ;;  %v3130_v63 = vld [vmem:[#allocation10 + $0x40] sm:$0xff]  }
 0xd4b   :  { %v3132_v2 = vld [vmem:[#allocation10] sm:$0xff]   ;;  %2844 = vmatprep.subr.bf16.mxu1 %v3130_v63 }
 0xd4c   :  { %v3740_v5 = vadd.f32 %v3219_v3, %v1878_v0  ;;  %1883 = vadd.xlane.f32.xlu1 %v3738_v33  ;;  %v3131_v0 = vld [vmem:[#allocation10 + $0xc0] sm:$0xff]  }
 0xd4d   :  { %v3133_v3 = vld [vmem:[#allocation10 + $0x80] sm:$0xff]   ;;  %2866 = vmatprep.subr.bf16.mxu0 %v3131_v0 }
 0xd4e   :  { %1885 = vadd.xlane.f32.xlu0 %v3740_v5 }
 0xdd9   :  { %v1884_v13 = vpop.xlane.xlu1 %1883 }
 0xdda   :  { %v1887_v1 = vmul.f32 0.0078125, %v1884_v13  ;;  %v3142_v13 = vld [vmem:[#allocation10 + $0x58] sm:$0xff]  }
 0xddb   :  { %v1886_v15 = vpop.xlane.xlu0 %1885 }
 0xddc   :  { %v3745_v16 = vsub.f32 %v3738_v33, %v1887_v1  ;;  %v1888_v17 = vmul.f32 0.0078125, %v1886_v15  ;;  %v3143_v1 = vld [vmem:[#allocation10 + $0xd8] sm:$0xff]  }
 0xddd   :  { %v3144_v15 = vld [vmem:[#allocation10 + $0x18] sm:$0xff]  }
 0xdde   :  { %v3748_v18 = vsub.f32 %v3740_v5, %v1888_v17  ;;  %v1891_v58 = vmul.f32 %v3745_v16, %v3745_v16  ;;  %v3146_v17 = vld [vmem:[#allocation10 + $0x60] sm:$0xff]  }
 0xde0   :  { %1893 = vadd.xlane.f32.xlu0 %v1891_v58  ;;  %v1892_v14 = vmul.f32 %v3748_v18, %v3748_v18  ;;  %v3148_v58 = vld [vmem:[#allocation10 + $0x20] sm:$0xff]  }
 0xde4   :  { %1895 = vadd.xlane.f32.xlu0 %v1892_v14  ;;  %v3149_v14 = vld [vmem:[#allocation10 + $0xa0] sm:$0xff]  }
 0xe6d   :  { %v1894_v42 = vpop.xlane.xlu0 %1893 }
 0xe6e   :  { %v1897_v43 = vmul.f32 0.0078125, %v1894_v42 }
 0xe70   :  { %v1899_v44 = vadd.f32 1e-05, %v1897_v43 }
 0xe71   :  { %v1896_v4 = vpop.xlane.xlu0 %1895 }
 0xe72   :  { %3198 = vrsqrt.f32 %v1899_v44  ;;  %v1898_v45 = vmul.f32 0.0078125, %v1896_v4 }
 0xe74   :  { %v1900_v53 = vadd.f32 1e-05, %v1898_v45 }
 0xe76   :  { %3200 = vrsqrt.f32 %v1900_v53 }
 0xe7c   :  { %v3199_v46 = vpop.eup %3198 }
 0xe7d   :  { %v1903_v47 = vmul.f32 %v3199_v46, %v3745_v16  ;;  %v3145_v16 = vld [vmem:[#allocation10 + $0x98] sm:$0xff]  }
 0xe7f   :  { %v1912_v51 = vmul.f32 %v2727_v48, %v1903_v47 }
 0xe80   :  { %v3201_v49 = vpop.eup %3200 }
 0xe81   :  { %v1904_v50 = vmul.f32 %v3201_v49, %v3748_v18  ;;  %v1921_v60 = vadd.f32 %v2728_v52, %v1912_v51  ;;  %v3147_v18 = vld [vmem:[#allocation10 + $0xe0] sm:$0xff]  }
 0xe83   :  { %v1913_v56 = vmul.f32 %v2727_v48, %v1904_v50 }
 0xe85   :  { %v1922_v35 = vadd.f32 %v2728_v52, %v1913_v56 }
 0xe87   :  { %v1923_v61 = vpack.c.bf16 %v1922_v35, %v1921_v60 }
 0xe89   :  { %2171 = vmatmul.mubr.bf16.vlgmr.msra.gmra.mrb[28].mxu1 %v1923_v61  ;;  %2214 = vmatmul.mubr.bf16.vlgmr.msra.gmra.mrb[16].mxu0 %v1923_v61 }
 0xe8a   :  { %2845 = vmatpush3.bf16.msra.mxu1 %v3132_v2  ;;  %2867 = vmatpush3.bf16.msra.mxu0 %v3133_v3 }
 0xe8b   :  { %2846 = vmatprep.subr.bf16.mxu1 %v3134_v30  ;;  %2868 = vmatprep.subr.bf16.mxu0 %v3135_v6 }
 0xe8e   :  { %2847 = vmatpush3.bf16.msra.mxu1 %v3136_v7  ;;  %2869 = vmatpush3.bf16.msra.mxu0 %v3137_v8 }
 0xe8f   :  { %2848 = vmatprep.subr.bf16.mxu1 %v3138_v9  ;;  %2870 = vmatprep.subr.bf16.mxu0 %v3139_v10 }
 0xe92   :  { %2849 = vmatpush3.bf16.msra.mxu1 %v3140_v11  ;;  %2871 = vmatpush3.bf16.msra.mxu0 %v3141_v12 }
 0xe93   :  { %2850 = vmatprep.subr.bf16.mxu1 %v3142_v13  ;;  %2872 = vmatprep.subr.bf16.mxu0 %v3143_v1 }
 0xe96   :  { %2851 = vmatpush3.bf16.msra.mxu1 %v3144_v15  ;;  %2873 = vmatpush3.bf16.msra.mxu0 %v3145_v16 }
 0xe97   :  { %2852 = vmatprep.subr.bf16.mxu1 %v3146_v17  ;;  %2874 = vmatprep.subr.bf16.mxu0 %v3147_v18 }
 0xe9a   :  { %2853 = vmatpush3.bf16.msra.mxu1 %v3148_v58  ;;  %2875 = vmatpush3.bf16.msra.mxu0 %v3149_v14 }
 0xe9b   :  { %2854 = vmatprep.subr.bf16.mxu1 %v3150_v19  ;;  %2876 = vmatprep.subr.bf16.mxu0 %v3151_v20 }
 0xe9e   :  { %2855 = vmatpush3.bf16.msra.mxu1 %v3152_v21  ;;  %2877 = vmatpush3.bf16.msra.mxu0 %v3153_v22 }
 0xe9f   :  { %2856 = vmatprep.subr.bf16.mxu1 %v3154_v23  ;;  %2878 = vmatprep.subr.bf16.mxu0 %v3155_v24 }
 0xea2   :  { %2857 = vmatpush3.bf16.msra.mxu1 %v3156_v25  ;;  %2879 = vmatpush3.bf16.msra.mxu0 %v3157_v54 }
 0xea3   :  { %2858 = vmatprep.subr.bf16.mxu1 %v3158_v26  ;;  %2880 = vmatprep.subr.bf16.mxu0 %v3159_v27 }
 0xea6   :  { %2859 = vmatpush3.bf16.msra.mxu1 %v3160_v28  ;;  %2881 = vmatpush3.bf16.msra.mxu0 %v3161_v29 }
 0xf5c   :  { %v2172_v39 = vpop.f32.mrb[28].mxu1  ;;  %v2215_v40 = vpop.f32.mrb[16].mxu0 }
 0xf5d   :  { %v3769_v41 = vadd.f32 %v2172_v39, %v1961_v38  ;;  %v3771_v42 = vadd.f32 %v2215_v40, %v1969_v55  ;;  %v2174_v43 = vpop.f32.mrb[29].mxu1  ;;  %v2217_v44 = vpop.f32.mrb[17].mxu0 }
 0xf5e   :  { %v3773_v4 = vadd.f32 %v2174_v43, %v1965_v59  ;;  %v3775_v45 = vadd.f32 %v2217_v44, %v1973_v57  ;;  %v2176_v53 = vpop.f32.mrb[30].mxu1  ;;  %v2219_v46 = vpop.f32.mrb[18].mxu0 }
 0xf5f   :  { %v2232_v62 = vmul.f32 0.044715, %v3769_v41  ;;  %v2234_v47 = vmul.f32 0.044715, %v3771_v42  ;;  %v2177_v48 = vadd.f32 %v2176_v53, %v1961_v38  ;;  %v2220_v49 = vadd.f32 %v2219_v46, %v1969_v55  ;;  %v2178_v50 = vpop.f32.mrb[31].mxu1  ;;  %v2221_v51 = vpop.f32.mrb[19].mxu0 }
 0xf60   :  { %v2233_v52 = vmul.f32 0.044715, %v3773_v4  ;;  %v2235_v56 = vmul.f32 0.044715, %v3775_v45  ;;  %v3781_v60 = vadd.f32 %v2178_v50, %v1965_v59  ;;  %v3783_v35 = vadd.f32 %v2221_v51, %v1973_v57 }
 0xf61   :  { %v2240_v61 = vmul.f32 %v2232_v62, %v3769_v41  ;;  %v2242_v63 = vmul.f32 %v2234_v47, %v3771_v42  ;;  %v2236_v0 = vmul.f32 0.044715, %v2177_v48  ;;  %v2238_v2 = vmul.f32 0.044715, %v2220_v49 }
 0xf62   :  { %v2241_v3 = vmul.f32 %v2233_v52, %v3773_v4  ;;  %v2243_v30 = vmul.f32 %v2235_v56, %v3775_v45  ;;  %v2237_v6 = vmul.f32 0.044715, %v3781_v60  ;;  %v2239_v7 = vmul.f32 0.044715, %v3783_v35 }
 0xf63   :  { %v2248_v8 = vmul.f32 %v2240_v61, %v3769_v41  ;;  %v2250_v9 = vmul.f32 %v2242_v63, %v3771_v42  ;;  %v2244_v10 = vmul.f32 %v2236_v0, %v2177_v48  ;;  %v2246_v11 = vmul.f32 %v2238_v2, %v2220_v49 }
 0xf64   :  { %v2249_v12 = vmul.f32 %v2241_v3, %v3773_v4  ;;  %v2251_v13 = vmul.f32 %v2243_v30, %v3775_v45  ;;  %v2245_v1 = vmul.f32 %v2237_v6, %v3781_v60  ;;  %v2247_v15 = vmul.f32 %v2239_v7, %v3783_v35 }
 0xf65   :  { %v2256_v16 = vadd.f32 %v2248_v8, %v3769_v41  ;;  %v2258_v17 = vadd.f32 %v2250_v9, %v3771_v42  ;;  %v2252_v18 = vmul.f32 %v2244_v10, %v2177_v48  ;;  %v2254_v58 = vmul.f32 %v2246_v11, %v2220_v49 }
 0xf66   :  { %v2253_v14 = vmul.f32 %v2245_v1, %v3781_v60  ;;  %v2255_v19 = vmul.f32 %v2247_v15, %v3783_v35  ;;  %v2257_v24 = vadd.f32 %v2249_v12, %v3773_v4  ;;  %v2259_v27 = vadd.f32 %v2251_v13, %v3775_v45 }
 0xf67   :  { %v2264_v20 = vmul.f32 0.7978846, %v2256_v16  ;;  %v2266_v21 = vmul.f32 0.7978846, %v2258_v17  ;;  %v2260_v22 = vadd.f32 %v2252_v18, %v2177_v48  ;;  %v2262_v23 = vadd.f32 %v2254_v58, %v2220_v49 }
 0xf68   :  { %v2261_v25 = vadd.f32 %v2253_v14, %v3781_v60  ;;  %v2265_v28 = vmul.f32 0.7978846, %v2257_v24  ;;  %v2263_v31 = vadd.f32 %v2255_v19, %v3783_v35  ;;  %v2267_v32 = vmul.f32 0.7978846, %v2259_v27 }
 0xf69   :  { %3202 = vtanh.f32 %v2264_v20  ;;  %v2268_v54 = vmul.f32 0.7978846, %v2260_v22  ;;  %v2270_v26 = vmul.f32 0.7978846, %v2262_v23  ;;  %v2224_v39 = vmul.f32 0.5, %v3769_v41 }
 0xf6a   :  { %3204 = vtanh.f32 %v2266_v21  ;;  %v2269_v29 = vmul.f32 0.7978846, %v2261_v25  ;;  %v2271_v34 = vmul.f32 0.7978846, %v2263_v31  ;;  %v2228_v40 = vmul.f32 0.5, %v2177_v48 }
 0xf6b   :  { %3206 = vtanh.f32 %v2268_v54  ;;  %v2226_v53 = vmul.f32 0.5, %v3771_v42  ;;  %v2230_v46 = vmul.f32 0.5, %v2220_v49  ;;  %v2225_v50 = vmul.f32 0.5, %v3773_v4 }
 0xf6c   :  { %3208 = vtanh.f32 %v2270_v26  ;;  %v2229_v63 = vmul.f32 0.5, %v3781_v60  ;;  %v2227_v48 = vmul.f32 0.5, %v3775_v45  ;;  %v2231_v30 = vmul.f32 0.5, %v3783_v35  ;;  %v2761_v45 = vld [vmem:[%s3842_s11] ss:$0 sm:$0xff]  ;;  %s3330_s11 = scalar_lea.vmem %s2655_s23, 256 }
 0xf6d   :  { %3210 = vtanh.f32 %v2265_v28  ;;  %p3331_p12 = scmp.ne.s32.totalorder %s2655_s23, %s3330_s11  ;;  %p3336_p0 = scmp.lt.s32.totalorder %s3330_s11, %s3330_s11 }
 0xf6e   :  { %3212 = vtanh.f32 %v2269_v29 }
 0xf6f   :  { %3214 = vtanh.f32 %v2267_v32  ;;  %p3337_p1 = por %p3336_p0, %p3335_p13 }
 0xf70   :  { %3216 = vtanh.f32 %v2271_v34 }
 0xf71   :  { %p3338_p2 = pnand %p3337_p1, %p3331_p12 }
 0xf73   :  { %v3203_v36 = vpop.eup %3202 }
 0xf74   :  { %v3205_v37 = vpop.eup %3204  ;;  %v2280_v38 = vadd.f32 1.0, %v3203_v36 }
 0xf75   :  { %v3207_v55 = vpop.eup %3206  ;;  %v2282_v59 = vadd.f32 1.0, %v3205_v37 }
 0xf76   :  { %v3209_v57 = vpop.eup %3208  ;;  %v2284_v43 = vadd.f32 1.0, %v3207_v55  ;;  %v2288_v52 = vmul.f32 %v2280_v38, %v2224_v39 }
 0xf77   :  { %v3211_v44 = vpop.eup %3210  ;;  %v2286_v62 = vadd.f32 1.0, %v3209_v57  ;;  %v2290_v2 = vmul.f32 %v2282_v59, %v2226_v53 }
 0xf78   :  { %v3213_v47 = vpop.eup %3212  ;;  %v2281_v51 = vadd.f32 1.0, %v3211_v44  ;;  %v2292_v56 = vmul.f32 %v2284_v43, %v2228_v40 }
 0xf79   :  { %v3215_v61 = vpop.eup %3214  ;;  %v2285_v0 = vadd.f32 1.0, %v3213_v47  ;;  %v2294_v3 = vmul.f32 %v2286_v62, %v2230_v46 }
 0xf7a   :  { %v3217_v41 = vpop.eup %3216  ;;  %v2283_v42 = vadd.f32 1.0, %v3215_v61  ;;  %v2296_v49 = vpack.c.bf16 %v2292_v56, %v2288_v52  ;;  %v2289_v6 = vmul.f32 %v2281_v51, %v2225_v50 }
 0xf7b   :  { %v2293_v7 = vmul.f32 %v2285_v0, %v2229_v63  ;;  %v2287_v8 = vadd.f32 1.0, %v3217_v41  ;;  %v2298_v4 = vpack.c.bf16 %v2294_v3, %v2290_v2 }
 0xf7c   :  { %v2291_v10 = vmul.f32 %v2283_v42, %v2227_v48 }
 0xf7d   :  { %v2297_v9 = vpack.c.bf16 %v2293_v7, %v2289_v6  ;;  %v2295_v11 = vmul.f32 %v2287_v8, %v2231_v30 }
 0xf7f   :  { %2595 = vmatprep.mubr.bf16.mxu1 %v2297_v9  ;;  %v2299_v12 = vpack.c.bf16 %v2295_v11, %v2291_v10 }
 0xf80   :  { %2596 = vmatmul.mubr.bf16.vlgmr.msra.gmra.mrb[32].mxu1 %v2296_v49 }
 0xf81   :  { %2636 = vmatprep.mubr.bf16.mxu0 %v2299_v12 }
 0xf82   :  { %2637 = vmatmul.mubr.bf16.vlgmr.msra.gmra.mrb[20].mxu0 %v2298_v4 }
0x1053   :  { %v2860_v60 = vpop.f32.mrb[32].mxu1 }
0x1054   :  { %v2861_v35 = vpop.f32.mrb[33].mxu1 }
0x1055   :  { %v2882_v13 = vpop.f32.mrb[20].mxu0  ;;  %v2862_v1 = vadd.f32 %v2861_v35, %v2860_v60  ;;  %v2863_v15 = vpop.f32.mrb[34].mxu1 }
0x1056   :  { %v2883_v16 = vpop.f32.mrb[21].mxu0  ;;  %v2864_v17 = vpop.f32.mrb[35].mxu1 }
0x1057   :  { %v2598_v18 = vadd.f32 %v2862_v1, %v2761_v45  ;;  %v2884_v58 = vadd.f32 %v2883_v16, %v2882_v13  ;;  %v2885_v14 = vpop.f32.mrb[22].mxu0  ;;  %v2865_v19 = vadd.f32 %v2864_v17, %v2863_v15 }
0x1058   :  { %v2886_v20 = vpop.f32.mrb[23].mxu0 }
0x1059   :  { %v2639_v21 = vadd.f32 %v2884_v58, %v2598_v18  ;;  %v2601_v22 = vadd.f32 %v2865_v19, %v2761_v45  ;;  %v2887_v23 = vadd.f32 %v2886_v20, %v2885_v14 }
0x105b   :  { %v2645_v24 = vadd.f32 %v2639_v21, %v3738_v33  ;;  %v2642_v25 = vadd.f32 %v2887_v23, %v2601_v22 }
0x105d   :  { %2647 = vst [vmem:[#allocation11] sm:$0xff] %v2645_v24  ;;  %v2646_v54 = vadd.f32 %v2642_v25, %v3740_v5 }
0x105f   :  { %2648 = vst [vmem:[#allocation11 + $0x8] sm:$0xff] %v2646_v54 }
0x1060   :  { %3341 = shalt.err (!%p3338_p2)
}
0x1061   :  { %s3342_s26 = scalar_lea.hbm %s3843_s12, 256 }
0x1062   :  { %p3343_p3 = scmp.ne.s32.totalorder %s3843_s12, %s3342_s26  ;;  %p3346_p4 = scmp.lt.u32.totalorder %s3342_s26, %s3843_s12 }
0x1064   :  { %p3348_p5 = pnand %p3346_p4, %p3343_p3 }
0x1066   :  { %3351 = shalt.err (!%p3348_p5)
}
0x1067   :  { %2660 = dma.vmem_to_hbm [thread:$0]  %s2655_s23, 256, %s3843_s12, [#allocation4], %s3367_s8, %s3367_s8, %s3368_s18  }
0x1068   :  { %3358 = dma.done.wait [#allocation4], 256  }
0x1069   :  { %3359 = vsyncadd [#allocation4], 4294967040 }
0x106a   :  { %2664 = vsyncpa [#allocation3], 1 }
0x106b   :  { %2665 = vsyncpa [#allocation6], 1 }
0x106c   :  { %2666 = vsyncpa [#allocation9], 1 }
0x106d   :  { %2667 = vsyncpa [#allocation4], 1 }

// kernel: tpu_custom_call.1
= control target key start
LH: loop header
LB: loop body
LE: loop exit
PB: predicated region body
PF: predicated region fallthrough
CT: control target
= control target key end

     0   :  { %17 = vsyncpa [#allocation3], 0  ;;  %s3831_s0 = inlined_call_operand.hbm [shape: f32[16,128], index: 0, kind: input, shape index: {}]   ;;  %s3832_s1 = inlined_call_operand.vmem [shape: f32[1,128], index: 1, kind: input, shape index: {}]   ;;  %s3833_s2 = inlined_call_operand.vmem [shape: f32[1,128], index: 2, kind: input, shape index: {}]   ;;  %s3834_s3 = inlined_call_operand.hbm [shape: bf16[128,384], index: 3, kind: input, shape index: {}]   ;;  %s3835_s4 = inlined_call_operand.hbm [shape: bf16[128,128], index: 4, kind: input, shape index: {}]   ;;  %s3836_s5 = inlined_call_operand.vmem [shape: f32[1,128], index: 5, kind: input, shape index: {}]   ;;  %s3837_s6 = inlined_call_operand.vmem [shape: f32[1,128], index: 6, kind: input, shape index: {}]   ;;  %s3838_s7 = inlined_call_operand.vmem [shape: f32[1,128], index: 7, kind: input, shape index: {}]   ;;  %s3839_s8 = inlined_call_operand.hbm [shape: bf16[128,512], index: 8, kind: input, shape index: {}]   ;;  %s3840_s9 = inlined_call_operand.vmem [shape: f32[1,512], index: 9, kind: input, shape index: {}]   ;;  %s3841_s10 = inlined_call_operand.hbm [shape: bf16[512,128], index: 10, kind: input, shape index: {}]   ;;  %s3842_s11 = inlined_call_operand.vmem [shape: f32[1,128], index: 11, kind: input, shape index: {}]   ;;  %s3843_s12 = inlined_call_operand.hbm [shape: f32[16,128], index: 12, kind: output, shape index: {}]  }
   0x1   :  { %18 = vsyncpa [#allocation6], 0 }
   0x2   :  { %19 = vsyncpa [#allocation9], 0 }
   0x3   :  { %20 = vsyncpa [#allocation4], 0  ;;  %s3360_s21 = smov [#allocation5]   ;;  %s3220_s25 = scalar_lea.hbm %s3834_s3, 3072 }
   0x4   :  { %s42_s22 = sshll.u32 %s3360_s21, 4  ;;  %p3221_p0 = scmp.ne.s32.totalorder %s3834_s3, %s3220_s25  ;;  %s43_s22 = int_to_ptr.vmem [resolvable:$true] %s42_s22 }
   0x5   :  { %p3224_p1 = scmp.lt.u32.totalorder %s3220_s25, %s3834_s3 }
   0x7   :  { %p3226_p2 = pnand %p3224_p1, %p3221_p0 }
   0x9   :  { %3229 = shalt.err (!%p3226_p2)
}
   0xa   :  { %s3230_s30 = scalar_lea.vmem %s43_s22, 3072  ;;  %p3235_p4 = scmp.lt.s32.totalorder %s43_s22, %s43_s22 }
   0xb   :  { %p3231_p3 = scmp.ne.s32.totalorder %s43_s22, %s3230_s30  ;;  %p3236_p5 = scmp.lt.s32.totalorder %s3230_s30, %s3230_s30 }
   0xd   :  { %p3237_p6 = por %p3236_p5, %p3235_p4 }
   0xf   :  { %p3238_p7 = pnand %p3237_p6, %p3231_p3 }
  0x11   :  { %3241 = shalt.err (!%p3238_p7)
}
  0x12   :  { %s3361_s13 = smov 192   ;;  %s3362_s14 = smov 12  }
  0x13   :  { %48 = dma.hbm_to_vmem [thread:$0]  %s3834_s3, 3072, %s43_s22, [#allocation6], %s3361_s13, %s3361_s13, %s3362_s14  }
  0x14   :  { %s3363_s17 = smov [#allocation8]   ;;  %s3242_s21 = scalar_lea.hbm %s3839_s8, 4096 }
  0x15   :  { %s72_s18 = sshll.u32 %s3363_s17, 4  ;;  %p3243_p8 = scmp.ne.s32.totalorder %s3839_s8, %s3242_s21  ;;  %s73_s18 = int_to_ptr.vmem [resolvable:$true] %s72_s18 }
  0x16   :  { %p3246_p9 = scmp.lt.u32.totalorder %s3242_s21, %s3839_s8 }
  0x18   :  { %p3248_p10 = pnand %p3246_p9, %p3243_p8 }
  0x1a   :  { %3251 = shalt.err (!%p3248_p10)
}
  0x1b   :  { %s3252_s27 = scalar_lea.vmem %s73_s18, 4096  ;;  %p3257_p12 = scmp.lt.s32.totalorder %s73_s18, %s73_s18 }
  0x1c   :  { %p3253_p11 = scmp.ne.s32.totalorder %s73_s18, %s3252_s27  ;;  %p3258_p13 = scmp.lt.s32.totalorder %s3252_s27, %s3252_s27 }
  0x1e   :  { %p3259_p0 = por %p3258_p13, %p3257_p12 }
  0x20   :  { %p3260_p1 = pnand %p3259_p0, %p3253_p11 }
  0x22   :  { %3263 = shalt.err (!%p3260_p1)
}
  0x23   :  { %s3364_s3 = smov 256   ;;  %s3365_s22 = smov 16  }
  0x24   :  { %78 = dma.hbm_to_vmem [thread:$0]  %s3839_s8, 4096, %s73_s18, [#allocation9], %s3364_s3, %s3364_s3, %s3365_s22  }
  0x25   :  { %s3366_s30 = smov [#allocation2]   ;;  %s3264_s16 = scalar_lea.hbm %s3831_s0, 256 }
  0x26   :  { %s26_s13 = sshll.u32 %s3366_s30, 4  ;;  %p3265_p2 = scmp.ne.s32.totalorder %s3831_s0, %s3264_s16  ;;  %s27_s13 = int_to_ptr.vmem [resolvable:$true] %s26_s13 }
  0x27   :  { %p3268_p3 = scmp.lt.u32.totalorder %s3264_s16, %s3831_s0 }
  0x29   :  { %p3270_p4 = pnand %p3268_p3, %p3265_p2 }
  0x2b   :  { %3273 = shalt.err (!%p3270_p4)
}
  0x2c   :  { %s3274_s23 = scalar_lea.vmem %s27_s13, 256  ;;  %p3279_p6 = scmp.lt.s32.totalorder %s27_s13, %s27_s13 }
  0x2d   :  { %p3275_p5 = scmp.ne.s32.totalorder %s27_s13, %s3274_s23  ;;  %p3280_p7 = scmp.lt.s32.totalorder %s3274_s23, %s3274_s23 }
  0x2f   :  { %p3281_p8 = por %p3280_p7, %p3279_p6 }
  0x31   :  { %p3282_p9 = pnand %p3281_p8, %p3275_p5 }
  0x33   :  { %3285 = shalt.err (!%p3282_p9)
}
  0x34   :  { %s3367_s8 = smov 128   ;;  %s3368_s18 = smov 8  }
  0x35   :  { %32 = dma.hbm_to_vmem [thread:$0]  %s3831_s0, 256, %s27_s13, [#allocation3], %s3367_s8, %s3367_s8, %s3368_s18  }
  0x36   :  { %s3369_s26 = smov [#allocation7]   ;;  %s3286_s28 = scalar_lea.hbm %s3835_s4, 1024 }
  0x37   :  { %s54_s27 = sshll.u32 %s3369_s26, 4  ;;  %p3287_p10 = scmp.ne.s32.totalorder %s3835_s4, %s3286_s28  ;;  %s55_s27 = int_to_ptr.vmem [resolvable:$true] %s54_s27 }
  0x38   :  { %p3290_p11 = scmp.lt.u32.totalorder %s3286_s28, %s3835_s4 }
  0x3a   :  { %p3292_p12 = pnand %p3290_p11, %p3287_p10 }
  0x3c   :  { %3295 = shalt.err (!%p3292_p12)
}
  0x3d   :  { %s3296_s16 = scalar_lea.vmem %s55_s27, 1024  ;;  %p3301_p0 = scmp.lt.s32.totalorder %s55_s27, %s55_s27 }
  0x3e   :  { %p3297_p13 = scmp.ne.s32.totalorder %s55_s27, %s3296_s16  ;;  %p3302_p1 = scmp.lt.s32.totalorder %s3296_s16, %s3296_s16 }
  0x40   :  { %p3303_p2 = por %p3302_p1, %p3301_p0 }
  0x42   :  { %p3304_p3 = pnand %p3303_p2, %p3297_p13 }
  0x44   :  { %3307 = shalt.err (!%p3304_p3)
}
  0x45   :  { %s3370_s0 = smov 64   ;;  %s3371_s13 = smov 4  }
  0x46   :  { %60 = dma.hbm_to_vmem [thread:$0]  %s3835_s4, 1024, %s55_s27, [#allocation6], %s3370_s0, %s3370_s0, %s3371_s13  }
  0x47   :  { %s3372_s20 = smov [#allocation10]   ;;  %s3308_s25 = scalar_lea.hbm %s3841_s10, 4096 }
  0x48   :  { %s86_s21 = sshll.u32 %s3372_s20, 4  ;;  %p3309_p4 = scmp.ne.s32.totalorder %s3841_s10, %s3308_s25  ;;  %s87_s21 = int_to_ptr.vmem [resolvable:$true] %s86_s21 }
  0x49   :  { %p3312_p5 = scmp.lt.u32.totalorder %s3308_s25, %s3841_s10 }
  0x4b   :  { %p3314_p6 = pnand %p3312_p5, %p3309_p4 }
  0x4d   :  { %3317 = shalt.err (!%p3314_p6)
}
  0x4e   :  { %s3318_s29 = scalar_lea.vmem %s87_s21, 4096  ;;  %p3323_p8 = scmp.lt.s32.totalorder %s87_s21, %s87_s21 }
  0x4f   :  { %p3319_p7 = scmp.ne.s32.totalorder %s87_s21, %s3318_s29  ;;  %p3324_p9 = scmp.lt.s32.totalorder %s3318_s29, %s3318_s29 }
  0x51   :  { %p3325_p10 = por %p3324_p9, %p3323_p8 }
  0x53   :  { %p3326_p11 = pnand %p3325_p10, %p3319_p7 }
  0x55   :  { %3329 = shalt.err (!%p3326_p11)
}
  0x56   :  { %92 = dma.hbm_to_vmem [thread:$0]  %s3841_s10, 4096, %s87_s21, [#allocation9], %s3370_s0, %s3370_s0, %s3371_s13  }
  0x57   :  { %3352 = dma.done.wait [#allocation3], 256  }
  0x58   :  { %3353 = vsyncadd [#allocation3], 4294967040 }
  0x59   :  { %3354 = dma.done.wait [#allocation6], 4096  }
  0x5a   :  { %3355 = vsyncadd [#allocation6], 4294963200 }
  0x5b   :  { %3356 = dma.done.wait [#allocation9], 8192  }
  0x5c   :  { %3357 = vsyncadd [#allocation9], 4294959104  ;;  %v111_v0 = vld [vmem:[#allocation2] sm:$0xff]  ;;  %v112_v1 = vld [vmem:[#allocation2 + $0x8] sm:$0xff]  ;;  %v3373_v4 = vmov 0.0   ;;  %v3374_v30 = vmov 0   ;;  %v399_v61 = vlaneseq }
  0x5d   :  { %113 = vadd.xlane.f32.xlu0 %v111_v0  ;;  %v3042_v2 = vld [vmem:[#allocation5 + $0x4] ss:$12 sps:$4 sm:$0xff]   ;;  %v3044_v3 = vld [vmem:[#allocation5] ss:$12 sps:$4 sm:$0xff]   ;;  %2888 = vmatprep.subr.bf16.mxu1 %v3373_v4  ;;  %v3045_v5 = vld [vmem:[#allocation5 + $0x8] ss:$12 sps:$4 sm:$0xff]  }
  0x5e   :  { %v3046_v6 = vld [vmem:[#allocation5 + $0x1c] ss:$12 sps:$4 sm:$0xff]   ;;  %315 = vmatprep.subr.bf16.mxu0 %v3042_v2  ;;  %2889 = vmatpush3.bf16.msra.mxu1 %v3045_v5  ;;  %v3048_v15 = vld [vmem:[#allocation5 + $0x18] ss:$12 sps:$4 sm:$0xff]   ;;  %v3049_v16 = vld [vmem:[#allocation5 + $0x20] ss:$12 sps:$4 sm:$0xff]  }
  0x5f   :  { %316 = vmatpush1.bf16.msra.mxu0 %v3044_v3  ;;  %2890 = vmatprep.subr.bf16.mxu1 %v3373_v4  ;;  %v3050_v17 = vld [vmem:[#allocation5 + $0x34] ss:$12 sps:$4 sm:$0xff]   ;;  %v3052_v18 = vld [vmem:[#allocation5 + $0x30] ss:$12 sps:$4 sm:$0xff]   ;;  %v3053_v19 = vld [vmem:[#allocation5 + $0x38] ss:$12 sps:$4 sm:$0xff]  }
  0x60   :  { %317 = vmatprep.subr.bf16.mxu0 %v3046_v6  ;;  %v3054_v20 = vld [vmem:[#allocation5 + $0x4c] ss:$12 sps:$4 sm:$0xff]   ;;  %v3056_v21 = vld [vmem:[#allocation5 + $0x48] ss:$12 sps:$4 sm:$0xff]   ;;  %v3057_v22 = vld [vmem:[#allocation5 + $0x50] ss:$12 sps:$4 sm:$0xff]   ;;  %347 = vmatprep.mubr.bf16.mxu0 %v3374_v30 }
  0x61   :  { %115 = vadd.xlane.f32.xlu0 %v112_v1  ;;  %v3058_v23 = vld [vmem:[#allocation5 + $0x64] ss:$12 sps:$4 sm:$0xff]   ;;  %v3060_v24 = vld [vmem:[#allocation5 + $0x60] ss:$12 sps:$4 sm:$0xff]   ;;  %v3061_v25 = vld [vmem:[#allocation5 + $0x68] ss:$12 sps:$4 sm:$0xff]  }
  0x62   :  { %2891 = vmatpush3.bf16.msra.mxu1 %v3049_v16  ;;  %v3062_v26 = vld [vmem:[#allocation5 + $0x7c] ss:$12 sps:$4 sm:$0xff]   ;;  %v3064_v27 = vld [vmem:[#allocation5 + $0x78] ss:$12 sps:$4 sm:$0xff]   ;;  %v3065_v28 = vld [vmem:[#allocation5 + $0x80] ss:$12 sps:$4 sm:$0xff]  }
  0x63   :  { %318 = vmatpush1.bf16.msra.mxu0 %v3048_v15  ;;  %2892 = vmatprep.subr.bf16.mxu1 %v3373_v4  ;;  %v3066_v29 = vld [vmem:[#allocation5 + $0x94] ss:$12 sps:$4 sm:$0xff]   ;;  %vm3375_vm0 = vmmov 0   ;;  %v3068_v31 = vld [vmem:[#allocation5 + $0x90] ss:$12 sps:$4 sm:$0xff]   ;;  %vm404_vm1 = vcmask 261120  }
  0x64   :  { %319 = vmatprep.subr.bf16.mxu0 %v3050_v17  ;;  %2904 = vmatprep.mubr.msk.bf16.mxu1 %vm3375_vm0, %v3373_v4  ;;  %v3069_v32 = vld [vmem:[#allocation5 + $0x98] ss:$12 sps:$4 sm:$0xff]   ;;  %v3072_v34 = vld [vmem:[#allocation5 + $0xa8] ss:$12 sps:$4 sm:$0xff]   ;;  %v3073_v35 = vld [vmem:[#allocation5 + $0xb0] ss:$12 sps:$4 sm:$0xff]  }
  0x65   :  { %v3070_v33 = vld [vmem:[#allocation5 + $0xac] ss:$12 sps:$4 sm:$0xff]   ;;  %v2668_v44 = vld [vmem:[%s3832_s1] ss:$0 sm:$0xff]  ;;  %v3572_v62 = vshrl.u32 %v399_v61, 7  ;;  %v402_v63 = vand.u32 127, %v399_v61 }
  0x66   :  { %2893 = vmatpush3.bf16.msra.mxu1 %v3053_v19  ;;  %v2669_v48 = vld [vmem:[%s3833_s2] ss:$0 sm:$0xff]  ;;  %vm563_vm3 = vcmask 64512   ;;  %s3376_s1 = smov 96   ;;  %s3377_s2 = smov 32   ;;  %vm1762_vm4 = vcmask 523264  }
  0x67   :  { %320 = vmatpush1.bf16.msra.mxu0 %v3052_v18  ;;  %2894 = vmatprep.subr.bf16.mxu1 %v3373_v4  ;;  %vm3575_vm2 = vcmp.le.s32.totalorder %v402_v63, %v3572_v62  ;;  %vm1765_vm5 = vcmask 785408   ;;  %s3378_s21 = smov [#allocation11]  }
  0x68   :  { %321 = vmatprep.subr.bf16.mxu0 %v3054_v20  ;;  %s2654_s23 = sshll.u32 %s3378_s21, 4  ;;  %s2655_s23 = int_to_ptr.vmem [resolvable:$true] %s2654_s23 }
  0x69   :  { %p3335_p13 = scmp.lt.s32.totalorder %s2655_s23, %s2655_s23 }
  0x6a   :  { %2895 = vmatpush3.bf16.msra.mxu1 %v3057_v22 }
  0x6b   :  { %322 = vmatpush1.bf16.msra.mxu0 %v3056_v21  ;;  %2896 = vmatprep.subr.bf16.mxu1 %v3373_v4 }
  0x6c   :  { %323 = vmatprep.subr.bf16.mxu0 %v3058_v23 }
  0x6e   :  { %2897 = vmatpush3.bf16.msra.mxu1 %v3061_v25 }
  0x6f   :  { %324 = vmatpush1.bf16.msra.mxu0 %v3060_v24  ;;  %2898 = vmatprep.subr.bf16.mxu1 %v3373_v4 }
  0x70   :  { %325 = vmatprep.subr.bf16.mxu0 %v3062_v26 }
  0x72   :  { %2899 = vmatpush3.bf16.msra.mxu1 %v3065_v28 }
  0x73   :  { %326 = vmatpush1.bf16.msra.mxu0 %v3064_v27  ;;  %2900 = vmatprep.subr.bf16.mxu1 %v3373_v4 }
  0x74   :  { %327 = vmatprep.subr.bf16.mxu0 %v3066_v29 }
  0x76   :  { %2901 = vmatpush3.bf16.msra.mxu1 %v3069_v32 }
  0x77   :  { %328 = vmatpush1.bf16.msra.mxu0 %v3068_v31  ;;  %2902 = vmatprep.subr.bf16.mxu1 %v3373_v4 }
  0x78   :  { %329 = vmatprep.subr.bf16.mxu0 %v3070_v33 }
  0x7a   :  { %2903 = vmatpush3.bf16.msra.mxu1 %v3073_v35 }
  0x7b   :  { %330 = vmatpush1.bf16.msra.mxu0 %v3072_v34  ;;  %2908 = vmatprep.subr.mxu1 %v3373_v4 }
  0x7c   :  { %2948 = vmatprep.subr.mxu0 %v3373_v4 }
  0xea   :  { %v114_v7 = vpop.xlane.xlu0 %113 }
  0xeb   :  { %v118_v8 = vmul.f32 0.0078125, %v114_v7 }
  0xed   :  { %v3513_v9 = vsub.f32 %v111_v0, %v118_v8 }
  0xee   :  { %v116_v10 = vpop.xlane.xlu0 %115 }
  0xef   :  { %v119_v11 = vmul.f32 0.0078125, %v116_v10  ;;  %v122_v12 = vmul.f32 %v3513_v9, %v3513_v9 }
  0xf1   :  { %v3517_v13 = vsub.f32 %v112_v1, %v119_v11  ;;  %124 = vadd.xlane.f32.xlu1 %v122_v12 }
  0xf3   :  { %v123_v14 = vmul.f32 %v3517_v13, %v3517_v13 }
  0xf5   :  { %126 = vadd.xlane.f32.xlu1 %v123_v14 }
 0x17e   :  { %v125_v36 = vpop.xlane.xlu1 %124 }
 0x17f   :  { %v128_v37 = vmul.f32 0.0078125, %v125_v36 }
 0x181   :  { %v130_v38 = vadd.f32 1e-05, %v128_v37 }
 0x182   :  { %v127_v39 = vpop.xlane.xlu1 %126 }
 0x183   :  { %3162 = vrsqrt.f32 %v130_v38  ;;  %v129_v40 = vmul.f32 0.0078125, %v127_v39 }
 0x185   :  { %v131_v41 = vadd.f32 1e-05, %v129_v40 }
 0x187   :  { %3164 = vrsqrt.f32 %v131_v41 }
 0x18d   :  { %v3163_v42 = vpop.eup %3162 }
 0x18e   :  { %v134_v43 = vmul.f32 %v3163_v42, %v3513_v9 }
 0x190   :  { %v143_v47 = vmul.f32 %v2668_v44, %v134_v43 }
 0x191   :  { %v3165_v45 = vpop.eup %3164 }
 0x192   :  { %v135_v46 = vmul.f32 %v3165_v45, %v3517_v13  ;;  %v152_v50 = vadd.f32 %v2669_v48, %v143_v47 }
 0x194   :  { %v144_v49 = vmul.f32 %v2668_v44, %v135_v46 }
 0x196   :  { %v153_v51 = vadd.f32 %v2669_v48, %v144_v49 }
 0x198   :  { %v154_v52 = vpack.c.bf16 %v153_v51, %v152_v50 }
 0x19a   :  { %348 = vmatmul.mubr.bf16.vlgmr.msra.gmra.mrb[0].mxu0 %v154_v52  ;;  %2905 = vmatmul.mubr.bf16.vlgmr.msra.gmra.mrb[0].mxu1 %v154_v52 }
 0x19b   :  { %2910 = vmatprep.mubr.msk.f32.mxu1 %vm3375_vm0, %v3373_v4  ;;  %2950 = vmatprep.mubr.msk.f32.mxu0 %vm3375_vm0, %v3373_v4 }
 0x26d   :  { %v3544_v53 = vpop.f32.mrb[0].mxu0  ;;  %v3546_v54 = vpop.f32.mrb[0].mxu1 }
 0x26e   :  { %v3548_v55 = vpop.f32.mrb[1].mxu0  ;;  %v2906_v56 = vpop.f32.mrb[1].mxu1 }
 0x26f   :  { %v3550_v57 = vpop.f32.mrb[2].mxu0  ;;  %v3552_v58 = vpop.f32.mrb[2].mxu1  ;;  %2909 = vmatpush3.xpose.msk.msra.mxu1 %vm404_vm1, %v3548_v55 }
 0x270   :  { %v3556_v59 = vpop.f32.mrb[3].mxu0  ;;  %v2907_v60 = vpop.f32.mrb[3].mxu1  ;;  %2913 = vmatprep.subr.mxu1 %v3373_v4 }
 0x272   :  { %2911 = vmatmul.mubr.msk.f32.vlgmr.msra.gmra.mrb[4].mxu1 %vm404_vm1, %v3544_v53 }
 0x273   :  { %2914 = vmatpush3.xpose.msk.msra.mxu1 %vm404_vm1, %v3556_v59  ;;  %2915 = vmatprep.mubr.msk.f32.mxu1 %vm3375_vm0, %v3373_v4 }
 0x274   :  { %2918 = vmatprep.subr.mxu1 %v3373_v4 }
 0x276   :  { %2916 = vmatmul.mubr.msk.f32.vlgmr.msra.gmra.mrb[6].mxu1 %vm404_vm1, %v3550_v57 }
 0x277   :  { %2919 = vmatpush3.msra.mxu1 %v3546_v54  ;;  %2920 = vmatprep.mubr.msk.f32.mxu1 %vm3375_vm0, %v3373_v4 }
 0x278   :  { %2923 = vmatprep.subr.mxu1 %v3373_v4 }
 0x345   :  { %v477_v0 = vpop.f32.mrb[4].mxu1 }
 0x346   :  { %v557_v2 = vmul.f32 0.17677669, %v477_v0  ;;  %v2912_v3 = vpop.f32.mrb[5].mxu1 }
 0x348   :  { %v561_v5 = vsel %vm3575_vm2, %v557_v2, -inf }
 0x349   :  { %v553_v6 = vpop.f32.mrb[6].mxu1  ;;  %v564_v7 = vsel %vm563_vm3, %v561_v5, -inf }
 0x34a   :  { %v558_v8 = vmul.f32 0.17677669, %v553_v6  ;;  %565 = vmax.xlane.f32.xlu0 %v564_v7  ;;  %v2917_v9 = vpop.f32.mrb[7].mxu1 }
 0x34c   :  { %v562_v10 = vsel %vm3575_vm2, %v558_v8, -inf }
 0x34d   :  { %v567_v11 = vsel %vm563_vm3, %v562_v10, -inf }
 0x34e   :  { %568 = vmax.xlane.f32.xlu1 %v567_v11 }
 0x35f   :  { %732 = vrot.lane.b32.xlu1 %v3544_v53, %s3376_s1 }
 0x3d7   :  { %v566_v12 = vpop.xlane.xlu0 %565 }
 0x3d8   :  { %v570_v13 = vsub.f32 %v561_v5, %v566_v12 }
 0x3da   :  { %v572_v14 = vmul.f32 1.442695, %v570_v13 }
 0x3db   :  { %v569_v15 = vpop.xlane.xlu1 %568 }
 0x3dc   :  { %3166 = vpow2.f32 %v572_v14  ;;  %v571_v16 = vsub.f32 %v562_v10, %v569_v15 }
 0x3de   :  { %v574_v17 = vmul.f32 1.442695, %v571_v16 }
 0x3df   :  { %v733_v22 = vpop.permute.xlu1 %732 }
 0x3e0   :  { %3168 = vpow2.f32 %v574_v17 }
 0x3e6   :  { %v3167_v18 = vpop.eup %3166 }
 0x3e7   :  { %v576_v19 = vsel %vm563_vm3, %v3167_v18, 0.0 }
 0x3e8   :  { %577 = vadd.xlane.f32.xlu0 %v576_v19 }
 0x3ea   :  { %v3169_v20 = vpop.eup %3168 }
 0x3eb   :  { %v579_v21 = vsel %vm563_vm3, %v3169_v20, 0.0 }
 0x3ec   :  { %580 = vadd.xlane.f32.xlu1 %v579_v21 }
 0x3fd   :  { %812 = vrot.lane.b32.xlu1 %v3556_v59, %s3376_s1 }
 0x3fe   :  { %734 = vrot.lane.b32.xlu0 %v3548_v55, %s3376_s1 }
 0x401   :  { %810 = vrot.lane.b32.xlu1 %v3550_v57, %s3376_s1 }
 0x475   :  { %v578_v23 = vpop.xlane.xlu0 %577 }
 0x476   :  { %3170 = vrcp.f32 %v578_v23 }
 0x479   :  { %v581_v24 = vpop.xlane.xlu1 %580  ;;  %v735_v29 = vpop.permute.xlu0 %734 }
 0x47a   :  { %3172 = vrcp.f32 %v581_v24 }
 0x47d   :  { %v813_v31 = vpop.permute.xlu1 %812 }
 0x480   :  { %v3171_v25 = vpop.eup %3170 }
 0x481   :  { %v584_v26 = vmul.f32 %v3171_v25, %v3167_v18  ;;  %v811_v32 = vpop.permute.xlu1 %810 }
 0x483   :  { %2921 = vmatmul.mubr.msk.f32.vlgmr.msra.gmra.mrb[8].mxu1 %vm563_vm3, %v584_v26 }
 0x484   :  { %v3173_v27 = vpop.eup %3172  ;;  %2924 = vmatpush3.msra.mxu1 %v3552_v58  ;;  %2925 = vmatprep.mubr.msk.f32.mxu1 %vm3375_vm0, %v3373_v4 }
 0x485   :  { %v585_v28 = vmul.f32 %v3173_v27, %v3169_v20  ;;  %2928 = vmatprep.subr.mxu1 %v3373_v4 }
 0x487   :  { %2926 = vmatmul.mubr.msk.f32.vlgmr.msra.gmra.mrb[10].mxu1 %vm563_vm3, %v585_v28 }
 0x488   :  { %2930 = vmatprep.mubr.msk.f32.mxu1 %vm3375_vm0, %v3373_v4 }
 0x48b   :  { %2929 = vmatpush3.xpose.msk.msra.mxu1 %vm404_vm1, %v735_v29 }
 0x48c   :  { %2933 = vmatprep.subr.mxu1 %v3373_v4 }
 0x48e   :  { %2931 = vmatmul.mubr.msk.f32.vlgmr.msra.gmra.mrb[12].mxu1 %vm404_vm1, %v733_v22 }
 0x48f   :  { %2934 = vmatpush3.xpose.msk.msra.mxu1 %vm404_vm1, %v813_v31  ;;  %2935 = vmatprep.mubr.msk.f32.mxu1 %vm3375_vm0, %v3373_v4 }
 0x490   :  { %2938 = vmatprep.subr.mxu1 %v3373_v4 }
 0x492   :  { %2936 = vmatmul.mubr.msk.f32.vlgmr.msra.gmra.mrb[14].mxu1 %vm404_vm1, %v811_v32 }
 0x493   :  { %2940 = vmatprep.mubr.msk.f32.mxu1 %vm3375_vm0, %v3373_v4 }
 0x556   :  { %v3613_v33 = vpop.f32.mrb[8].mxu1 }
 0x557   :  { %v2922_v34 = vpop.f32.mrb[9].mxu1 }
 0x55a   :  { %v3615_v35 = vpop.f32.mrb[10].mxu1 }
 0x55b   :  { %v2927_v36 = vpop.f32.mrb[11].mxu1 }
 0x561   :  { %v806_v37 = vpop.f32.mrb[12].mxu1 }
 0x562   :  { %v888_v38 = vmul.f32 0.17677669, %v806_v37  ;;  %v2932_v39 = vpop.f32.mrb[13].mxu1 }
 0x564   :  { %v890_v40 = vsel %vm3575_vm2, %v888_v38, -inf }
 0x565   :  { %v884_v41 = vpop.f32.mrb[14].mxu1  ;;  %v892_v42 = vsel %vm563_vm3, %v890_v40, -inf }
 0x566   :  { %v889_v43 = vmul.f32 0.17677669, %v884_v41  ;;  %893 = vmax.xlane.f32.xlu0 %v892_v42  ;;  %v2937_v44 = vpop.f32.mrb[15].mxu1 }
 0x568   :  { %v891_v45 = vsel %vm3575_vm2, %v889_v43, -inf }
 0x569   :  { %v895_v46 = vsel %vm563_vm3, %v891_v45, -inf }
 0x56a   :  { %896 = vmax.xlane.f32.xlu1 %v895_v46 }
 0x57b   :  { %992 = vrot.lane.b32.xlu1 %v3552_v58, %s3376_s1 }
 0x57f   :  { %1070 = vrot.lane.b32.xlu1 %v3548_v55, %s3370_s0 }
 0x583   :  { %1148 = vrot.lane.b32.xlu1 %v3556_v59, %s3370_s0 }
 0x587   :  { %1146 = vrot.lane.b32.xlu1 %v3550_v57, %s3370_s0 }
 0x5f3   :  { %v894_v47 = vpop.xlane.xlu0 %893 }
 0x5f4   :  { %v898_v48 = vsub.f32 %v890_v40, %v894_v47 }
 0x5f6   :  { %v900_v49 = vmul.f32 1.442695, %v898_v48 }
 0x5f7   :  { %v897_v50 = vpop.xlane.xlu1 %896 }
 0x5f8   :  { %3174 = vpow2.f32 %v900_v49  ;;  %v899_v61 = vsub.f32 %v891_v45, %v897_v50 }
 0x5fa   :  { %v902_v63 = vmul.f32 1.442695, %v899_v61 }
 0x5fb   :  { %v993_v51 = vpop.permute.xlu1 %992 }
 0x5fc   :  { %3176 = vpow2.f32 %v902_v63 }
 0x5ff   :  { %v1071_v52 = vpop.permute.xlu1 %1070 }
 0x600   :  { %2949 = vmatpush3.xpose.msk.msra.mxu0 %vm404_vm1, %v1071_v52 }
 0x601   :  { %2958 = vmatprep.subr.mxu0 %v3373_v4 }
 0x602   :  { %v3175_v56 = vpop.eup %3174 }
 0x603   :  { %v904_v60 = vsel %vm563_vm3, %v3175_v56, 0.0  ;;  %v1149_v11 = vpop.permute.xlu1 %1148 }
 0x604   :  { %905 = vadd.xlane.f32.xlu0 %v904_v60 }
 0x606   :  { %v3177_v0 = vpop.eup %3176 }
 0x607   :  { %v907_v2 = vsel %vm563_vm3, %v3177_v0, 0.0  ;;  %v1147_v13 = vpop.permute.xlu1 %1146 }
 0x61a   :  { %915 = vrot.lane.b32.xlu0 %v3546_v54, %s3376_s1 }
 0x639   :  { %908 = vadd.xlane.f32.xlu0 %v907_v2 }
 0x64f   :  { %1068 = vrot.lane.b32.xlu0 %v3544_v53, %s3370_s0 }
 0x691   :  { %v906_v3 = vpop.xlane.xlu0 %905 }
 0x692   :  { %3178 = vrcp.f32 %v906_v3 }
 0x695   :  { %v916_v5 = vpop.permute.xlu0 %915 }
 0x696   :  { %2939 = vmatpush3.msra.mxu1 %v916_v5 }
 0x697   :  { %2943 = vmatprep.subr.mxu1 %v3373_v4 }
 0x69c   :  { %v3179_v6 = vpop.eup %3178 }
 0x69d   :  { %v912_v7 = vmul.f32 %v3179_v6, %v3175_v56 }
 0x69f   :  { %2941 = vmatmul.mubr.msk.f32.vlgmr.msra.gmra.mrb[16].mxu1 %vm563_vm3, %v912_v7 }
 0x6a0   :  { %2944 = vmatpush3.msra.mxu1 %v993_v51  ;;  %2945 = vmatprep.mubr.msk.f32.mxu1 %vm3375_vm0, %v3373_v4 }
 0x6a1   :  { %2953 = vmatprep.subr.mxu1 %v3373_v4 }
 0x6c6   :  { %v909_v8 = vpop.xlane.xlu0 %908 }
 0x6c7   :  { %3180 = vrcp.f32 %v909_v8 }
 0x6ca   :  { %v1069_v9 = vpop.permute.xlu0 %1068 }
 0x6cb   :  { %2951 = vmatmul.mubr.msk.f32.vlgmr.msra.gmra.mrb[4].mxu0 %vm404_vm1, %v1069_v9 }
 0x6cc   :  { %2960 = vmatprep.mubr.msk.f32.mxu0 %vm3375_vm0, %v3373_v4 }
 0x6d1   :  { %v3181_v10 = vpop.eup %3180 }
 0x6d2   :  { %v913_v12 = vmul.f32 %v3181_v10, %v3177_v0 }
 0x6d4   :  { %2946 = vmatmul.mubr.msk.f32.vlgmr.msra.gmra.mrb[18].mxu1 %vm563_vm3, %v913_v12 }
 0x6d5   :  { %2954 = vmatpush3.xpose.msk.msra.mxu1 %vm404_vm1, %v1149_v11  ;;  %2955 = vmatprep.mubr.msk.f32.mxu1 %vm3375_vm0, %v3373_v4 }
 0x6d6   :  { %2963 = vmatprep.subr.mxu1 %v3373_v4 }
 0x6d8   :  { %2956 = vmatmul.mubr.msk.f32.vlgmr.msra.gmra.mrb[20].mxu1 %vm404_vm1, %v1147_v13 }
 0x6d9   :  { %2965 = vmatprep.mubr.msk.f32.mxu1 %vm3375_vm0, %v3373_v4 }
 0x772   :  { %v3655_v14 = vpop.f32.mrb[16].mxu1 }
 0x773   :  { %v2942_v15 = vpop.f32.mrb[17].mxu1 }
 0x79e   :  { %v1142_v16 = vpop.f32.mrb[4].mxu0 }
 0x79f   :  { %v1224_v17 = vmul.f32 0.17677669, %v1142_v16  ;;  %v2952_v18 = vpop.f32.mrb[5].mxu0 }
 0x7a1   :  { %v1226_v19 = vsel %vm3575_vm2, %v1224_v17, -inf }
 0x7a2   :  { %v1228_v20 = vsel %vm563_vm3, %v1226_v19, -inf }
 0x7a3   :  { %1229 = vmax.xlane.f32.xlu0 %v1228_v20 }
 0x7a7   :  { %v3660_v21 = vpop.f32.mrb[18].mxu1 }
 0x7a8   :  { %v3027_v22 = vpack.i.bf16 %v3660_v21, %v3655_v14  ;;  %v2947_v23 = vpop.f32.mrb[19].mxu1 }
 0x7ab   :  { %v1220_v24 = vpop.f32.mrb[20].mxu1 }
 0x7ac   :  { %v1225_v25 = vmul.f32 0.17677669, %v1220_v24  ;;  %v2957_v26 = vpop.f32.mrb[21].mxu1 }
 0x7ad   :  { %v3075_v26 = vld [vmem:[#allocation7 + $0x8] sm:$0xff]  }
 0x7ae   :  { %v1227_v27 = vsel %vm3575_vm2, %v1225_v25, -inf }
 0x7af   :  { %v1231_v28 = vsel %vm563_vm3, %v1227_v27, -inf }
 0x7b0   :  { %1232 = vmax.xlane.f32.xlu1 %v1231_v28  ;;  %v3077_v28 = vld [vmem:[#allocation7 + $0x18] sm:$0xff]  }
 0x7c1   :  { %1326 = vrot.lane.b32.xlu1 %v3552_v58, %s3370_s0 }
 0x7c5   :  { %1404 = vrot.lane.b32.xlu1 %v3548_v55, %s3377_s2 }
 0x7c9   :  { %1482 = vrot.lane.b32.xlu1 %v3556_v59, %s3377_s2 }
 0x7cd   :  { %1480 = vrot.lane.b32.xlu1 %v3550_v57, %s3377_s2 }
 0x830   :  { %v1230_v29 = vpop.xlane.xlu0 %1229 }
 0x831   :  { %v1234_v31 = vsub.f32 %v1226_v19, %v1230_v29  ;;  %v3078_v29 = vld [vmem:[#allocation7 + $0x20] sm:$0xff]  }
 0x833   :  { %v1236_v32 = vmul.f32 1.442695, %v1234_v31  ;;  %v3079_v31 = vld [vmem:[#allocation7 + $0x28] sm:$0xff]  }
 0x835   :  { %3182 = vpow2.f32 %v1236_v32  ;;  %v3080_v32 = vld [vmem:[#allocation7 + $0x30] sm:$0xff]  }
 0x83d   :  { %v1233_v34 = vpop.xlane.xlu1 %1232 }
 0x83e   :  { %v1235_v55 = vsub.f32 %v1227_v27, %v1233_v34  ;;  %v3076_v27 = vld [vmem:[#allocation7 + $0x10] sm:$0xff]   ;;  %v3081_v34 = vld [vmem:[#allocation7 + $0x38] sm:$0xff]  }
 0x83f   :  { %v3183_v36 = vpop.eup %3182 }
 0x840   :  { %v1240_v37 = vsel %vm563_vm3, %v3183_v36, 0.0  ;;  %v1238_v59 = vmul.f32 1.442695, %v1235_v55 }
 0x841   :  { %1241 = vadd.xlane.f32.xlu0 %v1240_v37  ;;  %v1327_v38 = vpop.permute.xlu1 %1326 }
 0x842   :  { %2964 = vmatpush3.msra.mxu1 %v1327_v38  ;;  %3184 = vpow2.f32 %v1238_v59 }
 0x843   :  { %2973 = vmatprep.subr.mxu1 %v3373_v4 }
 0x845   :  { %v1405_v44 = vpop.permute.xlu1 %1404 }
 0x849   :  { %v1483_v47 = vpop.permute.xlu1 %1482 }
 0x84c   :  { %v3185_v57 = vpop.eup %3184 }
 0x84d   :  { %v1243_v39 = vsel %vm563_vm3, %v3185_v57, 0.0  ;;  %v1481_v49 = vpop.permute.xlu1 %1480 }
 0x857   :  { %1250 = vrot.lane.b32.xlu0 %v3546_v54, %s3370_s0 }
 0x876   :  { %1244 = vadd.xlane.f32.xlu0 %v1243_v39 }
 0x88c   :  { %1402 = vrot.lane.b32.xlu0 %v3544_v53, %s3377_s2 }
 0x8ce   :  { %v1242_v40 = vpop.xlane.xlu0 %1241 }
 0x8cf   :  { %3186 = vrcp.f32 %v1242_v40 }
 0x8d2   :  { %v1251_v41 = vpop.permute.xlu0 %1250 }
 0x8d3   :  { %2959 = vmatpush3.msra.mxu0 %v1251_v41 }
 0x8d4   :  { %2968 = vmatprep.subr.mxu0 %v3373_v4 }
 0x8d9   :  { %v3187_v42 = vpop.eup %3186 }
 0x8da   :  { %v1248_v43 = vmul.f32 %v3187_v42, %v3183_v36 }
 0x8dc   :  { %2961 = vmatmul.mubr.msk.f32.vlgmr.msra.gmra.mrb[6].mxu0 %vm563_vm3, %v1248_v43 }
 0x8dd   :  { %2969 = vmatpush3.xpose.msk.msra.mxu0 %vm404_vm1, %v1405_v44  ;;  %2970 = vmatprep.mubr.msk.f32.mxu0 %vm3375_vm0, %v3373_v4 }
 0x8de   :  { %2978 = vmatprep.subr.mxu0 %v3373_v4 }
 0x903   :  { %v1245_v45 = vpop.xlane.xlu0 %1244 }
 0x904   :  { %3188 = vrcp.f32 %v1245_v45 }
 0x907   :  { %v1403_v53 = vpop.permute.xlu0 %1402 }
 0x908   :  { %2971 = vmatmul.mubr.msk.f32.vlgmr.msra.gmra.mrb[8].mxu0 %vm404_vm1, %v1403_v53 }
 0x909   :  { %2980 = vmatprep.mubr.msk.f32.mxu0 %vm3375_vm0, %v3373_v4 }
 0x90e   :  { %v3189_v46 = vpop.eup %3188 }
 0x90f   :  { %v1249_v48 = vmul.f32 %v3189_v46, %v3185_v57 }
 0x911   :  { %2966 = vmatmul.mubr.msk.f32.vlgmr.msra.gmra.mrb[22].mxu1 %vm563_vm3, %v1249_v48 }
 0x912   :  { %2974 = vmatpush3.xpose.msk.msra.mxu1 %vm404_vm1, %v1483_v47  ;;  %2975 = vmatprep.mubr.msk.f32.mxu1 %vm3375_vm0, %v3373_v4 }
 0x913   :  { %2983 = vmatprep.subr.mxu1 %v3373_v4 }
 0x915   :  { %2976 = vmatmul.mubr.msk.f32.vlgmr.msra.gmra.mrb[24].mxu1 %vm404_vm1, %v1481_v49 }
 0x916   :  { %2985 = vmatprep.mubr.msk.f32.mxu1 %vm3375_vm0, %v3373_v4 }
 0x9af   :  { %v1322_v50 = vpop.f32.mrb[6].mxu0 }
 0x9b0   :  { %v2962_v51 = vpop.f32.mrb[7].mxu0 }
 0x9db   :  { %v1476_v52 = vpop.f32.mrb[8].mxu0 }
 0x9dc   :  { %v1558_v56 = vmul.f32 0.17677669, %v1476_v52  ;;  %v2972_v60 = vpop.f32.mrb[9].mxu0  ;;  %v2718_v52 = vld [vmem:[%s3836_s5] ss:$0 sm:$0xff] }
 0x9de   :  { %v1560_v61 = vsel %vm3575_vm2, %v1558_v56, -inf }
 0x9df   :  { %v1562_v63 = vsel %vm563_vm3, %v1560_v61, -inf }
 0x9e0   :  { %1563 = vmax.xlane.f32.xlu0 %v1562_v63  ;;  %v3218_v63 = vld [vmem:[#allocation2] sm:$0xff] }
 0x9e4   :  { %v1398_v0 = vpop.f32.mrb[22].mxu1 }
 0x9e5   :  { %v3032_v2 = vpack.i.bf16 %v1398_v0, %v1322_v50  ;;  %v2967_v3 = vpop.f32.mrb[23].mxu1 }
 0x9e6   :  { %v3219_v3 = vld [vmem:[#allocation2 + $0x8] sm:$0xff] }
 0x9e8   :  { %v1554_v5 = vpop.f32.mrb[24].mxu1 }
 0x9e9   :  { %v1559_v6 = vmul.f32 0.17677669, %v1554_v5  ;;  %v2977_v7 = vpop.f32.mrb[25].mxu1 }
 0x9ea   :  { %v3085_v7 = vld [vmem:[#allocation8 + $0x8] ss:$16 sps:$4 sm:$0xff]  }
 0x9eb   :  { %v1561_v8 = vsel %vm3575_vm2, %v1559_v6, -inf  ;;  %v3084_v6 = vld [vmem:[#allocation8 + $0x4] ss:$16 sps:$4 sm:$0xff]  }
 0x9ec   :  { %v1565_v9 = vsel %vm563_vm3, %v1561_v8, -inf }
 0x9ed   :  { %1566 = vmax.xlane.f32.xlu1 %v1565_v9  ;;  %v3090_v9 = vld [vmem:[#allocation8 + $0x24] ss:$16 sps:$4 sm:$0xff]  }
 0x9fe   :  { %1660 = vrot.lane.b32.xlu1 %v3552_v58, %s3377_s2 }
 0xa02   :  { %3028 = vrot.lane.b32.xlu1 %v3027_v22, %s3377_s2 }
 0xa06   :  { %3033 = vrot.lane.b32.xlu1 %v3032_v2, %s3370_s0 }
 0xa6d   :  { %v1564_v10 = vpop.xlane.xlu0 %1563 }
 0xa6e   :  { %v1568_v11 = vsub.f32 %v1560_v61, %v1564_v10  ;;  %v3093_v10 = vld [vmem:[#allocation8 + $0x2c] ss:$16 sps:$4 sm:$0xff]  }
 0xa70   :  { %v1570_v12 = vmul.f32 1.442695, %v1568_v11  ;;  %v3088_v11 = vld [vmem:[#allocation8 + $0x20] ss:$16 sps:$4 sm:$0xff]  }
 0xa72   :  { %3190 = vpow2.f32 %v1570_v12  ;;  %v3091_v12 = vld [vmem:[#allocation8 + $0x28] ss:$16 sps:$4 sm:$0xff]  }
 0xa7a   :  { %v1567_v13 = vpop.xlane.xlu1 %1566 }
 0xa7b   :  { %v1569_v1 = vsub.f32 %v1561_v8, %v1567_v13  ;;  %v3087_v8 = vld [vmem:[#allocation8 + $0xc] ss:$16 sps:$4 sm:$0xff]  }
 0xa7c   :  { %v3191_v15 = vpop.eup %3190 }
 0xa7d   :  { %v1572_v16 = vmul.f32 1.442695, %v1569_v1  ;;  %v1574_v17 = vsel %vm563_vm3, %v3191_v15, 0.0 }
 0xa7e   :  { %1575 = vadd.xlane.f32.xlu0 %v1574_v17  ;;  %v1661_v18 = vpop.permute.xlu1 %1660 }
 0xa7f   :  { %3192 = vpow2.f32 %v1572_v16  ;;  %2984 = vmatpush3.msra.mxu1 %v1661_v18 }
 0xa80   :  { %2138 = vmatprep.subr.bf16.mxu1 %v3084_v6  ;;  %v3135_v6 = vld [vmem:[#allocation10 + $0xc8] sm:$0xff]  }
 0xa82   :  { %v3029_v57 = vpop.permute.xlu1 %3028 }
 0xa83   :  { %v3031_v40 = vunpack.i.h.bf16 %v3029_v57  ;;  %v3030_v41 = vunpack.i.l.bf16 %v3029_v57  ;;  %v3126_v57 = vld [vmem:[#allocation8 + $0xe4] ss:$16 sps:$4 sm:$0xff]  }
 0xa85   :  { %v1760_v45 = vsel %vm404_vm1, %v3613_v33, %v3030_v41  ;;  %v3127_v41 = vld [vmem:[#allocation8 + $0xe8] ss:$16 sps:$4 sm:$0xff]  }
 0xa86   :  { %v3034_v39 = vpop.permute.xlu1 %3033 }
 0xa87   :  { %v3036_v42 = vunpack.i.h.bf16 %v3034_v39  ;;  %v3035_v43 = vunpack.i.l.bf16 %v3034_v39  ;;  %v3129_v39 = vld [vmem:[#allocation8 + $0xec] ss:$16 sps:$4 sm:$0xff]  }
 0xa89   :  { %v3193_v58 = vpop.eup %3192  ;;  %v1763_v47 = vsel %vm1762_vm4, %v1760_v45, %v3035_v43 }
 0xa8a   :  { %v1577_v14 = vsel %vm563_vm3, %v3193_v58, 0.0 }
 0xa8b   :  { %1578 = vadd.xlane.f32.xlu0 %v1577_v14 }
 0xaa1   :  { %1584 = vrot.lane.b32.xlu0 %v3546_v54, %s3377_s2  ;;  %v3074_v54 = vld [vmem:[#allocation7] sm:$0xff]  }
 0xb0b   :  { %v1576_v19 = vpop.xlane.xlu0 %1575 }
 0xb0c   :  { %3194 = vrcp.f32 %v1576_v19  ;;  %v3096_v19 = vld [vmem:[#allocation8 + $0x44] ss:$16 sps:$4 sm:$0xff]  }
 0xb16   :  { %v3195_v21 = vpop.eup %3194 }
 0xb17   :  { %v1582_v22 = vmul.f32 %v3195_v21, %v3191_v15  ;;  %v3094_v21 = vld [vmem:[#allocation8 + $0x40] ss:$16 sps:$4 sm:$0xff]  }
 0xb18   :  { %v1579_v20 = vpop.xlane.xlu0 %1578 }
 0xb19   :  { %3196 = vrcp.f32 %v1579_v20  ;;  %v3099_v20 = vld [vmem:[#allocation8 + $0x4c] ss:$16 sps:$4 sm:$0xff]  }
 0xb1c   :  { %v1585_v23 = vpop.permute.xlu0 %1584 }
 0xb1d   :  { %2979 = vmatpush3.msra.mxu0 %v1585_v23  ;;  %v3102_v23 = vld [vmem:[#allocation8 + $0x64] ss:$16 sps:$4 sm:$0xff]  }
 0xb1e   :  { %2981 = vmatmul.mubr.msk.f32.vlgmr.msra.gmra.mrb[10].mxu0 %vm563_vm3, %v1582_v22  ;;  %2988 = vmatprep.subr.bf16.mxu0 %v3373_v4  ;;  %v3097_v22 = vld [vmem:[#allocation8 + $0x48] ss:$16 sps:$4 sm:$0xff]  }
 0xb1f   :  { %3004 = vmatprep.mubr.msk.bf16.mxu0 %vm3375_vm0, %v3373_v4  ;;  %2989 = vmatpush3.bf16.msra.mxu0 %v3074_v54  ;;  %v3103_v54 = vld [vmem:[#allocation8 + $0x68] ss:$16 sps:$4 sm:$0xff]  }
 0xb20   :  { %2990 = vmatprep.subr.bf16.mxu0 %v3373_v4 }
 0xb23   :  { %v3197_v24 = vpop.eup %3196  ;;  %2991 = vmatpush3.bf16.msra.mxu0 %v3075_v26  ;;  %v3108_v26 = vld [vmem:[#allocation8 + $0x84] ss:$16 sps:$4 sm:$0xff]  }
 0xb24   :  { %v1583_v25 = vmul.f32 %v3197_v24, %v3193_v58  ;;  %2992 = vmatprep.subr.bf16.mxu0 %v3373_v4  ;;  %v3105_v24 = vld [vmem:[#allocation8 + $0x6c] ss:$16 sps:$4 sm:$0xff]  }
 0xb26   :  { %2986 = vmatmul.mubr.msk.f32.vlgmr.msra.gmra.mrb[26].mxu1 %vm563_vm3, %v1583_v25  ;;  %v3100_v25 = vld [vmem:[#allocation8 + $0x60] ss:$16 sps:$4 sm:$0xff]  }
 0xb27   :  { %2170 = vmatprep.mubr.bf16.mxu1 %v3374_v30  ;;  %2993 = vmatpush3.bf16.msra.mxu0 %v3076_v27  ;;  %v3111_v27 = vld [vmem:[#allocation8 + $0x8c] ss:$16 sps:$4 sm:$0xff]  }
 0xb28   :  { %2994 = vmatprep.subr.bf16.mxu0 %v3373_v4 }
 0xb2b   :  { %2995 = vmatpush3.bf16.msra.mxu0 %v3077_v28  ;;  %v3106_v28 = vld [vmem:[#allocation8 + $0x80] ss:$16 sps:$4 sm:$0xff]  }
 0xb2c   :  { %2996 = vmatprep.subr.bf16.mxu0 %v3373_v4 }
 0xb2f   :  { %2997 = vmatpush3.bf16.msra.mxu0 %v3078_v29  ;;  %v3109_v29 = vld [vmem:[#allocation8 + $0x88] ss:$16 sps:$4 sm:$0xff]  }
 0xb30   :  { %2998 = vmatprep.subr.bf16.mxu0 %v3373_v4 }
 0xb33   :  { %2999 = vmatpush3.bf16.msra.mxu0 %v3079_v31  ;;  %v3114_v31 = vld [vmem:[#allocation8 + $0xa4] ss:$16 sps:$4 sm:$0xff]  }
 0xb34   :  { %3000 = vmatprep.subr.bf16.mxu0 %v3373_v4 }
 0xb37   :  { %3001 = vmatpush3.bf16.msra.mxu0 %v3080_v32  ;;  %v3117_v32 = vld [vmem:[#allocation8 + $0xac] ss:$16 sps:$4 sm:$0xff]  }
 0xb38   :  { %3002 = vmatprep.subr.bf16.mxu0 %v3373_v4  ;;  %v1761_v4 = vsel %vm404_vm1, %v3615_v35, %v3031_v40  ;;  %v3124_v40 = vld [vmem:[#allocation8 + $0xe0] ss:$16 sps:$4 sm:$0xff]  }
 0xb39   :  { %v1764_v48 = vsel %vm1762_vm4, %v1761_v4, %v3036_v42 }
 0xb3b   :  { %3003 = vmatpush3.bf16.msra.mxu0 %v3081_v34  ;;  %v3112_v34 = vld [vmem:[#allocation8 + $0xa0] ss:$16 sps:$4 sm:$0xff]  }
 0xb3c   :  { %2181 = vmatprep.subr.bf16.mxu0 %v3087_v8  ;;  %v3137_v8 = vld [vmem:[#allocation10 + $0x88] sm:$0xff]  }
 0xbf1   :  { %v1656_v36 = vpop.f32.mrb[10].mxu0 }
 0xbf2   :  { %v2982_v37 = vpop.f32.mrb[11].mxu0 }
 0xbf3   :  { %v3120_v37 = vld [vmem:[#allocation8 + $0xc4] ss:$16 sps:$4 sm:$0xff]  }
 0xbf9   :  { %v1732_v38 = vpop.f32.mrb[26].mxu1 }
 0xbfa   :  { %v3037_v55 = vpack.i.bf16 %v1732_v38, %v1656_v36  ;;  %v2987_v59 = vpop.f32.mrb[27].mxu1  ;;  %v3115_v36 = vld [vmem:[#allocation8 + $0xa8] ss:$16 sps:$4 sm:$0xff]   ;;  %v3123_v38 = vld [vmem:[#allocation8 + $0xcc] ss:$16 sps:$4 sm:$0xff]  }
 0xbfb   :  { %v3121_v59 = vld [vmem:[#allocation8 + $0xc8] ss:$16 sps:$4 sm:$0xff]  }
 0xbfc   :  { %3038 = vrot.lane.b32.xlu0 %v3037_v55, %s3376_s1  ;;  %v3118_v55 = vld [vmem:[#allocation8 + $0xc0] ss:$16 sps:$4 sm:$0xff]  }
 0xc6e   :  { %v3039_v44 = vpop.permute.xlu0 %3038 }
 0xc6f   :  { %v3041_v53 = vunpack.i.h.bf16 %v3039_v44  ;;  %v3040_v46 = vunpack.i.l.bf16 %v3039_v44 }
 0xc71   :  { %v1767_v49 = vsel %vm1765_vm5, %v1764_v48, %v3041_v53  ;;  %v1766_v50 = vsel %vm1765_vm5, %v1763_v47, %v3040_v46  ;;  %v2727_v48 = vld [vmem:[%s3837_s6] ss:$0 sm:$0xff] }
 0xc72   :  { %v1768_v51 = vpack.c.bf16 %v1767_v49, %v1766_v50 }
 0xc74   :  { %3005 = vmatmul.mubr.bf16.vlgmr.msra.gmra.mrb[12].mxu0 %v1768_v51 }
 0xc75   :  { %2213 = vmatprep.mubr.bf16.mxu0 %v3374_v30  ;;  %v3082_v30 = vld [vmem:[#allocation8] ss:$16 sps:$4 sm:$0xff]   ;;  %2182 = vmatpush1.bf16.msra.mxu0 %v3085_v7  ;;  %v3136_v7 = vld [vmem:[#allocation10 + $0x8] sm:$0xff]  }
 0xc76   :  { %2139 = vmatpush1.bf16.msra.mxu1 %v3082_v30  ;;  %2183 = vmatprep.subr.bf16.mxu0 %v3093_v10  ;;  %v3134_v30 = vld [vmem:[#allocation10 + $0x48] sm:$0xff]   ;;  %v3139_v10 = vld [vmem:[#allocation10 + $0xd0] sm:$0xff]  }
 0xc77   :  { %2140 = vmatprep.subr.bf16.mxu1 %v3090_v9  ;;  %v3138_v9 = vld [vmem:[#allocation10 + $0x50] sm:$0xff]  }
 0xc79   :  { %2184 = vmatpush1.bf16.msra.mxu0 %v3091_v12  ;;  %v3141_v12 = vld [vmem:[#allocation10 + $0x90] sm:$0xff]  }
 0xc7a   :  { %2141 = vmatpush1.bf16.msra.mxu1 %v3088_v11  ;;  %2185 = vmatprep.subr.bf16.mxu0 %v3099_v20  ;;  %v3140_v11 = vld [vmem:[#allocation10 + $0x10] sm:$0xff]   ;;  %v3151_v20 = vld [vmem:[#allocation10 + $0xe8] sm:$0xff]  }
 0xc7b   :  { %2142 = vmatprep.subr.bf16.mxu1 %v3096_v19  ;;  %v3150_v19 = vld [vmem:[#allocation10 + $0x68] sm:$0xff]  }
 0xc7d   :  { %2186 = vmatpush1.bf16.msra.mxu0 %v3097_v22  ;;  %v3153_v22 = vld [vmem:[#allocation10 + $0xa8] sm:$0xff]  }
 0xc7e   :  { %2143 = vmatpush1.bf16.msra.mxu1 %v3094_v21  ;;  %2187 = vmatprep.subr.bf16.mxu0 %v3105_v24  ;;  %v3152_v21 = vld [vmem:[#allocation10 + $0x28] sm:$0xff]   ;;  %v3155_v24 = vld [vmem:[#allocation10 + $0xf0] sm:$0xff]  }
 0xc7f   :  { %2144 = vmatprep.subr.bf16.mxu1 %v3102_v23  ;;  %v3154_v23 = vld [vmem:[#allocation10 + $0x70] sm:$0xff]  }
 0xc81   :  { %2188 = vmatpush1.bf16.msra.mxu0 %v3103_v54  ;;  %v3157_v54 = vld [vmem:[#allocation10 + $0xb0] sm:$0xff]  }
 0xc82   :  { %2145 = vmatpush1.bf16.msra.mxu1 %v3100_v25  ;;  %2189 = vmatprep.subr.bf16.mxu0 %v3111_v27  ;;  %v3156_v25 = vld [vmem:[#allocation10 + $0x30] sm:$0xff]   ;;  %v3159_v27 = vld [vmem:[#allocation10 + $0xf8] sm:$0xff]  }
 0xc83   :  { %2146 = vmatprep.subr.bf16.mxu1 %v3108_v26  ;;  %v3158_v26 = vld [vmem:[#allocation10 + $0x78] sm:$0xff]  }
 0xc85   :  { %2190 = vmatpush1.bf16.msra.mxu0 %v3109_v29  ;;  %v3161_v29 = vld [vmem:[#allocation10 + $0xb8] sm:$0xff]  }
 0xc86   :  { %2147 = vmatpush1.bf16.msra.mxu1 %v3106_v28  ;;  %2191 = vmatprep.subr.bf16.mxu0 %v3117_v32  ;;  %v3160_v28 = vld [vmem:[#allocation10 + $0x38] sm:$0xff]   ;;  %v1968_v32 = vsub.s32 2, %v3572_v62 }
 0xc87   :  { %2148 = vmatprep.subr.bf16.mxu1 %v3114_v31  ;;  %v1960_v31 = vsub.s32 0, %v3572_v62 }
 0xc89   :  { %2192 = vmatpush1.bf16.msra.mxu0 %v3115_v36  ;;  %v1964_v36 = vsub.s32 1, %v3572_v62 }
 0xc8a   :  { %2149 = vmatpush1.bf16.msra.mxu1 %v3112_v34  ;;  %2193 = vmatprep.subr.bf16.mxu0 %v3123_v38  ;;  %v1956_v34 = vld [vmem:[%s3840_s9] sm:$0xf] }
 0xc8b   :  { %2150 = vmatprep.subr.bf16.mxu1 %v3120_v37  ;;  %v1972_v37 = vsub.s32 3, %v3572_v62  ;;  %v1961_v38 = vrot.slane %v1956_v34, %v1960_v31 }
 0xc8d   :  { %2194 = vmatpush1.bf16.msra.mxu0 %v3121_v59  ;;  %v1965_v59 = vrot.slane %v1956_v34, %v1964_v36 }
 0xc8e   :  { %2151 = vmatpush1.bf16.msra.mxu1 %v3118_v55  ;;  %2195 = vmatprep.subr.bf16.mxu0 %v3129_v39  ;;  %v1969_v55 = vrot.slane %v1956_v34, %v1968_v32 }
 0xc8f   :  { %2152 = vmatprep.subr.bf16.mxu1 %v3126_v57  ;;  %v1973_v57 = vrot.slane %v1956_v34, %v1972_v37 }
 0xc91   :  { %2196 = vmatpush1.bf16.msra.mxu0 %v3127_v41 }
 0xc92   :  { %2153 = vmatpush1.bf16.msra.mxu1 %v3124_v40 }
 0xd47   :  { %v1874_v56 = vpop.f32.mrb[12].mxu0 }
 0xd48   :  { %v1875_v60 = vadd.f32 %v2718_v52, %v1874_v56  ;;  %v3006_v35 = vpop.f32.mrb[13].mxu0 }
 0xd49   :  { %v1877_v61 = vpop.f32.mrb[14].mxu0 }
 0xd4a   :  { %v3738_v33 = vadd.f32 %v3218_v63, %v1875_v60  ;;  %v1878_v0 = vadd.f32 %v2718_v52, %v1877_v61  ;;  %v3007_v2 = vpop.f32.mrb[15].mxu0  ;;  %v2728_v52 = vld [vmem:[%s3838_s7] ss:$0 sm:$0xff]  ;;  %v3130_v63 = vld [vmem:[#allocation10 + $0x40] sm:$0xff]  }
 0xd4b   :  { %v3132_v2 = vld [vmem:[#allocation10] sm:$0xff]   ;;  %2844 = vmatprep.subr.bf16.mxu1 %v3130_v63 }
 0xd4c   :  { %v3740_v5 = vadd.f32 %v3219_v3, %v1878_v0  ;;  %1883 = vadd.xlane.f32.xlu1 %v3738_v33  ;;  %v3131_v0 = vld [vmem:[#allocation10 + $0xc0] sm:$0xff]  }
 0xd4d   :  { %v3133_v3 = vld [vmem:[#allocation10 + $0x80] sm:$0xff]   ;;  %2866 = vmatprep.subr.bf16.mxu0 %v3131_v0 }
 0xd4e   :  { %1885 = vadd.xlane.f32.xlu0 %v3740_v5 }
 0xdd9   :  { %v1884_v13 = vpop.xlane.xlu1 %1883 }
 0xdda   :  { %v1887_v1 = vmul.f32 0.0078125, %v1884_v13  ;;  %v3142_v13 = vld [vmem:[#allocation10 + $0x58] sm:$0xff]  }
 0xddb   :  { %v1886_v15 = vpop.xlane.xlu0 %1885 }
 0xddc   :  { %v3745_v16 = vsub.f32 %v3738_v33, %v1887_v1  ;;  %v1888_v17 = vmul.f32 0.0078125, %v1886_v15  ;;  %v3143_v1 = vld [vmem:[#allocation10 + $0xd8] sm:$0xff]  }
 0xddd   :  { %v3144_v15 = vld [vmem:[#allocation10 + $0x18] sm:$0xff]  }
 0xdde   :  { %v3748_v18 = vsub.f32 %v3740_v5, %v1888_v17  ;;  %v1891_v58 = vmul.f32 %v3745_v16, %v3745_v16  ;;  %v3146_v17 = vld [vmem:[#allocation10 + $0x60] sm:$0xff]  }
 0xde0   :  { %1893 = vadd.xlane.f32.xlu0 %v1891_v58  ;;  %v1892_v14 = vmul.f32 %v3748_v18, %v3748_v18  ;;  %v3148_v58 = vld [vmem:[#allocation10 + $0x20] sm:$0xff]  }
 0xde4   :  { %1895 = vadd.xlane.f32.xlu0 %v1892_v14  ;;  %v3149_v14 = vld [vmem:[#allocation10 + $0xa0] sm:$0xff]  }
 0xe6d   :  { %v1894_v42 = vpop.xlane.xlu0 %1893 }
 0xe6e   :  { %v1897_v43 = vmul.f32 0.0078125, %v1894_v42 }
 0xe70   :  { %v1899_v44 = vadd.f32 1e-05, %v1897_v43 }
 0xe71   :  { %v1896_v4 = vpop.xlane.xlu0 %1895 }
 0xe72   :  { %3198 = vrsqrt.f32 %v1899_v44  ;;  %v1898_v45 = vmul.f32 0.0078125, %v1896_v4 }
 0xe74   :  { %v1900_v53 = vadd.f32 1e-05, %v1898_v45 }
 0xe76   :  { %3200 = vrsqrt.f32 %v1900_v53 }
 0xe7c   :  { %v3199_v46 = vpop.eup %3198 }
 0xe7d   :  { %v1903_v47 = vmul.f32 %v3199_v46, %v3745_v16  ;;  %v3145_v16 = vld [vmem:[#allocation10 + $0x98] sm:$0xff]  }
 0xe7f   :  { %v1912_v51 = vmul.f32 %v2727_v48, %v1903_v47 }
 0xe80   :  { %v3201_v49 = vpop.eup %3200 }
 0xe81   :  { %v1904_v50 = vmul.f32 %v3201_v49, %v3748_v18  ;;  %v1921_v60 = vadd.f32 %v2728_v52, %v1912_v51  ;;  %v3147_v18 = vld [vmem:[#allocation10 + $0xe0] sm:$0xff]  }
 0xe83   :  { %v1913_v56 = vmul.f32 %v2727_v48, %v1904_v50 }
 0xe85   :  { %v1922_v35 = vadd.f32 %v2728_v52, %v1913_v56 }
 0xe87   :  { %v1923_v61 = vpack.c.bf16 %v1922_v35, %v1921_v60 }
 0xe89   :  { %2171 = vmatmul.mubr.bf16.vlgmr.msra.gmra.mrb[28].mxu1 %v1923_v61  ;;  %2214 = vmatmul.mubr.bf16.vlgmr.msra.gmra.mrb[16].mxu0 %v1923_v61 }
 0xe8a   :  { %2845 = vmatpush3.bf16.msra.mxu1 %v3132_v2  ;;  %2867 = vmatpush3.bf16.msra.mxu0 %v3133_v3 }
 0xe8b   :  { %2846 = vmatprep.subr.bf16.mxu1 %v3134_v30  ;;  %2868 = vmatprep.subr.bf16.mxu0 %v3135_v6 }
 0xe8e   :  { %2847 = vmatpush3.bf16.msra.mxu1 %v3136_v7  ;;  %2869 = vmatpush3.bf16.msra.mxu0 %v3137_v8 }
 0xe8f   :  { %2848 = vmatprep.subr.bf16.mxu1 %v3138_v9  ;;  %2870 = vmatprep.subr.bf16.mxu0 %v3139_v10 }
 0xe92   :  { %2849 = vmatpush3.bf16.msra.mxu1 %v3140_v11  ;;  %2871 = vmatpush3.bf16.msra.mxu0 %v3141_v12 }
 0xe93   :  { %2850 = vmatprep.subr.bf16.mxu1 %v3142_v13  ;;  %2872 = vmatprep.subr.bf16.mxu0 %v3143_v1 }
 0xe96   :  { %2851 = vmatpush3.bf16.msra.mxu1 %v3144_v15  ;;  %2873 = vmatpush3.bf16.msra.mxu0 %v3145_v16 }
 0xe97   :  { %2852 = vmatprep.subr.bf16.mxu1 %v3146_v17  ;;  %2874 = vmatprep.subr.bf16.mxu0 %v3147_v18 }
 0xe9a   :  { %2853 = vmatpush3.bf16.msra.mxu1 %v3148_v58  ;;  %2875 = vmatpush3.bf16.msra.mxu0 %v3149_v14 }
 0xe9b   :  { %2854 = vmatprep.subr.bf16.mxu1 %v3150_v19  ;;  %2876 = vmatprep.subr.bf16.mxu0 %v3151_v20 }
 0xe9e   :  { %2855 = vmatpush3.bf16.msra.mxu1 %v3152_v21  ;;  %2877 = vmatpush3.bf16.msra.mxu0 %v3153_v22 }
 0xe9f   :  { %2856 = vmatprep.subr.bf16.mxu1 %v3154_v23  ;;  %2878 = vmatprep.subr.bf16.mxu0 %v3155_v24 }
 0xea2   :  { %2857 = vmatpush3.bf16.msra.mxu1 %v3156_v25  ;;  %2879 = vmatpush3.bf16.msra.mxu0 %v3157_v54 }
 0xea3   :  { %2858 = vmatprep.subr.bf16.mxu1 %v3158_v26  ;;  %2880 = vmatprep.subr.bf16.mxu0 %v3159_v27 }
 0xea6   :  { %2859 = vmatpush3.bf16.msra.mxu1 %v3160_v28  ;;  %2881 = vmatpush3.bf16.msra.mxu0 %v3161_v29 }
 0xf5c   :  { %v2172_v39 = vpop.f32.mrb[28].mxu1  ;;  %v2215_v40 = vpop.f32.mrb[16].mxu0 }
 0xf5d   :  { %v3769_v41 = vadd.f32 %v2172_v39, %v1961_v38  ;;  %v3771_v42 = vadd.f32 %v2215_v40, %v1969_v55  ;;  %v2174_v43 = vpop.f32.mrb[29].mxu1  ;;  %v2217_v44 = vpop.f32.mrb[17].mxu0 }
 0xf5e   :  { %v3773_v4 = vadd.f32 %v2174_v43, %v1965_v59  ;;  %v3775_v45 = vadd.f32 %v2217_v44, %v1973_v57  ;;  %v2176_v53 = vpop.f32.mrb[30].mxu1  ;;  %v2219_v46 = vpop.f32.mrb[18].mxu0 }
 0xf5f   :  { %v2232_v62 = vmul.f32 0.044715, %v3769_v41  ;;  %v2234_v47 = vmul.f32 0.044715, %v3771_v42  ;;  %v2177_v48 = vadd.f32 %v2176_v53, %v1961_v38  ;;  %v2220_v49 = vadd.f32 %v2219_v46, %v1969_v55  ;;  %v2178_v50 = vpop.f32.mrb[31].mxu1  ;;  %v2221_v51 = vpop.f32.mrb[19].mxu0 }
 0xf60   :  { %v2233_v52 = vmul.f32 0.044715, %v3773_v4  ;;  %v2235_v56 = vmul.f32 0.044715, %v3775_v45  ;;  %v3781_v60 = vadd.f32 %v2178_v50, %v1965_v59  ;;  %v3783_v35 = vadd.f32 %v2221_v51, %v1973_v57 }
 0xf61   :  { %v2240_v61 = vmul.f32 %v2232_v62, %v3769_v41  ;;  %v2242_v63 = vmul.f32 %v2234_v47, %v3771_v42  ;;  %v2236_v0 = vmul.f32 0.044715, %v2177_v48  ;;  %v2238_v2 = vmul.f32 0.044715, %v2220_v49 }
 0xf62   :  { %v2241_v3 = vmul.f32 %v2233_v52, %v3773_v4  ;;  %v2243_v30 = vmul.f32 %v2235_v56, %v3775_v45  ;;  %v2237_v6 = vmul.f32 0.044715, %v3781_v60  ;;  %v2239_v7 = vmul.f32 0.044715, %v3783_v35 }
 0xf63   :  { %v2248_v8 = vmul.f32 %v2240_v61, %v3769_v41  ;;  %v2250_v9 = vmul.f32 %v2242_v63, %v3771_v42  ;;  %v2244_v10 = vmul.f32 %v2236_v0, %v2177_v48  ;;  %v2246_v11 = vmul.f32 %v2238_v2, %v2220_v49 }
 0xf64   :  { %v2249_v12 = vmul.f32 %v2241_v3, %v3773_v4  ;;  %v2251_v13 = vmul.f32 %v2243_v30, %v3775_v45  ;;  %v2245_v1 = vmul.f32 %v2237_v6, %v3781_v60  ;;  %v2247_v15 = vmul.f32 %v2239_v7, %v3783_v35 }
 0xf65   :  { %v2256_v16 = vadd.f32 %v2248_v8, %v3769_v41  ;;  %v2258_v17 = vadd.f32 %v2250_v9, %v3771_v42  ;;  %v2252_v18 = vmul.f32 %v2244_v10, %v2177_v48  ;;  %v2254_v58 = vmul.f32 %v2246_v11, %v2220_v49 }
 0xf66   :  { %v2253_v14 = vmul.f32 %v2245_v1, %v3781_v60  ;;  %v2255_v19 = vmul.f32 %v2247_v15, %v3783_v35  ;;  %v2257_v24 = vadd.f32 %v2249_v12, %v3773_v4  ;;  %v2259_v27 = vadd.f32 %v2251_v13, %v3775_v45 }
 0xf67   :  { %v2264_v20 = vmul.f32 0.7978846, %v2256_v16  ;;  %v2266_v21 = vmul.f32 0.7978846, %v2258_v17  ;;  %v2260_v22 = vadd.f32 %v2252_v18, %v2177_v48  ;;  %v2262_v23 = vadd.f32 %v2254_v58, %v2220_v49 }
 0xf68   :  { %v2261_v25 = vadd.f32 %v2253_v14, %v3781_v60  ;;  %v2265_v28 = vmul.f32 0.7978846, %v2257_v24  ;;  %v2263_v31 = vadd.f32 %v2255_v19, %v3783_v35  ;;  %v2267_v32 = vmul.f32 0.7978846, %v2259_v27 }
 0xf69   :  { %3202 = vtanh.f32 %v2264_v20  ;;  %v2268_v54 = vmul.f32 0.7978846, %v2260_v22  ;;  %v2270_v26 = vmul.f32 0.7978846, %v2262_v23  ;;  %v2224_v39 = vmul.f32 0.5, %v3769_v41 }
 0xf6a   :  { %3204 = vtanh.f32 %v2266_v21  ;;  %v2269_v29 = vmul.f32 0.7978846, %v2261_v25  ;;  %v2271_v34 = vmul.f32 0.7978846, %v2263_v31  ;;  %v2228_v40 = vmul.f32 0.5, %v2177_v48 }
 0xf6b   :  { %3206 = vtanh.f32 %v2268_v54  ;;  %v2226_v53 = vmul.f32 0.5, %v3771_v42  ;;  %v2230_v46 = vmul.f32 0.5, %v2220_v49  ;;  %v2225_v50 = vmul.f32 0.5, %v3773_v4 }
 0xf6c   :  { %3208 = vtanh.f32 %v2270_v26  ;;  %v2229_v63 = vmul.f32 0.5, %v3781_v60  ;;  %v2227_v48 = vmul.f32 0.5, %v3775_v45  ;;  %v2231_v30 = vmul.f32 0.5, %v3783_v35  ;;  %v2761_v45 = vld [vmem:[%s3842_s11] ss:$0 sm:$0xff]  ;;  %s3330_s11 = scalar_lea.vmem %s2655_s23, 256 }
 0xf6d   :  { %3210 = vtanh.f32 %v2265_v28  ;;  %p3331_p12 = scmp.ne.s32.totalorder %s2655_s23, %s3330_s11  ;;  %p3336_p0 = scmp.lt.s32.totalorder %s3330_s11, %s3330_s11 }
 0xf6e   :  { %3212 = vtanh.f32 %v2269_v29 }
 0xf6f   :  { %3214 = vtanh.f32 %v2267_v32  ;;  %p3337_p1 = por %p3336_p0, %p3335_p13 }
 0xf70   :  { %3216 = vtanh.f32 %v2271_v34 }
 0xf71   :  { %p3338_p2 = pnand %p3337_p1, %p3331_p12 }
 0xf73   :  { %v3203_v36 = vpop.eup %3202 }
 0xf74   :  { %v3205_v37 = vpop.eup %3204  ;;  %v2280_v38 = vadd.f32 1.0, %v3203_v36 }
 0xf75   :  { %v3207_v55 = vpop.eup %3206  ;;  %v2282_v59 = vadd.f32 1.0, %v3205_v37 }
 0xf76   :  { %v3209_v57 = vpop.eup %3208  ;;  %v2284_v43 = vadd.f32 1.0, %v3207_v55  ;;  %v2288_v52 = vmul.f32 %v2280_v38, %v2224_v39 }
 0xf77   :  { %v3211_v44 = vpop.eup %3210  ;;  %v2286_v62 = vadd.f32 1.0, %v3209_v57  ;;  %v2290_v2 = vmul.f32 %v2282_v59, %v2226_v53 }
 0xf78   :  { %v3213_v47 = vpop.eup %3212  ;;  %v2281_v51 = vadd.f32 1.0, %v3211_v44  ;;  %v2292_v56 = vmul.f32 %v2284_v43, %v2228_v40 }
 0xf79   :  { %v3215_v61 = vpop.eup %3214  ;;  %v2285_v0 = vadd.f32 1.0, %v3213_v47  ;;  %v2294_v3 = vmul.f32 %v2286_v62, %v2230_v46 }
 0xf7a   :  { %v3217_v41 = vpop.eup %3216  ;;  %v2283_v42 = vadd.f32 1.0, %v3215_v61  ;;  %v2296_v49 = vpack.c.bf16 %v2292_v56, %v2288_v52  ;;  %v2289_v6 = vmul.f32 %v2281_v51, %v2225_v50 }
 0xf7b   :  { %v2293_v7 = vmul.f32 %v2285_v0, %v2229_v63  ;;  %v2287_v8 = vadd.f32 1.0, %v3217_v41  ;;  %v2298_v4 = vpack.c.bf16 %v2294_v3, %v2290_v2 }
 0xf7c   :  { %v2291_v10 = vmul.f32 %v2283_v42, %v2227_v48 }
 0xf7d   :  { %v2297_v9 = vpack.c.bf16 %v2293_v7, %v2289_v6  ;;  %v2295_v11 = vmul.f32 %v2287_v8, %v2231_v30 }
 0xf7f   :  { %2595 = vmatprep.mubr.bf16.mxu1 %v2297_v9  ;;  %v2299_v12 = vpack.c.bf16 %v2295_v11, %v2291_v10 }
 0xf80   :  { %2596 = vmatmul.mubr.bf16.vlgmr.msra.gmra.mrb[32].mxu1 %v2296_v49 }
 0xf81   :  { %2636 = vmatprep.mubr.bf16.mxu0 %v2299_v12 }
 0xf82   :  { %2637 = vmatmul.mubr.bf16.vlgmr.msra.gmra.mrb[20].mxu0 %v2298_v4 }
0x1053   :  { %v2860_v60 = vpop.f32.mrb[32].mxu1 }
0x1054   :  { %v2861_v35 = vpop.f32.mrb[33].mxu1 }
0x1055   :  { %v2882_v13 = vpop.f32.mrb[20].mxu0  ;;  %v2862_v1 = vadd.f32 %v2861_v35, %v2860_v60  ;;  %v2863_v15 = vpop.f32.mrb[34].mxu1 }
0x1056   :  { %v2883_v16 = vpop.f32.mrb[21].mxu0  ;;  %v2864_v17 = vpop.f32.mrb[35].mxu1 }
0x1057   :  { %v2598_v18 = vadd.f32 %v2862_v1, %v2761_v45  ;;  %v2884_v58 = vadd.f32 %v2883_v16, %v2882_v13  ;;  %v2885_v14 = vpop.f32.mrb[22].mxu0  ;;  %v2865_v19 = vadd.f32 %v2864_v17, %v2863_v15 }
0x1058   :  { %v2886_v20 = vpop.f32.mrb[23].mxu0 }
0x1059   :  { %v2639_v21 = vadd.f32 %v2884_v58, %v2598_v18  ;;  %v2601_v22 = vadd.f32 %v2865_v19, %v2761_v45  ;;  %v2887_v23 = vadd.f32 %v2886_v20, %v2885_v14 }
0x105b   :  { %v2645_v24 = vadd.f32 %v2639_v21, %v3738_v33  ;;  %v2642_v25 = vadd.f32 %v2887_v23, %v2601_v22 }
0x105d   :  { %2647 = vst [vmem:[#allocation11] sm:$0xff] %v2645_v24  ;;  %v2646_v54 = vadd.f32 %v2642_v25, %v3740_v5 }
0x105f   :  { %2648 = vst [vmem:[#allocation11 + $0x8] sm:$0xff] %v2646_v54 }
0x1060   :  { %3341 = shalt.err (!%p3338_p2)
}
0x1061   :  { %s3342_s26 = scalar_lea.hbm %s3843_s12, 256 }
0x1062   :  { %p3343_p3 = scmp.ne.s32.totalorder %s3843_s12, %s3342_s26  ;;  %p3346_p4 = scmp.lt.u32.totalorder %s3342_s26, %s3843_s12 }
0x1064   :  { %p3348_p5 = pnand %p3346_p4, %p3343_p3 }
0x1066   :  { %3351 = shalt.err (!%p3348_p5)
}
0x1067   :  { %2660 = dma.vmem_to_hbm [thread:$0]  %s2655_s23, 256, %s3843_s12, [#allocation4], %s3367_s8, %s3367_s8, %s3368_s18  }
0x1068   :  { %3358 = dma.done.wait [#allocation4], 256  }
0x1069   :  { %3359 = vsyncadd [#allocation4], 4294967040 }
0x106a   :  { %2664 = vsyncpa [#allocation3], 1 }
0x106b   :  { %2665 = vsyncpa [#allocation6], 1 }
0x106c   :  { %2666 = vsyncpa [#allocation9], 1 }
0x106d   :  { %2667 = vsyncpa [#allocation4], 1 }

</bundles_post_ra>
